<compile_context>
chip_gen: v5e
topology: v5e:2x2
jax: 0.10.0
libtpu: 0.0.40
codegen_flags: <defaults>
</compile_context>

<pallas_src>
import functools
import math

import jax
import jax.numpy as jnp
from jax import lax
from jax.experimental import pallas as pl
from jax.experimental.pallas import tpu as pltpu

LN_EPS = 1e-5
BN_EPS = 1e-5


# ---------------------------------------------------------------------------
# In-kernel value helpers
# ---------------------------------------------------------------------------
def _layernorm(x, gamma, beta, eps):
    mu = jnp.mean(x, axis=-1, keepdims=True)
    var = jnp.mean(jnp.square(x - mu), axis=-1, keepdims=True)
    return (x - mu) * lax.rsqrt(var + eps) * gamma + beta


def _zero_pad2d(h, p):
    """Zero-pad a 2-D value by p on every side (in-kernel, no HBM traffic)."""
    r, c = h.shape
    zr = jnp.zeros((p, c), h.dtype)
    h = jnp.concatenate([zr, h, zr], axis=0)
    zc = jnp.zeros((r + 2 * p, p), h.dtype)
    return jnp.concatenate([zc, h, zc], axis=1)


# ---------------------------------------------------------------------------
# Fused encoder-stack kernel: one grid step == one TransformerEncoderLayer
# ---------------------------------------------------------------------------
def encoder_stack_kernel(csc_ref, x_ref,
                         wqkv1_ref, bqkv1_ref, wo1_ref, bo1_ref,
                         wqkv2_ref, bqkv2_ref, wo2_ref, bo2_ref,
                         ln1g_ref, ln1b_ref, ln2g_ref, ln2b_ref,
                         o_ref, act_ref, *, heads, heads2):
    l = pl.program_id(0)
    num_l = pl.num_programs(0)
    B, S, D = act_ref.shape
    hd1 = D // heads
    hd2 = S // heads2
    scale1 = 1.0 / math.sqrt(hd1)
    scale2 = 1.0 / math.sqrt(hd2)

    # Layer 0: bring the input into the VMEM-resident activation buffer.
    @pl.when(l == 0)
    def _():
        act_ref[...] = x_ref[...].astype(jnp.float32)

    # This layer's weights (blocked on the layer axis, pipelined by Pallas).
    wqkv1 = wqkv1_ref[0]          # (D, 3D)
    bqkv1 = bqkv1_ref[0]          # (1, 3D)
    wo1 = wo1_ref[0]              # (D, D)
    bo1 = bo1_ref[0]              # (1, D)
    wqkv2 = wqkv2_ref[0]          # (S, 3S)
    bqkv2 = bqkv2_ref[0]          # (1, 3S)
    wo2 = wo2_ref[0]              # (S, S)
    bo2 = bo2_ref[0]              # (1, S)
    g1, bt1 = ln1g_ref[0], ln1b_ref[0]
    g2, bt2 = ln2g_ref[0], ln2b_ref[0]

    # Conv / BN scalars for this layer (packed 1-D SMEM row, dynamic layer idx).
    c1w = csc_ref[l, 0]
    c1b = csc_ref[l, 1]
    c1s = csc_ref[l, 2]
    c1t = csc_ref[l, 3]
    w3 = [csc_ref[l, 4 + i] for i in range(9)]
    c2b = csc_ref[l, 13]
    c2s = csc_ref[l, 14]
    c2t = csc_ref[l, 15]
    w5 = [csc_ref[l, 16 + i] for i in range(25)]
    c3b = csc_ref[l, 41]
    c3s = csc_ref[l, 42]
    c3t = csc_ref[l, 43]

    xs = [act_ref[b] for b in range(B)]                       # B x (S, D) f32

    # --- batch-folded, QKV-fused projections (one MXU matmul each) ---------
    x2d = jnp.concatenate(xs, axis=0)                          # (B*S, D)
    qkv1 = jnp.dot(x2d, wqkv1,
                   preferred_element_type=jnp.float32) + bqkv1  # (B*S, 3D)

    xt2d = jnp.concatenate([xb.T for xb in xs], axis=0)        # (B*D, S)
    qkv2 = jnp.dot(xt2d, wqkv2,
                   preferred_element_type=jnp.float32) + bqkv2  # (B*D, 3S)

    outs = []
    for b in range(B):
        xb = xs[b]

        # ---- attention over d_model (heads split D) ----
        q = qkv1[b * S:(b + 1) * S, 0:D] * scale1
        k = qkv1[b * S:(b + 1) * S, D:2 * D]
        v = qkv1[b * S:(b + 1) * S, 2 * D:3 * D]
        ctx = []
        for h in range(heads):
            lo, hi = h * hd1, (h + 1) * hd1
            s = lax.dot_general(q[:, lo:hi], k[:, lo:hi],
                                (((1,), (1,)), ((), ())),
                                preferred_element_type=jnp.float32)   # (S, S)
            s = s - jnp.max(s, axis=-1, keepdims=True)
            p = jnp.exp(s)
            p = p / jnp.sum(p, axis=-1, keepdims=True)
            ctx.append(jnp.dot(p, v[:, lo:hi],
                               preferred_element_type=jnp.float32))   # (S, hd1)
        a1 = jnp.dot(jnp.concatenate(ctx, axis=1), wo1,
                     preferred_element_type=jnp.float32) + bo1        # (S, D)

        # ---- attention over seq_len (on x^T, heads split S) ----
        q2 = qkv2[b * D:(b + 1) * D, 0:S] * scale2
        k2 = qkv2[b * D:(b + 1) * D, S:2 * S]
        v2 = qkv2[b * D:(b + 1) * D, 2 * S:3 * S]
        ctx2 = []
        for h in range(heads2):
            lo, hi = h * hd2, (h + 1) * hd2
            s = lax.dot_general(q2[:, lo:hi], k2[:, lo:hi],
                                (((1,), (1,)), ((), ())),
                                preferred_element_type=jnp.float32)   # (D, D)
            s = s - jnp.max(s, axis=-1, keepdims=True)
            p = jnp.exp(s)
            p = p / jnp.sum(p, axis=-1, keepdims=True)
            ctx2.append(jnp.dot(p, v2[:, lo:hi],
                                preferred_element_type=jnp.float32))  # (D, hd2)
        a2 = (jnp.dot(jnp.concatenate(ctx2, axis=1), wo2,
                      preferred_element_type=jnp.float32) + bo2).T    # (S, D)

        y = _layernorm(xb + a1 + a2, g1, bt1, LN_EPS)

        # ---- CNN block: 1x1 conv + BN + ReLU, 3x3 (pad 1), 5x5 (pad 2) ----
        h1 = jnp.maximum((y * c1w + c1b) * c1s + c1t, 0.0)
        hp = _zero_pad2d(h1, 2)                                # (S+4, D+4)
        acc = jnp.zeros((S, D), jnp.float32)
        for ki in range(3):
            for kj in range(3):
                acc = acc + hp[1 + ki:1 + ki + S, 1 + kj:1 + kj + D] * w3[ki * 3 + kj]
        h2 = jnp.maximum((acc + c2b) * c2s + c2t, 0.0)
        hp = _zero_pad2d(h2, 2)                                # (S+4, D+4)
        acc = jnp.zeros((S, D), jnp.float32)
        for ki in range(5):
            for kj in range(5):
                acc = acc + hp[ki:ki + S, kj:kj + D] * w5[ki * 5 + kj]
        h3 = jnp.maximum((acc + c3b) * c3s + c3t, 0.0)

        outs.append(_layernorm(y + h3, g2, bt2, LN_EPS))

    # Update resident activations; emit the result only on the last layer.
    for b in range(B):
        act_ref[b] = outs[b]

    @pl.when(l == num_l - 1)
    def _():
        for b in range(B):
            o_ref[b] = outs[b].astype(o_ref.dtype)


# ---------------------------------------------------------------------------
# Wrapper: single pallas_call over the whole encoder stack
# ---------------------------------------------------------------------------
def transformer_encoder_apply(x, params, *, heads, heads2):
    B, S, D = x.shape
    NL = params["wqkv1"].shape[0]

    def wspec(a, b):
        return pl.BlockSpec((1, a, b), lambda l: (l, 0, 0))

    full = pl.BlockSpec((B, S, D), lambda l: (0, 0, 0))
    smem = pl.BlockSpec(memory_space=pltpu.MemorySpace.SMEM)

    kern = functools.partial(encoder_stack_kernel, heads=heads, heads2=heads2)
    return pl.pallas_call(
        kern,
        grid=(NL,),
        in_specs=[smem, full,
                  wspec(D, 3 * D), wspec(1, 3 * D), wspec(D, D), wspec(1, D),
                  wspec(S, 3 * S), wspec(1, 3 * S), wspec(S, S), wspec(1, S),
                  wspec(1, D), wspec(1, D), wspec(1, D), wspec(1, D)],
        out_specs=full,
        out_shape=jax.ShapeDtypeStruct((B, S, D), jnp.float32),
        scratch_shapes=[pltpu.VMEM((B, S, D), jnp.float32)],
        compiler_params=pltpu.CompilerParams(
            dimension_semantics=("arbitrary",)),   # layer axis is sequential
    )(params["conv_sc"], x,
      params["wqkv1"], params["bqkv1"], params["wo1"], params["bo1"],
      params["wqkv2"], params["bqkv2"], params["wo2"], params["bo2"],
      params["ln1_g"], params["ln1_b"], params["ln2_g"], params["ln2_b"])


# ---------------------------------------------------------------------------
# Deterministic parameter initialization (synthetic; shapes follow __init__)
# ---------------------------------------------------------------------------
def init_layer_params(key, d_model, seq_len):
    D, S = d_model, seq_len
    ks = jax.random.split(key, 18)

    def nrm(k, shape, scale=0.1):
        return scale * jax.random.normal(k, shape, dtype=jnp.float32)

    # nn.MultiheadAttention(d_model, heads): packed in_proj (3D,D), out_proj (D,D)
    in_w1 = nrm(ks[0], (3 * D, D)); in_b1 = nrm(ks[1], (3 * D,))
    out_w1 = nrm(ks[2], (D, D));    out_b1 = nrm(ks[3], (D,))
    # nn.MultiheadAttention(seq_len, _heads)
    in_w2 = nrm(ks[4], (3 * S, S)); in_b2 = nrm(ks[5], (3 * S,))
    out_w2 = nrm(ks[6], (S, S));    out_b2 = nrm(ks[7], (S,))
    # LayerNorms (defaults 1/0; perturbed slightly to exercise the math)
    ln1_g = 1.0 + nrm(ks[8], (D,), 0.05);  ln1_b = nrm(ks[9], (D,), 0.05)
    ln2_g = 1.0 + nrm(ks[10], (D,), 0.05); ln2_b = nrm(ks[11], (D,), 0.05)
    # CNN stack: Conv2d(1,1,1x1), Conv2d(1,1,3x3,p=1), Conv2d(1,1,5x5,p=2)
    c1_w = nrm(ks[12], (1, 1, 1, 1)); c1_b = nrm(ks[13], (1,))
    c2_w = nrm(ks[14], (1, 1, 3, 3)); c2_b = nrm(ks[15], (1,))
    c3_w = nrm(ks[16], (1, 1, 5, 5)); c3_b = nrm(ks[17], (1,))
    # BatchNorm2d(1) eval mode, fresh-module running stats folded into scale/shift.
    bn_scale = jnp.float32(1.0) / jnp.sqrt(jnp.float32(1.0) + BN_EPS)
    bn_shift = jnp.float32(0.0)

    p = {}
    # QKV fused: x @ (in_w.T) gives [q | k | v].
    p["wqkv1"] = in_w1.T                              # (D, 3D)
    p["bqkv1"] = in_b1.reshape(1, 3 * D)
    p["wo1"] = out_w1.T                               # (D, D)
    p["bo1"] = out_b1.reshape(1, D)
    p["wqkv2"] = in_w2.T                              # (S, 3S)
    p["bqkv2"] = in_b2.reshape(1, 3 * S)
    p["wo2"] = out_w2.T                               # (S, S)
    p["bo2"] = out_b2.reshape(1, S)
    p["ln1_g"], p["ln1_b"] = ln1_g.reshape(1, D), ln1_b.reshape(1, D)
    p["ln2_g"], p["ln2_b"] = ln2_g.reshape(1, D), ln2_b.reshape(1, D)
    # Packed 1-D conv/BN scalar row (length 44):
    #   [0:4]  = c1_w, c1_b, bn_scale, bn_shift
    #   [4:13] = 3x3 weights, [13:16] = c2_b, bn_scale, bn_shift
    #   [16:41]= 5x5 weights, [41:44] = c3_b, bn_scale, bn_shift
    p["conv_sc"] = jnp.concatenate([
        jnp.stack([c1_w[0, 0, 0, 0], c1_b[0], bn_scale, bn_shift]),
        c2_w.reshape(-1),
        jnp.stack([c2_b[0], bn_scale, bn_shift]),
        c3_w.reshape(-1),
        jnp.stack([c3_b[0], bn_scale, bn_shift]),
    ]).astype(jnp.float32)
    return p


def init_encoder_params(key, num_layers, d_model, seq_len):
    keys = jax.random.split(key, num_layers)
    per_layer = [init_layer_params(k, d_model, seq_len) for k in keys]
    return {name: jnp.stack([p[name] for p in per_layer], axis=0)
            for name in per_layer[0]}


if __name__ == "__main__":
    B, S, D = 2, 8, 32          # batch, seq_len, d_model
    heads, _heads = 4, 2        # d_model % heads == 0, seq_len % _heads == 0
    num_layer = 2

    key = jax.random.PRNGKey(0)
    kx, kp = jax.random.split(key)
    x = jax.random.normal(kx, (B, S, D), dtype=jnp.float32)
    params = init_encoder_params(kp, num_layer, D, S)

    out = transformer_encoder_apply(x, params, heads=heads, heads2=_heads)
    out = jax.block_until_ready(out)
    assert out.shape == (B, S, D) and out.dtype == jnp.float32
    assert bool(jnp.isfinite(out).all())
    print("KERNEL_OK")
</pallas_src>

<mosaic_0001>
module attributes {stable_mosaic.version = 11 : i64} {
  func.func @encoder_stack_kernel(%arg0: i32, %arg1: memref<2x44xf32, #tpu.memory_space<smem>>, %arg2: memref<2x8x32xf32, #tpu.memory_space<vmem>>, %arg3: memref<1x32x96xf32, #tpu.memory_space<vmem>>, %arg4: memref<1x1x96xf32, #tpu.memory_space<vmem>>, %arg5: memref<1x32x32xf32, #tpu.memory_space<vmem>>, %arg6: memref<1x1x32xf32, #tpu.memory_space<vmem>>, %arg7: memref<1x8x24xf32, #tpu.memory_space<vmem>>, %arg8: memref<1x1x24xf32, #tpu.memory_space<vmem>>, %arg9: memref<1x8x8xf32, #tpu.memory_space<vmem>>, %arg10: memref<1x1x8xf32, #tpu.memory_space<vmem>>, %arg11: memref<1x1x32xf32, #tpu.memory_space<vmem>>, %arg12: memref<1x1x32xf32, #tpu.memory_space<vmem>>, %arg13: memref<1x1x32xf32, #tpu.memory_space<vmem>>, %arg14: memref<1x1x32xf32, #tpu.memory_space<vmem>>, %arg15: memref<2x8x32xf32, #tpu.memory_space<vmem>>, %arg16: memref<2x8x32xf32, #tpu.memory_space<vmem>>) attributes {dimension_semantics = [#tpu.dimension_semantics<arbitrary>], iteration_bounds = array<i64: 2>, scalar_prefetch = 0 : i64, scratch_operands = 1 : i64, tpu.core_type = #tpu.core_type<tc>, window_params = [{transform_indices = @transform_0, window_bounds = array<i64: 2, 44>}, {pipeline_mode = #tpu.pipeline_mode<synchronous>, transform_indices = @transform_1, window_bounds = array<i64: 2, 8, 32>}, {transform_indices = @transform_2, window_bounds = array<i64: 1, 32, 96>}, {transform_indices = @transform_3, window_bounds = array<i64: 1, 1, 96>}, {transform_indices = @transform_4, window_bounds = array<i64: 1, 32, 32>}, {transform_indices = @transform_5, window_bounds = array<i64: 1, 1, 32>}, {transform_indices = @transform_6, window_bounds = array<i64: 1, 8, 24>}, {transform_indices = @transform_7, window_bounds = array<i64: 1, 1, 24>}, {transform_indices = @transform_8, window_bounds = array<i64: 1, 8, 8>}, {transform_indices = @transform_9, window_bounds = array<i64: 1, 1, 8>}, {transform_indices = @transform_10, window_bounds = array<i64: 1, 1, 32>}, {transform_indices = @transform_11, window_bounds = array<i64: 1, 1, 32>}, {transform_indices = @transform_12, window_bounds = array<i64: 1, 1, 32>}, {transform_indices = @transform_13, window_bounds = array<i64: 1, 1, 32>}, {pipeline_mode = #tpu.pipeline_mode<synchronous>, transform_indices = @transform_14, window_bounds = array<i64: 2, 8, 32>}]} {
    %c0_i32 = arith.constant 0 : i32
    %0 = arith.cmpi eq, %arg0, %c0_i32 : i32
    %1 = arith.extui %0 : i1 to i32
    %c0_i32_0 = arith.constant 0 : i32
    %2 = arith.cmpi ne, %1, %c0_i32_0 : i32
    scf.if %2 {
      %c0_145 = arith.constant 0 : index
      %c0_146 = arith.constant 0 : index
      %c0_147 = arith.constant 0 : index
      %782 = vector.load %arg2[%c0_145, %c0_146, %c0_147] : memref<2x8x32xf32, #tpu.memory_space<vmem>>, vector<2x8x32xf32>
      %c0_148 = arith.constant 0 : index
      %c0_149 = arith.constant 0 : index
      %c0_150 = arith.constant 0 : index
      %783 = vector.load %arg16[%c0_148, %c0_149, %c0_150] : memref<2x8x32xf32, #tpu.memory_space<vmem>>, vector<2x8x32xf32>
      tpu.vector_store %arg16[%c0_148, %c0_149, %c0_150], %782 {strides = array<i32>} : memref<2x8x32xf32, #tpu.memory_space<vmem>>, vector<2x8x32xf32>,
    } else {
    }
    %c0 = arith.constant 0 : index
    %c0_1 = arith.constant 0 : index
    %c0_2 = arith.constant 0 : index
    %3 = vector.load %arg3[%c0, %c0_1, %c0_2] : memref<1x32x96xf32, #tpu.memory_space<vmem>>, vector<1x32x96xf32>
    %4 = vector.shape_cast %3 : vector<1x32x96xf32> to vector<32x96xf32>
    %c0_3 = arith.constant 0 : index
    %c0_4 = arith.constant 0 : index
    %c0_5 = arith.constant 0 : index
    %5 = vector.load %arg4[%c0_3, %c0_4, %c0_5] : memref<1x1x96xf32, #tpu.memory_space<vmem>>, vector<1x1x96xf32>
    %6 = vector.shape_cast %5 : vector<1x1x96xf32> to vector<1x96xf32>
    %c0_6 = arith.constant 0 : index
    %c0_7 = arith.constant 0 : index
    %c0_8 = arith.constant 0 : index
    %7 = vector.load %arg5[%c0_6, %c0_7, %c0_8] : memref<1x32x32xf32, #tpu.memory_space<vmem>>, vector<1x32x32xf32>
    %8 = vector.shape_cast %7 : vector<1x32x32xf32> to vector<32x32xf32>
    %c0_9 = arith.constant 0 : index
    %c0_10 = arith.constant 0 : index
    %c0_11 = arith.constant 0 : index
    %9 = vector.load %arg6[%c0_9, %c0_10, %c0_11] : memref<1x1x32xf32, #tpu.memory_space<vmem>>, vector<1x1x32xf32>
    %10 = vector.shape_cast %9 : vector<1x1x32xf32> to vector<1x32xf32>
    %c0_12 = arith.constant 0 : index
    %c0_13 = arith.constant 0 : index
    %c0_14 = arith.constant 0 : index
    %11 = vector.load %arg7[%c0_12, %c0_13, %c0_14] : memref<1x8x24xf32, #tpu.memory_space<vmem>>, vector<1x8x24xf32>
    %12 = vector.shape_cast %11 : vector<1x8x24xf32> to vector<8x24xf32>
    %c0_15 = arith.constant 0 : index
    %c0_16 = arith.constant 0 : index
    %c0_17 = arith.constant 0 : index
    %13 = vector.load %arg8[%c0_15, %c0_16, %c0_17] : memref<1x1x24xf32, #tpu.memory_space<vmem>>, vector<1x1x24xf32>
    %14 = vector.shape_cast %13 : vector<1x1x24xf32> to vector<1x24xf32>
    %c0_18 = arith.constant 0 : index
    %c0_19 = arith.constant 0 : index
    %c0_20 = arith.constant 0 : index
    %15 = vector.load %arg9[%c0_18, %c0_19, %c0_20] : memref<1x8x8xf32, #tpu.memory_space<vmem>>, vector<1x8x8xf32>
    %16 = vector.shape_cast %15 : vector<1x8x8xf32> to vector<8x8xf32>
    %c0_21 = arith.constant 0 : index
    %c0_22 = arith.constant 0 : index
    %c0_23 = arith.constant 0 : index
    %17 = vector.load %arg10[%c0_21, %c0_22, %c0_23] : memref<1x1x8xf32, #tpu.memory_space<vmem>>, vector<1x1x8xf32>
    %18 = vector.shape_cast %17 : vector<1x1x8xf32> to vector<1x8xf32>
    %c0_24 = arith.constant 0 : index
    %c0_25 = arith.constant 0 : index
    %c0_26 = arith.constant 0 : index
    %19 = vector.load %arg11[%c0_24, %c0_25, %c0_26] : memref<1x1x32xf32, #tpu.memory_space<vmem>>, vector<1x1x32xf32>
    %20 = vector.shape_cast %19 : vector<1x1x32xf32> to vector<1x32xf32>
    %c0_27 = arith.constant 0 : index
    %c0_28 = arith.constant 0 : index
    %c0_29 = arith.constant 0 : index
    %21 = vector.load %arg12[%c0_27, %c0_28, %c0_29] : memref<1x1x32xf32, #tpu.memory_space<vmem>>, vector<1x1x32xf32>
    %22 = vector.shape_cast %21 : vector<1x1x32xf32> to vector<1x32xf32>
    %c0_30 = arith.constant 0 : index
    %c0_31 = arith.constant 0 : index
    %c0_32 = arith.constant 0 : index
    %23 = vector.load %arg13[%c0_30, %c0_31, %c0_32] : memref<1x1x32xf32, #tpu.memory_space<vmem>>, vector<1x1x32xf32>
    %24 = vector.shape_cast %23 : vector<1x1x32xf32> to vector<1x32xf32>
    %c0_33 = arith.constant 0 : index
    %c0_34 = arith.constant 0 : index
    %c0_35 = arith.constant 0 : index
    %25 = vector.load %arg14[%c0_33, %c0_34, %c0_35] : memref<1x1x32xf32, #tpu.memory_space<vmem>>, vector<1x1x32xf32>
    %26 = vector.shape_cast %25 : vector<1x1x32xf32> to vector<1x32xf32>
    %27 = arith.index_cast %arg0 : i32 to index
    %c0_36 = arith.constant 0 : index
    %28 = memref.load %arg1[%27, %c0_36] : memref<2x44xf32, #tpu.memory_space<smem>>
    %29 = arith.index_cast %arg0 : i32 to index
    %c1 = arith.constant 1 : index
    %30 = memref.load %arg1[%29, %c1] : memref<2x44xf32, #tpu.memory_space<smem>>
    %31 = arith.index_cast %arg0 : i32 to index
    %c2 = arith.constant 2 : index
    %32 = memref.load %arg1[%31, %c2] : memref<2x44xf32, #tpu.memory_space<smem>>
    %33 = arith.index_cast %arg0 : i32 to index
    %c3 = arith.constant 3 : index
    %34 = memref.load %arg1[%33, %c3] : memref<2x44xf32, #tpu.memory_space<smem>>
    %35 = arith.index_cast %arg0 : i32 to index
    %c4 = arith.constant 4 : index
    %36 = memref.load %arg1[%35, %c4] : memref<2x44xf32, #tpu.memory_space<smem>>
    %37 = arith.index_cast %arg0 : i32 to index
    %c5 = arith.constant 5 : index
    %38 = memref.load %arg1[%37, %c5] : memref<2x44xf32, #tpu.memory_space<smem>>
    %39 = arith.index_cast %arg0 : i32 to index
    %c6 = arith.constant 6 : index
    %40 = memref.load %arg1[%39, %c6] : memref<2x44xf32, #tpu.memory_space<smem>>
    %41 = arith.index_cast %arg0 : i32 to index
    %c7 = arith.constant 7 : index
    %42 = memref.load %arg1[%41, %c7] : memref<2x44xf32, #tpu.memory_space<smem>>
    %43 = arith.index_cast %arg0 : i32 to index
    %c8 = arith.constant 8 : index
    %44 = memref.load %arg1[%43, %c8] : memref<2x44xf32, #tpu.memory_space<smem>>
    %45 = arith.index_cast %arg0 : i32 to index
    %c9 = arith.constant 9 : index
    %46 = memref.load %arg1[%45, %c9] : memref<2x44xf32, #tpu.memory_space<smem>>
    %47 = arith.index_cast %arg0 : i32 to index
    %c10 = arith.constant 10 : index
    %48 = memref.load %arg1[%47, %c10] : memref<2x44xf32, #tpu.memory_space<smem>>
    %49 = arith.index_cast %arg0 : i32 to index
    %c11 = arith.constant 11 : index
    %50 = memref.load %arg1[%49, %c11] : memref<2x44xf32, #tpu.memory_space<smem>>
    %51 = arith.index_cast %arg0 : i32 to index
    %c12 = arith.constant 12 : index
    %52 = memref.load %arg1[%51, %c12] : memref<2x44xf32, #tpu.memory_space<smem>>
    %53 = arith.index_cast %arg0 : i32 to index
    %c13 = arith.constant 13 : index
    %54 = memref.load %arg1[%53, %c13] : memref<2x44xf32, #tpu.memory_space<smem>>
    %55 = arith.index_cast %arg0 : i32 to index
    %c14 = arith.constant 14 : index
    %56 = memref.load %arg1[%55, %c14] : memref<2x44xf32, #tpu.memory_space<smem>>
    %57 = arith.index_cast %arg0 : i32 to index
    %c15 = arith.constant 15 : index
    %58 = memref.load %arg1[%57, %c15] : memref<2x44xf32, #tpu.memory_space<smem>>
    %59 = arith.index_cast %arg0 : i32 to index
    %c16 = arith.constant 16 : index
    %60 = memref.load %arg1[%59, %c16] : memref<2x44xf32, #tpu.memory_space<smem>>
    %61 = arith.index_cast %arg0 : i32 to index
    %c17 = arith.constant 17 : index
    %62 = memref.load %arg1[%61, %c17] : memref<2x44xf32, #tpu.memory_space<smem>>
    %63 = arith.index_cast %arg0 : i32 to index
    %c18 = arith.constant 18 : index
    %64 = memref.load %arg1[%63, %c18] : memref<2x44xf32, #tpu.memory_space<smem>>
    %65 = arith.index_cast %arg0 : i32 to index
    %c19 = arith.constant 19 : index
    %66 = memref.load %arg1[%65, %c19] : memref<2x44xf32, #tpu.memory_space<smem>>
    %67 = arith.index_cast %arg0 : i32 to index
    %c20 = arith.constant 20 : index
    %68 = memref.load %arg1[%67, %c20] : memref<2x44xf32, #tpu.memory_space<smem>>
    %69 = arith.index_cast %arg0 : i32 to index
    %c21 = arith.constant 21 : index
    %70 = memref.load %arg1[%69, %c21] : memref<2x44xf32, #tpu.memory_space<smem>>
    %71 = arith.index_cast %arg0 : i32 to index
    %c22 = arith.constant 22 : index
    %72 = memref.load %arg1[%71, %c22] : memref<2x44xf32, #tpu.memory_space<smem>>
    %73 = arith.index_cast %arg0 : i32 to index
    %c23 = arith.constant 23 : index
    %74 = memref.load %arg1[%73, %c23] : memref<2x44xf32, #tpu.memory_space<smem>>
    %75 = arith.index_cast %arg0 : i32 to index
    %c24 = arith.constant 24 : index
    %76 = memref.load %arg1[%75, %c24] : memref<2x44xf32, #tpu.memory_space<smem>>
    %77 = arith.index_cast %arg0 : i32 to index
    %c25 = arith.constant 25 : index
    %78 = memref.load %arg1[%77, %c25] : memref<2x44xf32, #tpu.memory_space<smem>>
    %79 = arith.index_cast %arg0 : i32 to index
    %c26 = arith.constant 26 : index
    %80 = memref.load %arg1[%79, %c26] : memref<2x44xf32, #tpu.memory_space<smem>>
    %81 = arith.index_cast %arg0 : i32 to index
    %c27 = arith.constant 27 : index
    %82 = memref.load %arg1[%81, %c27] : memref<2x44xf32, #tpu.memory_space<smem>>
    %83 = arith.index_cast %arg0 : i32 to index
    %c28 = arith.constant 28 : index
    %84 = memref.load %arg1[%83, %c28] : memref<2x44xf32, #tpu.memory_space<smem>>
    %85 = arith.index_cast %arg0 : i32 to index
    %c29 = arith.constant 29 : index
    %86 = memref.load %arg1[%85, %c29] : memref<2x44xf32, #tpu.memory_space<smem>>
    %87 = arith.index_cast %arg0 : i32 to index
    %c30 = arith.constant 30 : index
    %88 = memref.load %arg1[%87, %c30] : memref<2x44xf32, #tpu.memory_space<smem>>
    %89 = arith.index_cast %arg0 : i32 to index
    %c31 = arith.constant 31 : index
    %90 = memref.load %arg1[%89, %c31] : memref<2x44xf32, #tpu.memory_space<smem>>
    %91 = arith.index_cast %arg0 : i32 to index
    %c32 = arith.constant 32 : index
    %92 = memref.load %arg1[%91, %c32] : memref<2x44xf32, #tpu.memory_space<smem>>
    %93 = arith.index_cast %arg0 : i32 to index
    %c33 = arith.constant 33 : index
    %94 = memref.load %arg1[%93, %c33] : memref<2x44xf32, #tpu.memory_space<smem>>
    %95 = arith.index_cast %arg0 : i32 to index
    %c34 = arith.constant 34 : index
    %96 = memref.load %arg1[%95, %c34] : memref<2x44xf32, #tpu.memory_space<smem>>
    %97 = arith.index_cast %arg0 : i32 to index
    %c35 = arith.constant 35 : index
    %98 = memref.load %arg1[%97, %c35] : memref<2x44xf32, #tpu.memory_space<smem>>
    %99 = arith.index_cast %arg0 : i32 to index
    %c36 = arith.constant 36 : index
    %100 = memref.load %arg1[%99, %c36] : memref<2x44xf32, #tpu.memory_space<smem>>
    %101 = arith.index_cast %arg0 : i32 to index
    %c37 = arith.constant 37 : index
    %102 = memref.load %arg1[%101, %c37] : memref<2x44xf32, #tpu.memory_space<smem>>
    %103 = arith.index_cast %arg0 : i32 to index
    %c38 = arith.constant 38 : index
    %104 = memref.load %arg1[%103, %c38] : memref<2x44xf32, #tpu.memory_space<smem>>
    %105 = arith.index_cast %arg0 : i32 to index
    %c39 = arith.constant 39 : index
    %106 = memref.load %arg1[%105, %c39] : memref<2x44xf32, #tpu.memory_space<smem>>
    %107 = arith.index_cast %arg0 : i32 to index
    %c40 = arith.constant 40 : index
    %108 = memref.load %arg1[%107, %c40] : memref<2x44xf32, #tpu.memory_space<smem>>
    %109 = arith.index_cast %arg0 : i32 to index
    %c41 = arith.constant 41 : index
    %110 = memref.load %arg1[%109, %c41] : memref<2x44xf32, #tpu.memory_space<smem>>
    %111 = arith.index_cast %arg0 : i32 to index
    %c42 = arith.constant 42 : index
    %112 = memref.load %arg1[%111, %c42] : memref<2x44xf32, #tpu.memory_space<smem>>
    %113 = arith.index_cast %arg0 : i32 to index
    %c43 = arith.constant 43 : index
    %114 = memref.load %arg1[%113, %c43] : memref<2x44xf32, #tpu.memory_space<smem>>
    %c0_37 = arith.constant 0 : index
    %c0_38 = arith.constant 0 : index
    %c0_39 = arith.constant 0 : index
    %115 = vector.load %arg16[%c0_37, %c0_38, %c0_39] : memref<2x8x32xf32, #tpu.memory_space<vmem>>, vector<1x8x32xf32>
    %116 = vector.shape_cast %115 : vector<1x8x32xf32> to vector<8x32xf32>
    %c1_40 = arith.constant 1 : index
    %c0_41 = arith.constant 0 : index
    %c0_42 = arith.constant 0 : index
    %117 = vector.load %arg16[%c1_40, %c0_41, %c0_42] : memref<2x8x32xf32, #tpu.memory_space<vmem>>, vector<1x8x32xf32>
    %118 = vector.shape_cast %117 : vector<1x8x32xf32> to vector<8x32xf32>
    %119 = tpu.concatenate %116, %118 in 0 : vector<8x32xf32>, vector<8x32xf32> -> vector<16x32xf32>
    %cst = arith.constant dense<0.000000e+00> : vector<16x96xf32>
    %120 = tpu.matmul %119, %4, %cst {dimension_numbers = #tpu.dot_dimension_numbers<[1], [0], [0], [1], [0, 0, 1, 1], [], []>} : vector<16x32xf32>, vector<32x96xf32>, vector<16x96xf32> -> vector<16x96xf32>
    %121 = vector.broadcast %6 : vector<1x96xf32> to vector<16x96xf32>
    %122 = arith.addf %120, %121 : vector<16x96xf32>
    %123 = tpu.transpose %116, [1, 0] : vector<8x32xf32> -> vector<32x8xf32>
    %124 = tpu.transpose %118, [1, 0] : vector<8x32xf32> -> vector<32x8xf32>
    %125 = tpu.concatenate %123, %124 in 0 : vector<32x8xf32>, vector<32x8xf32> -> vector<64x8xf32>
    %cst_43 = arith.constant dense<0.000000e+00> : vector<64x24xf32>
    %126 = tpu.matmul %125, %12, %cst_43 {dimension_numbers = #tpu.dot_dimension_numbers<[1], [0], [0], [1], [0, 0, 1, 1], [], []>} : vector<64x8xf32>, vector<8x24xf32>, vector<64x24xf32> -> vector<64x24xf32>
    %127 = vector.broadcast %14 : vector<1x24xf32> to vector<64x24xf32>
    %128 = arith.addf %126, %127 : vector<64x24xf32>
    %129 = vector.extract_strided_slice %122 {offsets = [0, 0], sizes = [8, 32], strides = [1, 1]} : vector<16x96xf32> to vector<8x32xf32>
    %cst_44 = arith.constant 0.353553385 : f32
    %130 = vector.broadcast %cst_44 : f32 to vector<8x32xf32>
    %131 = arith.mulf %129, %130 : vector<8x32xf32>
    %132 = vector.extract_strided_slice %122 {offsets = [0, 32], sizes = [8, 32], strides = [1, 1]} : vector<16x96xf32> to vector<8x32xf32>
    %133 = vector.extract_strided_slice %122 {offsets = [0, 64], sizes = [8, 32], strides = [1, 1]} : vector<16x96xf32> to vector<8x32xf32>
    %134 = vector.extract_strided_slice %131 {offsets = [0, 0], sizes = [8, 8], strides = [1, 1]} : vector<8x32xf32> to vector<8x8xf32>
    %135 = vector.extract_strided_slice %132 {offsets = [0, 0], sizes = [8, 8], strides = [1, 1]} : vector<8x32xf32> to vector<8x8xf32>
    %cst_45 = arith.constant dense<0.000000e+00> : vector<8x8xf32>
    %136 = tpu.matmul %134, %135, %cst_45 {dimension_numbers = #tpu.dot_dimension_numbers<[1], [1], [0], [0], [0, 0, 1, 0], [], []>} : vector<8x8xf32>, vector<8x8xf32>, vector<8x8xf32> -> vector<8x8xf32>
    %cst_46 = arith.constant dense<0xFF800000> : vector<8xf32>
    %137 = vector.multi_reduction <maximumf>, %136, %cst_46 [1] : vector<8x8xf32> to vector<8xf32>
    %138 = vector.shape_cast %137 : vector<8xf32> to vector<8x1xf32>
    %139 = vector.broadcast %138 : vector<8x1xf32> to vector<8x8xf32>
    %140 = arith.subf %136, %139 : vector<8x8xf32>
    %141 = math.exp %140 : vector<8x8xf32>
    %cst_47 = arith.constant dense<0.000000e+00> : vector<8xf32>
    %142 = vector.multi_reduction <add>, %141, %cst_47 [1] : vector<8x8xf32> to vector<8xf32>
    %143 = vector.shape_cast %142 : vector<8xf32> to vector<8x1xf32>
    %144 = vector.broadcast %143 : vector<8x1xf32> to vector<8x8xf32>
    %145 = arith.divf %141, %144 : vector<8x8xf32>
    %146 = vector.extract_strided_slice %133 {offsets = [0, 0], sizes = [8, 8], strides = [1, 1]} : vector<8x32xf32> to vector<8x8xf32>
    %cst_48 = arith.constant dense<0.000000e+00> : vector<8x8xf32>
    %147 = tpu.matmul %145, %146, %cst_48 {dimension_numbers = #tpu.dot_dimension_numbers<[1], [0], [0], [1], [0, 0, 1, 1], [], []>} : vector<8x8xf32>, vector<8x8xf32>, vector<8x8xf32> -> vector<8x8xf32>
    %148 = vector.extract_strided_slice %131 {offsets = [0, 8], sizes = [8, 8], strides = [1, 1]} : vector<8x32xf32> to vector<8x8xf32>
    %149 = vector.extract_strided_slice %132 {offsets = [0, 8], sizes = [8, 8], strides = [1, 1]} : vector<8x32xf32> to vector<8x8xf32>
    %cst_49 = arith.constant dense<0.000000e+00> : vector<8x8xf32>
    %150 = tpu.matmul %148, %149, %cst_49 {dimension_numbers = #tpu.dot_dimension_numbers<[1], [1], [0], [0], [0, 0, 1, 0], [], []>} : vector<8x8xf32>, vector<8x8xf32>, vector<8x8xf32> -> vector<8x8xf32>
    %cst_50 = arith.constant dense<0xFF800000> : vector<8xf32>
    %151 = vector.multi_reduction <maximumf>, %150, %cst_50 [1] : vector<8x8xf32> to vector<8xf32>
    %152 = vector.shape_cast %151 : vector<8xf32> to vector<8x1xf32>
    %153 = vector.broadcast %152 : vector<8x1xf32> to vector<8x8xf32>
    %154 = arith.subf %150, %153 : vector<8x8xf32>
    %155 = math.exp %154 : vector<8x8xf32>
    %cst_51 = arith.constant dense<0.000000e+00> : vector<8xf32>
    %156 = vector.multi_reduction <add>, %155, %cst_51 [1] : vector<8x8xf32> to vector<8xf32>
    %157 = vector.shape_cast %156 : vector<8xf32> to vector<8x1xf32>
    %158 = vector.broadcast %157 : vector<8x1xf32> to vector<8x8xf32>
    %159 = arith.divf %155, %158 : vector<8x8xf32>
    %160 = vector.extract_strided_slice %133 {offsets = [0, 8], sizes = [8, 8], strides = [1, 1]} : vector<8x32xf32> to vector<8x8xf32>
    %cst_52 = arith.constant dense<0.000000e+00> : vector<8x8xf32>
    %161 = tpu.matmul %159, %160, %cst_52 {dimension_numbers = #tpu.dot_dimension_numbers<[1], [0], [0], [1], [0, 0, 1, 1], [], []>} : vector<8x8xf32>, vector<8x8xf32>, vector<8x8xf32> -> vector<8x8xf32>
    %162 = vector.extract_strided_slice %131 {offsets = [0, 16], sizes = [8, 8], strides = [1, 1]} : vector<8x32xf32> to vector<8x8xf32>
    %163 = vector.extract_strided_slice %132 {offsets = [0, 16], sizes = [8, 8], strides = [1, 1]} : vector<8x32xf32> to vector<8x8xf32>
    %cst_53 = arith.constant dense<0.000000e+00> : vector<8x8xf32>
    %164 = tpu.matmul %162, %163, %cst_53 {dimension_numbers = #tpu.dot_dimension_numbers<[1], [1], [0], [0], [0, 0, 1, 0], [], []>} : vector<8x8xf32>, vector<8x8xf32>, vector<8x8xf32> -> vector<8x8xf32>
    %cst_54 = arith.constant dense<0xFF800000> : vector<8xf32>
    %165 = vector.multi_reduction <maximumf>, %164, %cst_54 [1] : vector<8x8xf32> to vector<8xf32>
    %166 = vector.shape_cast %165 : vector<8xf32> to vector<8x1xf32>
    %167 = vector.broadcast %166 : vector<8x1xf32> to vector<8x8xf32>
    %168 = arith.subf %164, %167 : vector<8x8xf32>
    %169 = math.exp %168 : vector<8x8xf32>
    %cst_55 = arith.constant dense<0.000000e+00> : vector<8xf32>
    %170 = vector.multi_reduction <add>, %169, %cst_55 [1] : vector<8x8xf32> to vector<8xf32>
    %171 = vector.shape_cast %170 : vector<8xf32> to vector<8x1xf32>
    %172 = vector.broadcast %171 : vector<8x1xf32> to vector<8x8xf32>
    %173 = arith.divf %169, %172 : vector<8x8xf32>
    %174 = vector.extract_strided_slice %133 {offsets = [0, 16], sizes = [8, 8], strides = [1, 1]} : vector<8x32xf32> to vector<8x8xf32>
    %cst_56 = arith.constant dense<0.000000e+00> : vector<8x8xf32>
    %175 = tpu.matmul %173, %174, %cst_56 {dimension_numbers = #tpu.dot_dimension_numbers<[1], [0], [0], [1], [0, 0, 1, 1], [], []>} : vector<8x8xf32>, vector<8x8xf32>, vector<8x8xf32> -> vector<8x8xf32>
    %176 = vector.extract_strided_slice %131 {offsets = [0, 24], sizes = [8, 8], strides = [1, 1]} : vector<8x32xf32> to vector<8x8xf32>
    %177 = vector.extract_strided_slice %132 {offsets = [0, 24], sizes = [8, 8], strides = [1, 1]} : vector<8x32xf32> to vector<8x8xf32>
    %cst_57 = arith.constant dense<0.000000e+00> : vector<8x8xf32>
    %178 = tpu.matmul %176, %177, %cst_57 {dimension_numbers = #tpu.dot_dimension_numbers<[1], [1], [0], [0], [0, 0, 1, 0], [], []>} : vector<8x8xf32>, vector<8x8xf32>, vector<8x8xf32> -> vector<8x8xf32>
    %cst_58 = arith.constant dense<0xFF800000> : vector<8xf32>
    %179 = vector.multi_reduction <maximumf>, %178, %cst_58 [1] : vector<8x8xf32> to vector<8xf32>
    %180 = vector.shape_cast %179 : vector<8xf32> to vector<8x1xf32>
    %181 = vector.broadcast %180 : vector<8x1xf32> to vector<8x8xf32>
    %182 = arith.subf %178, %181 : vector<8x8xf32>
    %183 = math.exp %182 : vector<8x8xf32>
    %cst_59 = arith.constant dense<0.000000e+00> : vector<8xf32>
    %184 = vector.multi_reduction <add>, %183, %cst_59 [1] : vector<8x8xf32> to vector<8xf32>
    %185 = vector.shape_cast %184 : vector<8xf32> to vector<8x1xf32>
    %186 = vector.broadcast %185 : vector<8x1xf32> to vector<8x8xf32>
    %187 = arith.divf %183, %186 : vector<8x8xf32>
    %188 = vector.extract_strided_slice %133 {offsets = [0, 24], sizes = [8, 8], strides = [1, 1]} : vector<8x32xf32> to vector<8x8xf32>
    %cst_60 = arith.constant dense<0.000000e+00> : vector<8x8xf32>
    %189 = tpu.matmul %187, %188, %cst_60 {dimension_numbers = #tpu.dot_dimension_numbers<[1], [0], [0], [1], [0, 0, 1, 1], [], []>} : vector<8x8xf32>, vector<8x8xf32>, vector<8x8xf32> -> vector<8x8xf32>
    %190 = tpu.concatenate %147, %161, %175, %189 in 1 : vector<8x8xf32>, vector<8x8xf32>, vector<8x8xf32>, vector<8x8xf32> -> vector<8x32xf32>
    %cst_61 = arith.constant dense<0.000000e+00> : vector<8x32xf32>
    %191 = tpu.matmul %190, %8, %cst_61 {dimension_numbers = #tpu.dot_dimension_numbers<[1], [0], [0], [1], [0, 0, 1, 1], [], []>} : vector<8x32xf32>, vector<32x32xf32>, vector<8x32xf32> -> vector<8x32xf32>
    %192 = vector.broadcast %10 : vector<1x32xf32> to vector<8x32xf32>
    %193 = arith.addf %191, %192 : vector<8x32xf32>
    %194 = vector.extract_strided_slice %128 {offsets = [0, 0], sizes = [32, 8], strides = [1, 1]} : vector<64x24xf32> to vector<32x8xf32>
    %cst_62 = arith.constant 5.000000e-01 : f32
    %195 = vector.broadcast %cst_62 : f32 to vector<32x8xf32>
    %196 = arith.mulf %194, %195 : vector<32x8xf32>
    %197 = vector.extract_strided_slice %128 {offsets = [0, 8], sizes = [32, 8], strides = [1, 1]} : vector<64x24xf32> to vector<32x8xf32>
    %198 = vector.extract_strided_slice %128 {offsets = [0, 16], sizes = [32, 8], strides = [1, 1]} : vector<64x24xf32> to vector<32x8xf32>
    %199 = vector.extract_strided_slice %196 {offsets = [0, 0], sizes = [32, 4], strides = [1, 1]} : vector<32x8xf32> to vector<32x4xf32>
    %200 = vector.extract_strided_slice %197 {offsets = [0, 0], sizes = [32, 4], strides = [1, 1]} : vector<32x8xf32> to vector<32x4xf32>
    %cst_63 = arith.constant dense<0.000000e+00> : vector<32x32xf32>
    %201 = tpu.matmul %199, %200, %cst_63 {dimension_numbers = #tpu.dot_dimension_numbers<[1], [1], [0], [0], [0, 0, 1, 0], [], []>} : vector<32x4xf32>, vector<32x4xf32>, vector<32x32xf32> -> vector<32x32xf32>
    %cst_64 = arith.constant dense<0xFF800000> : vector<32xf32>
    %202 = vector.multi_reduction <maximumf>, %201, %cst_64 [1] : vector<32x32xf32> to vector<32xf32>
    %203 = vector.shape_cast %202 : vector<32xf32> to vector<32x1xf32>
    %204 = vector.broadcast %203 : vector<32x1xf32> to vector<32x32xf32>
    %205 = arith.subf %201, %204 : vector<32x32xf32>
    %206 = math.exp %205 : vector<32x32xf32>
    %cst_65 = arith.constant dense<0.000000e+00> : vector<32xf32>
    %207 = vector.multi_reduction <add>, %206, %cst_65 [1] : vector<32x32xf32> to vector<32xf32>
    %208 = vector.shape_cast %207 : vector<32xf32> to vector<32x1xf32>
    %209 = vector.broadcast %208 : vector<32x1xf32> to vector<32x32xf32>
    %210 = arith.divf %206, %209 : vector<32x32xf32>
    %211 = vector.extract_strided_slice %198 {offsets = [0, 0], sizes = [32, 4], strides = [1, 1]} : vector<32x8xf32> to vector<32x4xf32>
    %cst_66 = arith.constant dense<0.000000e+00> : vector<32x4xf32>
    %212 = tpu.matmul %210, %211, %cst_66 {dimension_numbers = #tpu.dot_dimension_numbers<[1], [0], [0], [1], [0, 0, 1, 1], [], []>} : vector<32x32xf32>, vector<32x4xf32>, vector<32x4xf32> -> vector<32x4xf32>
    %213 = vector.extract_strided_slice %196 {offsets = [0, 4], sizes = [32, 4], strides = [1, 1]} : vector<32x8xf32> to vector<32x4xf32>
    %214 = vector.extract_strided_slice %197 {offsets = [0, 4], sizes = [32, 4], strides = [1, 1]} : vector<32x8xf32> to vector<32x4xf32>
    %cst_67 = arith.constant dense<0.000000e+00> : vector<32x32xf32>
    %215 = tpu.matmul %213, %214, %cst_67 {dimension_numbers = #tpu.dot_dimension_numbers<[1], [1], [0], [0], [0, 0, 1, 0], [], []>} : vector<32x4xf32>, vector<32x4xf32>, vector<32x32xf32> -> vector<32x32xf32>
    %cst_68 = arith.constant dense<0xFF800000> : vector<32xf32>
    %216 = vector.multi_reduction <maximumf>, %215, %cst_68 [1] : vector<32x32xf32> to vector<32xf32>
    %217 = vector.shape_cast %216 : vector<32xf32> to vector<32x1xf32>
    %218 = vector.broadcast %217 : vector<32x1xf32> to vector<32x32xf32>
    %219 = arith.subf %215, %218 : vector<32x32xf32>
    %220 = math.exp %219 : vector<32x32xf32>
    %cst_69 = arith.constant dense<0.000000e+00> : vector<32xf32>
    %221 = vector.multi_reduction <add>, %220, %cst_69 [1] : vector<32x32xf32> to vector<32xf32>
    %222 = vector.shape_cast %221 : vector<32xf32> to vector<32x1xf32>
    %223 = vector.broadcast %222 : vector<32x1xf32> to vector<32x32xf32>
    %224 = arith.divf %220, %223 : vector<32x32xf32>
    %225 = vector.extract_strided_slice %198 {offsets = [0, 4], sizes = [32, 4], strides = [1, 1]} : vector<32x8xf32> to vector<32x4xf32>
    %cst_70 = arith.constant dense<0.000000e+00> : vector<32x4xf32>
    %226 = tpu.matmul %224, %225, %cst_70 {dimension_numbers = #tpu.dot_dimension_numbers<[1], [0], [0], [1], [0, 0, 1, 1], [], []>} : vector<32x32xf32>, vector<32x4xf32>, vector<32x4xf32> -> vector<32x4xf32>
    %227 = tpu.concatenate %212, %226 in 1 : vector<32x4xf32>, vector<32x4xf32> -> vector<32x8xf32>
    %cst_71 = arith.constant dense<0.000000e+00> : vector<32x8xf32>
    %228 = tpu.matmul %227, %16, %cst_71 {dimension_numbers = #tpu.dot_dimension_numbers<[1], [0], [0], [1], [0, 0, 1, 1], [], []>} : vector<32x8xf32>, vector<8x8xf32>, vector<32x8xf32> -> vector<32x8xf32>
    %229 = vector.broadcast %18 : vector<1x8xf32> to vector<32x8xf32>
    %230 = arith.addf %228, %229 : vector<32x8xf32>
    %231 = tpu.transpose %230, [1, 0] : vector<32x8xf32> -> vector<8x32xf32>
    %232 = arith.addf %116, %193 : vector<8x32xf32>
    %233 = arith.addf %232, %231 : vector<8x32xf32>
    %cst_72 = arith.constant dense<0.000000e+00> : vector<8xf32>
    %234 = vector.multi_reduction <add>, %233, %cst_72 [1] : vector<8x32xf32> to vector<8xf32>
    %235 = vector.shape_cast %234 : vector<8xf32> to vector<8x1xf32>
    %cst_73 = arith.constant 3.200000e+01 : f32
    %236 = vector.broadcast %cst_73 : f32 to vector<8x1xf32>
    %237 = arith.divf %235, %236 : vector<8x1xf32>
    %238 = vector.broadcast %237 : vector<8x1xf32> to vector<8x32xf32>
    %239 = arith.subf %233, %238 : vector<8x32xf32>
    %240 = arith.mulf %239, %239 : vector<8x32xf32>
    %cst_74 = arith.constant dense<0.000000e+00> : vector<8xf32>
    %241 = vector.multi_reduction <add>, %240, %cst_74 [1] : vector<8x32xf32> to vector<8xf32>
    %242 = vector.shape_cast %241 : vector<8xf32> to vector<8x1xf32>
    %cst_75 = arith.constant 3.200000e+01 : f32
    %243 = vector.broadcast %cst_75 : f32 to vector<8x1xf32>
    %244 = arith.divf %242, %243 : vector<8x1xf32>
    %245 = vector.broadcast %237 : vector<8x1xf32> to vector<8x32xf32>
    %246 = arith.subf %233, %245 : vector<8x32xf32>
    %cst_76 = arith.constant 9.99999974E-6 : f32
    %247 = vector.broadcast %cst_76 : f32 to vector<8x1xf32>
    %248 = arith.addf %244, %247 : vector<8x1xf32>
    %249 = math.rsqrt %248 : vector<8x1xf32>
    %250 = vector.broadcast %249 : vector<8x1xf32> to vector<8x32xf32>
    %251 = arith.mulf %246, %250 : vector<8x32xf32>
    %252 = vector.broadcast %20 : vector<1x32xf32> to vector<8x32xf32>
    %253 = arith.mulf %251, %252 : vector<8x32xf32>
    %254 = vector.broadcast %22 : vector<1x32xf32> to vector<8x32xf32>
    %255 = arith.addf %253, %254 : vector<8x32xf32>
    %256 = vector.broadcast %28 : f32 to vector<8x32xf32>
    %257 = arith.mulf %255, %256 : vector<8x32xf32>
    %258 = vector.broadcast %30 : f32 to vector<8x32xf32>
    %259 = arith.addf %257, %258 : vector<8x32xf32>
    %260 = vector.broadcast %32 : f32 to vector<8x32xf32>
    %261 = arith.mulf %259, %260 : vector<8x32xf32>
    %262 = vector.broadcast %34 : f32 to vector<8x32xf32>
    %263 = arith.addf %261, %262 : vector<8x32xf32>
    %cst_77 = arith.constant 0.000000e+00 : f32
    %264 = vector.broadcast %cst_77 : f32 to vector<8x32xf32>
    %265 = arith.maximumf %263, %264 : vector<8x32xf32>
    %cst_78 = arith.constant 0.000000e+00 : f32
    %266 = vector.broadcast %cst_78 : f32 to vector<2x32xf32>
    %267 = tpu.concatenate %266, %265, %266 in 0 : vector<2x32xf32>, vector<8x32xf32>, vector<2x32xf32> -> vector<12x32xf32>
    %cst_79 = arith.constant 0.000000e+00 : f32
    %268 = vector.broadcast %cst_79 : f32 to vector<12x2xf32>
    %269 = tpu.concatenate %268, %267, %268 in 1 : vector<12x2xf32>, vector<12x32xf32>, vector<12x2xf32> -> vector<12x36xf32>
    %cst_80 = arith.constant 0.000000e+00 : f32
    %270 = vector.broadcast %cst_80 : f32 to vector<8x32xf32>
    %271 = vector.extract_strided_slice %269 {offsets = [1, 1], sizes = [8, 32], strides = [1, 1]} : vector<12x36xf32> to vector<8x32xf32>
    %272 = vector.broadcast %36 : f32 to vector<8x32xf32>
    %273 = arith.mulf %271, %272 : vector<8x32xf32>
    %274 = arith.addf %270, %273 : vector<8x32xf32>
    %275 = vector.extract_strided_slice %269 {offsets = [1, 2], sizes = [8, 32], strides = [1, 1]} : vector<12x36xf32> to vector<8x32xf32>
    %276 = vector.broadcast %38 : f32 to vector<8x32xf32>
    %277 = arith.mulf %275, %276 : vector<8x32xf32>
    %278 = arith.addf %274, %277 : vector<8x32xf32>
    %279 = vector.extract_strided_slice %269 {offsets = [1, 3], sizes = [8, 32], strides = [1, 1]} : vector<12x36xf32> to vector<8x32xf32>
    %280 = vector.broadcast %40 : f32 to vector<8x32xf32>
    %281 = arith.mulf %279, %280 : vector<8x32xf32>
    %282 = arith.addf %278, %281 : vector<8x32xf32>
    %283 = vector.extract_strided_slice %269 {offsets = [2, 1], sizes = [8, 32], strides = [1, 1]} : vector<12x36xf32> to vector<8x32xf32>
    %284 = vector.broadcast %42 : f32 to vector<8x32xf32>
    %285 = arith.mulf %283, %284 : vector<8x32xf32>
    %286 = arith.addf %282, %285 : vector<8x32xf32>
    %287 = vector.extract_strided_slice %269 {offsets = [2, 2], sizes = [8, 32], strides = [1, 1]} : vector<12x36xf32> to vector<8x32xf32>
    %288 = vector.broadcast %44 : f32 to vector<8x32xf32>
    %289 = arith.mulf %287, %288 : vector<8x32xf32>
    %290 = arith.addf %286, %289 : vector<8x32xf32>
    %291 = vector.extract_strided_slice %269 {offsets = [2, 3], sizes = [8, 32], strides = [1, 1]} : vector<12x36xf32> to vector<8x32xf32>
    %292 = vector.broadcast %46 : f32 to vector<8x32xf32>
    %293 = arith.mulf %291, %292 : vector<8x32xf32>
    %294 = arith.addf %290, %293 : vector<8x32xf32>
    %295 = vector.extract_strided_slice %269 {offsets = [3, 1], sizes = [8, 32], strides = [1, 1]} : vector<12x36xf32> to vector<8x32xf32>
    %296 = vector.broadcast %48 : f32 to vector<8x32xf32>
    %297 = arith.mulf %295, %296 : vector<8x32xf32>
    %298 = arith.addf %294, %297 : vector<8x32xf32>
    %299 = vector.extract_strided_slice %269 {offsets = [3, 2], sizes = [8, 32], strides = [1, 1]} : vector<12x36xf32> to vector<8x32xf32>
    %300 = vector.broadcast %50 : f32 to vector<8x32xf32>
    %301 = arith.mulf %299, %300 : vector<8x32xf32>
    %302 = arith.addf %298, %301 : vector<8x32xf32>
    %303 = vector.extract_strided_slice %269 {offsets = [3, 3], sizes = [8, 32], strides = [1, 1]} : vector<12x36xf32> to vector<8x32xf32>
    %304 = vector.broadcast %52 : f32 to vector<8x32xf32>
    %305 = arith.mulf %303, %304 : vector<8x32xf32>
    %306 = arith.addf %302, %305 : vector<8x32xf32>
    %307 = vector.broadcast %54 : f32 to vector<8x32xf32>
    %308 = arith.addf %306, %307 : vector<8x32xf32>
    %309 = vector.broadcast %56 : f32 to vector<8x32xf32>
    %310 = arith.mulf %308, %309 : vector<8x32xf32>
    %311 = vector.broadcast %58 : f32 to vector<8x32xf32>
    %312 = arith.addf %310, %311 : vector<8x32xf32>
    %cst_81 = arith.constant 0.000000e+00 : f32
    %313 = vector.broadcast %cst_81 : f32 to vector<8x32xf32>
    %314 = arith.maximumf %312, %313 : vector<8x32xf32>
    %cst_82 = arith.constant 0.000000e+00 : f32
    %315 = vector.broadcast %cst_82 : f32 to vector<2x32xf32>
    %316 = tpu.concatenate %315, %314, %315 in 0 : vector<2x32xf32>, vector<8x32xf32>, vector<2x32xf32> -> vector<12x32xf32>
    %cst_83 = arith.constant 0.000000e+00 : f32
    %317 = vector.broadcast %cst_83 : f32 to vector<12x2xf32>
    %318 = tpu.concatenate %317, %316, %317 in 1 : vector<12x2xf32>, vector<12x32xf32>, vector<12x2xf32> -> vector<12x36xf32>
    %cst_84 = arith.constant 0.000000e+00 : f32
    %319 = vector.broadcast %cst_84 : f32 to vector<8x32xf32>
    %320 = vector.extract_strided_slice %318 {offsets = [0, 0], sizes = [8, 32], strides = [1, 1]} : vector<12x36xf32> to vector<8x32xf32>
    %321 = vector.broadcast %60 : f32 to vector<8x32xf32>
    %322 = arith.mulf %320, %321 : vector<8x32xf32>
    %323 = arith.addf %319, %322 : vector<8x32xf32>
    %324 = vector.extract_strided_slice %318 {offsets = [0, 1], sizes = [8, 32], strides = [1, 1]} : vector<12x36xf32> to vector<8x32xf32>
    %325 = vector.broadcast %62 : f32 to vector<8x32xf32>
    %326 = arith.mulf %324, %325 : vector<8x32xf32>
    %327 = arith.addf %323, %326 : vector<8x32xf32>
    %328 = vector.extract_strided_slice %318 {offsets = [0, 2], sizes = [8, 32], strides = [1, 1]} : vector<12x36xf32> to vector<8x32xf32>
    %329 = vector.broadcast %64 : f32 to vector<8x32xf32>
    %330 = arith.mulf %328, %329 : vector<8x32xf32>
    %331 = arith.addf %327, %330 : vector<8x32xf32>
    %332 = vector.extract_strided_slice %318 {offsets = [0, 3], sizes = [8, 32], strides = [1, 1]} : vector<12x36xf32> to vector<8x32xf32>
    %333 = vector.broadcast %66 : f32 to vector<8x32xf32>
    %334 = arith.mulf %332, %333 : vector<8x32xf32>
    %335 = arith.addf %331, %334 : vector<8x32xf32>
    %336 = vector.extract_strided_slice %318 {offsets = [0, 4], sizes = [8, 32], strides = [1, 1]} : vector<12x36xf32> to vector<8x32xf32>
    %337 = vector.broadcast %68 : f32 to vector<8x32xf32>
    %338 = arith.mulf %336, %337 : vector<8x32xf32>
    %339 = arith.addf %335, %338 : vector<8x32xf32>
    %340 = vector.extract_strided_slice %318 {offsets = [1, 0], sizes = [8, 32], strides = [1, 1]} : vector<12x36xf32> to vector<8x32xf32>
    %341 = vector.broadcast %70 : f32 to vector<8x32xf32>
    %342 = arith.mulf %340, %341 : vector<8x32xf32>
    %343 = arith.addf %339, %342 : vector<8x32xf32>
    %344 = vector.extract_strided_slice %318 {offsets = [1, 1], sizes = [8, 32], strides = [1, 1]} : vector<12x36xf32> to vector<8x32xf32>
    %345 = vector.broadcast %72 : f32 to vector<8x32xf32>
    %346 = arith.mulf %344, %345 : vector<8x32xf32>
    %347 = arith.addf %343, %346 : vector<8x32xf32>
    %348 = vector.extract_strided_slice %318 {offsets = [1, 2], sizes = [8, 32], strides = [1, 1]} : vector<12x36xf32> to vector<8x32xf32>
    %349 = vector.broadcast %74 : f32 to vector<8x32xf32>
    %350 = arith.mulf %348, %349 : vector<8x32xf32>
    %351 = arith.addf %347, %350 : vector<8x32xf32>
    %352 = vector.extract_strided_slice %318 {offsets = [1, 3], sizes = [8, 32], strides = [1, 1]} : vector<12x36xf32> to vector<8x32xf32>
    %353 = vector.broadcast %76 : f32 to vector<8x32xf32>
    %354 = arith.mulf %352, %353 : vector<8x32xf32>
    %355 = arith.addf %351, %354 : vector<8x32xf32>
    %356 = vector.extract_strided_slice %318 {offsets = [1, 4], sizes = [8, 32], strides = [1, 1]} : vector<12x36xf32> to vector<8x32xf32>
    %357 = vector.broadcast %78 : f32 to vector<8x32xf32>
    %358 = arith.mulf %356, %357 : vector<8x32xf32>
    %359 = arith.addf %355, %358 : vector<8x32xf32>
    %360 = vector.extract_strided_slice %318 {offsets = [2, 0], sizes = [8, 32], strides = [1, 1]} : vector<12x36xf32> to vector<8x32xf32>
    %361 = vector.broadcast %80 : f32 to vector<8x32xf32>
    %362 = arith.mulf %360, %361 : vector<8x32xf32>
    %363 = arith.addf %359, %362 : vector<8x32xf32>
    %364 = vector.extract_strided_slice %318 {offsets = [2, 1], sizes = [8, 32], strides = [1, 1]} : vector<12x36xf32> to vector<8x32xf32>
    %365 = vector.broadcast %82 : f32 to vector<8x32xf32>
    %366 = arith.mulf %364, %365 : vector<8x32xf32>
    %367 = arith.addf %363, %366 : vector<8x32xf32>
    %368 = vector.extract_strided_slice %318 {offsets = [2, 2], sizes = [8, 32], strides = [1, 1]} : vector<12x36xf32> to vector<8x32xf32>
    %369 = vector.broadcast %84 : f32 to vector<8x32xf32>
    %370 = arith.mulf %368, %369 : vector<8x32xf32>
    %371 = arith.addf %367, %370 : vector<8x32xf32>
    %372 = vector.extract_strided_slice %318 {offsets = [2, 3], sizes = [8, 32], strides = [1, 1]} : vector<12x36xf32> to vector<8x32xf32>
    %373 = vector.broadcast %86 : f32 to vector<8x32xf32>
    %374 = arith.mulf %372, %373 : vector<8x32xf32>
    %375 = arith.addf %371, %374 : vector<8x32xf32>
    %376 = vector.extract_strided_slice %318 {offsets = [2, 4], sizes = [8, 32], strides = [1, 1]} : vector<12x36xf32> to vector<8x32xf32>
    %377 = vector.broadcast %88 : f32 to vector<8x32xf32>
    %378 = arith.mulf %376, %377 : vector<8x32xf32>
    %379 = arith.addf %375, %378 : vector<8x32xf32>
    %380 = vector.extract_strided_slice %318 {offsets = [3, 0], sizes = [8, 32], strides = [1, 1]} : vector<12x36xf32> to vector<8x32xf32>
    %381 = vector.broadcast %90 : f32 to vector<8x32xf32>
    %382 = arith.mulf %380, %381 : vector<8x32xf32>
    %383 = arith.addf %379, %382 : vector<8x32xf32>
    %384 = vector.extract_strided_slice %318 {offsets = [3, 1], sizes = [8, 32], strides = [1, 1]} : vector<12x36xf32> to vector<8x32xf32>
    %385 = vector.broadcast %92 : f32 to vector<8x32xf32>
    %386 = arith.mulf %384, %385 : vector<8x32xf32>
    %387 = arith.addf %383, %386 : vector<8x32xf32>
    %388 = vector.extract_strided_slice %318 {offsets = [3, 2], sizes = [8, 32], strides = [1, 1]} : vector<12x36xf32> to vector<8x32xf32>
    %389 = vector.broadcast %94 : f32 to vector<8x32xf32>
    %390 = arith.mulf %388, %389 : vector<8x32xf32>
    %391 = arith.addf %387, %390 : vector<8x32xf32>
    %392 = vector.extract_strided_slice %318 {offsets = [3, 3], sizes = [8, 32], strides = [1, 1]} : vector<12x36xf32> to vector<8x32xf32>
    %393 = vector.broadcast %96 : f32 to vector<8x32xf32>
    %394 = arith.mulf %392, %393 : vector<8x32xf32>
    %395 = arith.addf %391, %394 : vector<8x32xf32>
    %396 = vector.extract_strided_slice %318 {offsets = [3, 4], sizes = [8, 32], strides = [1, 1]} : vector<12x36xf32> to vector<8x32xf32>
    %397 = vector.broadcast %98 : f32 to vector<8x32xf32>
    %398 = arith.mulf %396, %397 : vector<8x32xf32>
    %399 = arith.addf %395, %398 : vector<8x32xf32>
    %400 = vector.extract_strided_slice %318 {offsets = [4, 0], sizes = [8, 32], strides = [1, 1]} : vector<12x36xf32> to vector<8x32xf32>
    %401 = vector.broadcast %100 : f32 to vector<8x32xf32>
    %402 = arith.mulf %400, %401 : vector<8x32xf32>
    %403 = arith.addf %399, %402 : vector<8x32xf32>
    %404 = vector.extract_strided_slice %318 {offsets = [4, 1], sizes = [8, 32], strides = [1, 1]} : vector<12x36xf32> to vector<8x32xf32>
    %405 = vector.broadcast %102 : f32 to vector<8x32xf32>
    %406 = arith.mulf %404, %405 : vector<8x32xf32>
    %407 = arith.addf %403, %406 : vector<8x32xf32>
    %408 = vector.extract_strided_slice %318 {offsets = [4, 2], sizes = [8, 32], strides = [1, 1]} : vector<12x36xf32> to vector<8x32xf32>
    %409 = vector.broadcast %104 : f32 to vector<8x32xf32>
    %410 = arith.mulf %408, %409 : vector<8x32xf32>
    %411 = arith.addf %407, %410 : vector<8x32xf32>
    %412 = vector.extract_strided_slice %318 {offsets = [4, 3], sizes = [8, 32], strides = [1, 1]} : vector<12x36xf32> to vector<8x32xf32>
    %413 = vector.broadcast %106 : f32 to vector<8x32xf32>
    %414 = arith.mulf %412, %413 : vector<8x32xf32>
    %415 = arith.addf %411, %414 : vector<8x32xf32>
    %416 = vector.extract_strided_slice %318 {offsets = [4, 4], sizes = [8, 32], strides = [1, 1]} : vector<12x36xf32> to vector<8x32xf32>
    %417 = vector.broadcast %108 : f32 to vector<8x32xf32>
    %418 = arith.mulf %416, %417 : vector<8x32xf32>
    %419 = arith.addf %415, %418 : vector<8x32xf32>
    %420 = vector.broadcast %110 : f32 to vector<8x32xf32>
    %421 = arith.addf %419, %420 : vector<8x32xf32>
    %422 = vector.broadcast %112 : f32 to vector<8x32xf32>
    %423 = arith.mulf %421, %422 : vector<8x32xf32>
    %424 = vector.broadcast %114 : f32 to vector<8x32xf32>
    %425 = arith.addf %423, %424 : vector<8x32xf32>
    %cst_85 = arith.constant 0.000000e+00 : f32
    %426 = vector.broadcast %cst_85 : f32 to vector<8x32xf32>
    %427 = arith.maximumf %425, %426 : vector<8x32xf32>
    %428 = arith.addf %255, %427 : vector<8x32xf32>
    %cst_86 = arith.constant dense<0.000000e+00> : vector<8xf32>
    %429 = vector.multi_reduction <add>, %428, %cst_86 [1] : vector<8x32xf32> to vector<8xf32>
    %430 = vector.shape_cast %429 : vector<8xf32> to vector<8x1xf32>
    %cst_87 = arith.constant 3.200000e+01 : f32
    %431 = vector.broadcast %cst_87 : f32 to vector<8x1xf32>
    %432 = arith.divf %430, %431 : vector<8x1xf32>
    %433 = vector.broadcast %432 : vector<8x1xf32> to vector<8x32xf32>
    %434 = arith.subf %428, %433 : vector<8x32xf32>
    %435 = arith.mulf %434, %434 : vector<8x32xf32>
    %cst_88 = arith.constant dense<0.000000e+00> : vector<8xf32>
    %436 = vector.multi_reduction <add>, %435, %cst_88 [1] : vector<8x32xf32> to vector<8xf32>
    %437 = vector.shape_cast %436 : vector<8xf32> to vector<8x1xf32>
    %cst_89 = arith.constant 3.200000e+01 : f32
    %438 = vector.broadcast %cst_89 : f32 to vector<8x1xf32>
    %439 = arith.divf %437, %438 : vector<8x1xf32>
    %440 = vector.broadcast %432 : vector<8x1xf32> to vector<8x32xf32>
    %441 = arith.subf %428, %440 : vector<8x32xf32>
    %cst_90 = arith.constant 9.99999974E-6 : f32
    %442 = vector.broadcast %cst_90 : f32 to vector<8x1xf32>
    %443 = arith.addf %439, %442 : vector<8x1xf32>
    %444 = math.rsqrt %443 : vector<8x1xf32>
    %445 = vector.broadcast %444 : vector<8x1xf32> to vector<8x32xf32>
    %446 = arith.mulf %441, %445 : vector<8x32xf32>
    %447 = vector.broadcast %24 : vector<1x32xf32> to vector<8x32xf32>
    %448 = arith.mulf %446, %447 : vector<8x32xf32>
    %449 = vector.broadcast %26 : vector<1x32xf32> to vector<8x32xf32>
    %450 = arith.addf %448, %449 : vector<8x32xf32>
    %451 = vector.extract_strided_slice %122 {offsets = [8, 0], sizes = [8, 32], strides = [1, 1]} : vector<16x96xf32> to vector<8x32xf32>
    %cst_91 = arith.constant 0.353553385 : f32
    %452 = vector.broadcast %cst_91 : f32 to vector<8x32xf32>
    %453 = arith.mulf %451, %452 : vector<8x32xf32>
    %454 = vector.extract_strided_slice %122 {offsets = [8, 32], sizes = [8, 32], strides = [1, 1]} : vector<16x96xf32> to vector<8x32xf32>
    %455 = vector.extract_strided_slice %122 {offsets = [8, 64], sizes = [8, 32], strides = [1, 1]} : vector<16x96xf32> to vector<8x32xf32>
    %456 = vector.extract_strided_slice %453 {offsets = [0, 0], sizes = [8, 8], strides = [1, 1]} : vector<8x32xf32> to vector<8x8xf32>
    %457 = vector.extract_strided_slice %454 {offsets = [0, 0], sizes = [8, 8], strides = [1, 1]} : vector<8x32xf32> to vector<8x8xf32>
    %cst_92 = arith.constant dense<0.000000e+00> : vector<8x8xf32>
    %458 = tpu.matmul %456, %457, %cst_92 {dimension_numbers = #tpu.dot_dimension_numbers<[1], [1], [0], [0], [0, 0, 1, 0], [], []>} : vector<8x8xf32>, vector<8x8xf32>, vector<8x8xf32> -> vector<8x8xf32>
    %cst_93 = arith.constant dense<0xFF800000> : vector<8xf32>
    %459 = vector.multi_reduction <maximumf>, %458, %cst_93 [1] : vector<8x8xf32> to vector<8xf32>
    %460 = vector.shape_cast %459 : vector<8xf32> to vector<8x1xf32>
    %461 = vector.broadcast %460 : vector<8x1xf32> to vector<8x8xf32>
    %462 = arith.subf %458, %461 : vector<8x8xf32>
    %463 = math.exp %462 : vector<8x8xf32>
    %cst_94 = arith.constant dense<0.000000e+00> : vector<8xf32>
    %464 = vector.multi_reduction <add>, %463, %cst_94 [1] : vector<8x8xf32> to vector<8xf32>
    %465 = vector.shape_cast %464 : vector<8xf32> to vector<8x1xf32>
    %466 = vector.broadcast %465 : vector<8x1xf32> to vector<8x8xf32>
    %467 = arith.divf %463, %466 : vector<8x8xf32>
    %468 = vector.extract_strided_slice %455 {offsets = [0, 0], sizes = [8, 8], strides = [1, 1]} : vector<8x32xf32> to vector<8x8xf32>
    %cst_95 = arith.constant dense<0.000000e+00> : vector<8x8xf32>
    %469 = tpu.matmul %467, %468, %cst_95 {dimension_numbers = #tpu.dot_dimension_numbers<[1], [0], [0], [1], [0, 0, 1, 1], [], []>} : vector<8x8xf32>, vector<8x8xf32>, vector<8x8xf32> -> vector<8x8xf32>
    %470 = vector.extract_strided_slice %453 {offsets = [0, 8], sizes = [8, 8], strides = [1, 1]} : vector<8x32xf32> to vector<8x8xf32>
    %471 = vector.extract_strided_slice %454 {offsets = [0, 8], sizes = [8, 8], strides = [1, 1]} : vector<8x32xf32> to vector<8x8xf32>
    %cst_96 = arith.constant dense<0.000000e+00> : vector<8x8xf32>
    %472 = tpu.matmul %470, %471, %cst_96 {dimension_numbers = #tpu.dot_dimension_numbers<[1], [1], [0], [0], [0, 0, 1, 0], [], []>} : vector<8x8xf32>, vector<8x8xf32>, vector<8x8xf32> -> vector<8x8xf32>
    %cst_97 = arith.constant dense<0xFF800000> : vector<8xf32>
    %473 = vector.multi_reduction <maximumf>, %472, %cst_97 [1] : vector<8x8xf32> to vector<8xf32>
    %474 = vector.shape_cast %473 : vector<8xf32> to vector<8x1xf32>
    %475 = vector.broadcast %474 : vector<8x1xf32> to vector<8x8xf32>
    %476 = arith.subf %472, %475 : vector<8x8xf32>
    %477 = math.exp %476 : vector<8x8xf32>
    %cst_98 = arith.constant dense<0.000000e+00> : vector<8xf32>
    %478 = vector.multi_reduction <add>, %477, %cst_98 [1] : vector<8x8xf32> to vector<8xf32>
    %479 = vector.shape_cast %478 : vector<8xf32> to vector<8x1xf32>
    %480 = vector.broadcast %479 : vector<8x1xf32> to vector<8x8xf32>
    %481 = arith.divf %477, %480 : vector<8x8xf32>
    %482 = vector.extract_strided_slice %455 {offsets = [0, 8], sizes = [8, 8], strides = [1, 1]} : vector<8x32xf32> to vector<8x8xf32>
    %cst_99 = arith.constant dense<0.000000e+00> : vector<8x8xf32>
    %483 = tpu.matmul %481, %482, %cst_99 {dimension_numbers = #tpu.dot_dimension_numbers<[1], [0], [0], [1], [0, 0, 1, 1], [], []>} : vector<8x8xf32>, vector<8x8xf32>, vector<8x8xf32> -> vector<8x8xf32>
    %484 = vector.extract_strided_slice %453 {offsets = [0, 16], sizes = [8, 8], strides = [1, 1]} : vector<8x32xf32> to vector<8x8xf32>
    %485 = vector.extract_strided_slice %454 {offsets = [0, 16], sizes = [8, 8], strides = [1, 1]} : vector<8x32xf32> to vector<8x8xf32>
    %cst_100 = arith.constant dense<0.000000e+00> : vector<8x8xf32>
    %486 = tpu.matmul %484, %485, %cst_100 {dimension_numbers = #tpu.dot_dimension_numbers<[1], [1], [0], [0], [0, 0, 1, 0], [], []>} : vector<8x8xf32>, vector<8x8xf32>, vector<8x8xf32> -> vector<8x8xf32>
    %cst_101 = arith.constant dense<0xFF800000> : vector<8xf32>
    %487 = vector.multi_reduction <maximumf>, %486, %cst_101 [1] : vector<8x8xf32> to vector<8xf32>
    %488 = vector.shape_cast %487 : vector<8xf32> to vector<8x1xf32>
    %489 = vector.broadcast %488 : vector<8x1xf32> to vector<8x8xf32>
    %490 = arith.subf %486, %489 : vector<8x8xf32>
    %491 = math.exp %490 : vector<8x8xf32>
    %cst_102 = arith.constant dense<0.000000e+00> : vector<8xf32>
    %492 = vector.multi_reduction <add>, %491, %cst_102 [1] : vector<8x8xf32> to vector<8xf32>
    %493 = vector.shape_cast %492 : vector<8xf32> to vector<8x1xf32>
    %494 = vector.broadcast %493 : vector<8x1xf32> to vector<8x8xf32>
    %495 = arith.divf %491, %494 : vector<8x8xf32>
    %496 = vector.extract_strided_slice %455 {offsets = [0, 16], sizes = [8, 8], strides = [1, 1]} : vector<8x32xf32> to vector<8x8xf32>
    %cst_103 = arith.constant dense<0.000000e+00> : vector<8x8xf32>
    %497 = tpu.matmul %495, %496, %cst_103 {dimension_numbers = #tpu.dot_dimension_numbers<[1], [0], [0], [1], [0, 0, 1, 1], [], []>} : vector<8x8xf32>, vector<8x8xf32>, vector<8x8xf32> -> vector<8x8xf32>
    %498 = vector.extract_strided_slice %453 {offsets = [0, 24], sizes = [8, 8], strides = [1, 1]} : vector<8x32xf32> to vector<8x8xf32>
    %499 = vector.extract_strided_slice %454 {offsets = [0, 24], sizes = [8, 8], strides = [1, 1]} : vector<8x32xf32> to vector<8x8xf32>
    %cst_104 = arith.constant dense<0.000000e+00> : vector<8x8xf32>
    %500 = tpu.matmul %498, %499, %cst_104 {dimension_numbers = #tpu.dot_dimension_numbers<[1], [1], [0], [0], [0, 0, 1, 0], [], []>} : vector<8x8xf32>, vector<8x8xf32>, vector<8x8xf32> -> vector<8x8xf32>
    %cst_105 = arith.constant dense<0xFF800000> : vector<8xf32>
    %501 = vector.multi_reduction <maximumf>, %500, %cst_105 [1] : vector<8x8xf32> to vector<8xf32>
    %502 = vector.shape_cast %501 : vector<8xf32> to vector<8x1xf32>
    %503 = vector.broadcast %502 : vector<8x1xf32> to vector<8x8xf32>
    %504 = arith.subf %500, %503 : vector<8x8xf32>
    %505 = math.exp %504 : vector<8x8xf32>
    %cst_106 = arith.constant dense<0.000000e+00> : vector<8xf32>
    %506 = vector.multi_reduction <add>, %505, %cst_106 [1] : vector<8x8xf32> to vector<8xf32>
    %507 = vector.shape_cast %506 : vector<8xf32> to vector<8x1xf32>
    %508 = vector.broadcast %507 : vector<8x1xf32> to vector<8x8xf32>
    %509 = arith.divf %505, %508 : vector<8x8xf32>
    %510 = vector.extract_strided_slice %455 {offsets = [0, 24], sizes = [8, 8], strides = [1, 1]} : vector<8x32xf32> to vector<8x8xf32>
    %cst_107 = arith.constant dense<0.000000e+00> : vector<8x8xf32>
    %511 = tpu.matmul %509, %510, %cst_107 {dimension_numbers = #tpu.dot_dimension_numbers<[1], [0], [0], [1], [0, 0, 1, 1], [], []>} : vector<8x8xf32>, vector<8x8xf32>, vector<8x8xf32> -> vector<8x8xf32>
    %512 = tpu.concatenate %469, %483, %497, %511 in 1 : vector<8x8xf32>, vector<8x8xf32>, vector<8x8xf32>, vector<8x8xf32> -> vector<8x32xf32>
    %cst_108 = arith.constant dense<0.000000e+00> : vector<8x32xf32>
    %513 = tpu.matmul %512, %8, %cst_108 {dimension_numbers = #tpu.dot_dimension_numbers<[1], [0], [0], [1], [0, 0, 1, 1], [], []>} : vector<8x32xf32>, vector<32x32xf32>, vector<8x32xf32> -> vector<8x32xf32>
    %514 = vector.broadcast %10 : vector<1x32xf32> to vector<8x32xf32>
    %515 = arith.addf %513, %514 : vector<8x32xf32>
    %516 = vector.extract_strided_slice %128 {offsets = [32, 0], sizes = [32, 8], strides = [1, 1]} : vector<64x24xf32> to vector<32x8xf32>
    %cst_109 = arith.constant 5.000000e-01 : f32
    %517 = vector.broadcast %cst_109 : f32 to vector<32x8xf32>
    %518 = arith.mulf %516, %517 : vector<32x8xf32>
    %519 = vector.extract_strided_slice %128 {offsets = [32, 8], sizes = [32, 8], strides = [1, 1]} : vector<64x24xf32> to vector<32x8xf32>
    %520 = vector.extract_strided_slice %128 {offsets = [32, 16], sizes = [32, 8], strides = [1, 1]} : vector<64x24xf32> to vector<32x8xf32>
    %521 = vector.extract_strided_slice %518 {offsets = [0, 0], sizes = [32, 4], strides = [1, 1]} : vector<32x8xf32> to vector<32x4xf32>
    %522 = vector.extract_strided_slice %519 {offsets = [0, 0], sizes = [32, 4], strides = [1, 1]} : vector<32x8xf32> to vector<32x4xf32>
    %cst_110 = arith.constant dense<0.000000e+00> : vector<32x32xf32>
    %523 = tpu.matmul %521, %522, %cst_110 {dimension_numbers = #tpu.dot_dimension_numbers<[1], [1], [0], [0], [0, 0, 1, 0], [], []>} : vector<32x4xf32>, vector<32x4xf32>, vector<32x32xf32> -> vector<32x32xf32>
    %cst_111 = arith.constant dense<0xFF800000> : vector<32xf32>
    %524 = vector.multi_reduction <maximumf>, %523, %cst_111 [1] : vector<32x32xf32> to vector<32xf32>
    %525 = vector.shape_cast %524 : vector<32xf32> to vector<32x1xf32>
    %526 = vector.broadcast %525 : vector<32x1xf32> to vector<32x32xf32>
    %527 = arith.subf %523, %526 : vector<32x32xf32>
    %528 = math.exp %527 : vector<32x32xf32>
    %cst_112 = arith.constant dense<0.000000e+00> : vector<32xf32>
    %529 = vector.multi_reduction <add>, %528, %cst_112 [1] : vector<32x32xf32> to vector<32xf32>
    %530 = vector.shape_cast %529 : vector<32xf32> to vector<32x1xf32>
    %531 = vector.broadcast %530 : vector<32x1xf32> to vector<32x32xf32>
    %532 = arith.divf %528, %531 : vector<32x32xf32>
    %533 = vector.extract_strided_slice %520 {offsets = [0, 0], sizes = [32, 4], strides = [1, 1]} : vector<32x8xf32> to vector<32x4xf32>
    %cst_113 = arith.constant dense<0.000000e+00> : vector<32x4xf32>
    %534 = tpu.matmul %532, %533, %cst_113 {dimension_numbers = #tpu.dot_dimension_numbers<[1], [0], [0], [1], [0, 0, 1, 1], [], []>} : vector<32x32xf32>, vector<32x4xf32>, vector<32x4xf32> -> vector<32x4xf32>
    %535 = vector.extract_strided_slice %518 {offsets = [0, 4], sizes = [32, 4], strides = [1, 1]} : vector<32x8xf32> to vector<32x4xf32>
    %536 = vector.extract_strided_slice %519 {offsets = [0, 4], sizes = [32, 4], strides = [1, 1]} : vector<32x8xf32> to vector<32x4xf32>
    %cst_114 = arith.constant dense<0.000000e+00> : vector<32x32xf32>
    %537 = tpu.matmul %535, %536, %cst_114 {dimension_numbers = #tpu.dot_dimension_numbers<[1], [1], [0], [0], [0, 0, 1, 0], [], []>} : vector<32x4xf32>, vector<32x4xf32>, vector<32x32xf32> -> vector<32x32xf32>
    %cst_115 = arith.constant dense<0xFF800000> : vector<32xf32>
    %538 = vector.multi_reduction <maximumf>, %537, %cst_115 [1] : vector<32x32xf32> to vector<32xf32>
    %539 = vector.shape_cast %538 : vector<32xf32> to vector<32x1xf32>
    %540 = vector.broadcast %539 : vector<32x1xf32> to vector<32x32xf32>
    %541 = arith.subf %537, %540 : vector<32x32xf32>
    %542 = math.exp %541 : vector<32x32xf32>
    %cst_116 = arith.constant dense<0.000000e+00> : vector<32xf32>
    %543 = vector.multi_reduction <add>, %542, %cst_116 [1] : vector<32x32xf32> to vector<32xf32>
    %544 = vector.shape_cast %543 : vector<32xf32> to vector<32x1xf32>
    %545 = vector.broadcast %544 : vector<32x1xf32> to vector<32x32xf32>
    %546 = arith.divf %542, %545 : vector<32x32xf32>
    %547 = vector.extract_strided_slice %520 {offsets = [0, 4], sizes = [32, 4], strides = [1, 1]} : vector<32x8xf32> to vector<32x4xf32>
    %cst_117 = arith.constant dense<0.000000e+00> : vector<32x4xf32>
    %548 = tpu.matmul %546, %547, %cst_117 {dimension_numbers = #tpu.dot_dimension_numbers<[1], [0], [0], [1], [0, 0, 1, 1], [], []>} : vector<32x32xf32>, vector<32x4xf32>, vector<32x4xf32> -> vector<32x4xf32>
    %549 = tpu.concatenate %534, %548 in 1 : vector<32x4xf32>, vector<32x4xf32> -> vector<32x8xf32>
    %cst_118 = arith.constant dense<0.000000e+00> : vector<32x8xf32>
    %550 = tpu.matmul %549, %16, %cst_118 {dimension_numbers = #tpu.dot_dimension_numbers<[1], [0], [0], [1], [0, 0, 1, 1], [], []>} : vector<32x8xf32>, vector<8x8xf32>, vector<32x8xf32> -> vector<32x8xf32>
    %551 = vector.broadcast %18 : vector<1x8xf32> to vector<32x8xf32>
    %552 = arith.addf %550, %551 : vector<32x8xf32>
    %553 = tpu.transpose %552, [1, 0] : vector<32x8xf32> -> vector<8x32xf32>
    %554 = arith.addf %118, %515 : vector<8x32xf32>
    %555 = arith.addf %554, %553 : vector<8x32xf32>
    %cst_119 = arith.constant dense<0.000000e+00> : vector<8xf32>
    %556 = vector.multi_reduction <add>, %555, %cst_119 [1] : vector<8x32xf32> to vector<8xf32>
    %557 = vector.shape_cast %556 : vector<8xf32> to vector<8x1xf32>
    %cst_120 = arith.constant 3.200000e+01 : f32
    %558 = vector.broadcast %cst_120 : f32 to vector<8x1xf32>
    %559 = arith.divf %557, %558 : vector<8x1xf32>
    %560 = vector.broadcast %559 : vector<8x1xf32> to vector<8x32xf32>
    %561 = arith.subf %555, %560 : vector<8x32xf32>
    %562 = arith.mulf %561, %561 : vector<8x32xf32>
    %cst_121 = arith.constant dense<0.000000e+00> : vector<8xf32>
    %563 = vector.multi_reduction <add>, %562, %cst_121 [1] : vector<8x32xf32> to vector<8xf32>
    %564 = vector.shape_cast %563 : vector<8xf32> to vector<8x1xf32>
    %cst_122 = arith.constant 3.200000e+01 : f32
    %565 = vector.broadcast %cst_122 : f32 to vector<8x1xf32>
    %566 = arith.divf %564, %565 : vector<8x1xf32>
    %567 = vector.broadcast %559 : vector<8x1xf32> to vector<8x32xf32>
    %568 = arith.subf %555, %567 : vector<8x32xf32>
    %cst_123 = arith.constant 9.99999974E-6 : f32
    %569 = vector.broadcast %cst_123 : f32 to vector<8x1xf32>
    %570 = arith.addf %566, %569 : vector<8x1xf32>
    %571 = math.rsqrt %570 : vector<8x1xf32>
    %572 = vector.broadcast %571 : vector<8x1xf32> to vector<8x32xf32>
    %573 = arith.mulf %568, %572 : vector<8x32xf32>
    %574 = vector.broadcast %20 : vector<1x32xf32> to vector<8x32xf32>
    %575 = arith.mulf %573, %574 : vector<8x32xf32>
    %576 = vector.broadcast %22 : vector<1x32xf32> to vector<8x32xf32>
    %577 = arith.addf %575, %576 : vector<8x32xf32>
    %578 = vector.broadcast %28 : f32 to vector<8x32xf32>
    %579 = arith.mulf %577, %578 : vector<8x32xf32>
    %580 = vector.broadcast %30 : f32 to vector<8x32xf32>
    %581 = arith.addf %579, %580 : vector<8x32xf32>
    %582 = vector.broadcast %32 : f32 to vector<8x32xf32>
    %583 = arith.mulf %581, %582 : vector<8x32xf32>
    %584 = vector.broadcast %34 : f32 to vector<8x32xf32>
    %585 = arith.addf %583, %584 : vector<8x32xf32>
    %cst_124 = arith.constant 0.000000e+00 : f32
    %586 = vector.broadcast %cst_124 : f32 to vector<8x32xf32>
    %587 = arith.maximumf %585, %586 : vector<8x32xf32>
    %cst_125 = arith.constant 0.000000e+00 : f32
    %588 = vector.broadcast %cst_125 : f32 to vector<2x32xf32>
    %589 = tpu.concatenate %588, %587, %588 in 0 : vector<2x32xf32>, vector<8x32xf32>, vector<2x32xf32> -> vector<12x32xf32>
    %cst_126 = arith.constant 0.000000e+00 : f32
    %590 = vector.broadcast %cst_126 : f32 to vector<12x2xf32>
    %591 = tpu.concatenate %590, %589, %590 in 1 : vector<12x2xf32>, vector<12x32xf32>, vector<12x2xf32> -> vector<12x36xf32>
    %cst_127 = arith.constant 0.000000e+00 : f32
    %592 = vector.broadcast %cst_127 : f32 to vector<8x32xf32>
    %593 = vector.extract_strided_slice %591 {offsets = [1, 1], sizes = [8, 32], strides = [1, 1]} : vector<12x36xf32> to vector<8x32xf32>
    %594 = vector.broadcast %36 : f32 to vector<8x32xf32>
    %595 = arith.mulf %593, %594 : vector<8x32xf32>
    %596 = arith.addf %592, %595 : vector<8x32xf32>
    %597 = vector.extract_strided_slice %591 {offsets = [1, 2], sizes = [8, 32], strides = [1, 1]} : vector<12x36xf32> to vector<8x32xf32>
    %598 = vector.broadcast %38 : f32 to vector<8x32xf32>
    %599 = arith.mulf %597, %598 : vector<8x32xf32>
    %600 = arith.addf %596, %599 : vector<8x32xf32>
    %601 = vector.extract_strided_slice %591 {offsets = [1, 3], sizes = [8, 32], strides = [1, 1]} : vector<12x36xf32> to vector<8x32xf32>
    %602 = vector.broadcast %40 : f32 to vector<8x32xf32>
    %603 = arith.mulf %601, %602 : vector<8x32xf32>
    %604 = arith.addf %600, %603 : vector<8x32xf32>
    %605 = vector.extract_strided_slice %591 {offsets = [2, 1], sizes = [8, 32], strides = [1, 1]} : vector<12x36xf32> to vector<8x32xf32>
    %606 = vector.broadcast %42 : f32 to vector<8x32xf32>
    %607 = arith.mulf %605, %606 : vector<8x32xf32>
    %608 = arith.addf %604, %607 : vector<8x32xf32>
    %609 = vector.extract_strided_slice %591 {offsets = [2, 2], sizes = [8, 32], strides = [1, 1]} : vector<12x36xf32> to vector<8x32xf32>
    %610 = vector.broadcast %44 : f32 to vector<8x32xf32>
    %611 = arith.mulf %609, %610 : vector<8x32xf32>
    %612 = arith.addf %608, %611 : vector<8x32xf32>
    %613 = vector.extract_strided_slice %591 {offsets = [2, 3], sizes = [8, 32], strides = [1, 1]} : vector<12x36xf32> to vector<8x32xf32>
    %614 = vector.broadcast %46 : f32 to vector<8x32xf32>
    %615 = arith.mulf %613, %614 : vector<8x32xf32>
    %616 = arith.addf %612, %615 : vector<8x32xf32>
    %617 = vector.extract_strided_slice %591 {offsets = [3, 1], sizes = [8, 32], strides = [1, 1]} : vector<12x36xf32> to vector<8x32xf32>
    %618 = vector.broadcast %48 : f32 to vector<8x32xf32>
    %619 = arith.mulf %617, %618 : vector<8x32xf32>
    %620 = arith.addf %616, %619 : vector<8x32xf32>
    %621 = vector.extract_strided_slice %591 {offsets = [3, 2], sizes = [8, 32], strides = [1, 1]} : vector<12x36xf32> to vector<8x32xf32>
    %622 = vector.broadcast %50 : f32 to vector<8x32xf32>
    %623 = arith.mulf %621, %622 : vector<8x32xf32>
    %624 = arith.addf %620, %623 : vector<8x32xf32>
    %625 = vector.extract_strided_slice %591 {offsets = [3, 3], sizes = [8, 32], strides = [1, 1]} : vector<12x36xf32> to vector<8x32xf32>
    %626 = vector.broadcast %52 : f32 to vector<8x32xf32>
    %627 = arith.mulf %625, %626 : vector<8x32xf32>
    %628 = arith.addf %624, %627 : vector<8x32xf32>
    %629 = vector.broadcast %54 : f32 to vector<8x32xf32>
    %630 = arith.addf %628, %629 : vector<8x32xf32>
    %631 = vector.broadcast %56 : f32 to vector<8x32xf32>
    %632 = arith.mulf %630, %631 : vector<8x32xf32>
    %633 = vector.broadcast %58 : f32 to vector<8x32xf32>
    %634 = arith.addf %632, %633 : vector<8x32xf32>
    %cst_128 = arith.constant 0.000000e+00 : f32
    %635 = vector.broadcast %cst_128 : f32 to vector<8x32xf32>
    %636 = arith.maximumf %634, %635 : vector<8x32xf32>
    %cst_129 = arith.constant 0.000000e+00 : f32
    %637 = vector.broadcast %cst_129 : f32 to vector<2x32xf32>
    %638 = tpu.concatenate %637, %636, %637 in 0 : vector<2x32xf32>, vector<8x32xf32>, vector<2x32xf32> -> vector<12x32xf32>
    %cst_130 = arith.constant 0.000000e+00 : f32
    %639 = vector.broadcast %cst_130 : f32 to vector<12x2xf32>
    %640 = tpu.concatenate %639, %638, %639 in 1 : vector<12x2xf32>, vector<12x32xf32>, vector<12x2xf32> -> vector<12x36xf32>
    %cst_131 = arith.constant 0.000000e+00 : f32
    %641 = vector.broadcast %cst_131 : f32 to vector<8x32xf32>
    %642 = vector.extract_strided_slice %640 {offsets = [0, 0], sizes = [8, 32], strides = [1, 1]} : vector<12x36xf32> to vector<8x32xf32>
    %643 = vector.broadcast %60 : f32 to vector<8x32xf32>
    %644 = arith.mulf %642, %643 : vector<8x32xf32>
    %645 = arith.addf %641, %644 : vector<8x32xf32>
    %646 = vector.extract_strided_slice %640 {offsets = [0, 1], sizes = [8, 32], strides = [1, 1]} : vector<12x36xf32> to vector<8x32xf32>
    %647 = vector.broadcast %62 : f32 to vector<8x32xf32>
    %648 = arith.mulf %646, %647 : vector<8x32xf32>
    %649 = arith.addf %645, %648 : vector<8x32xf32>
    %650 = vector.extract_strided_slice %640 {offsets = [0, 2], sizes = [8, 32], strides = [1, 1]} : vector<12x36xf32> to vector<8x32xf32>
    %651 = vector.broadcast %64 : f32 to vector<8x32xf32>
    %652 = arith.mulf %650, %651 : vector<8x32xf32>
    %653 = arith.addf %649, %652 : vector<8x32xf32>
    %654 = vector.extract_strided_slice %640 {offsets = [0, 3], sizes = [8, 32], strides = [1, 1]} : vector<12x36xf32> to vector<8x32xf32>
    %655 = vector.broadcast %66 : f32 to vector<8x32xf32>
    %656 = arith.mulf %654, %655 : vector<8x32xf32>
    %657 = arith.addf %653, %656 : vector<8x32xf32>
    %658 = vector.extract_strided_slice %640 {offsets = [0, 4], sizes = [8, 32], strides = [1, 1]} : vector<12x36xf32> to vector<8x32xf32>
    %659 = vector.broadcast %68 : f32 to vector<8x32xf32>
    %660 = arith.mulf %658, %659 : vector<8x32xf32>
    %661 = arith.addf %657, %660 : vector<8x32xf32>
    %662 = vector.extract_strided_slice %640 {offsets = [1, 0], sizes = [8, 32], strides = [1, 1]} : vector<12x36xf32> to vector<8x32xf32>
    %663 = vector.broadcast %70 : f32 to vector<8x32xf32>
    %664 = arith.mulf %662, %663 : vector<8x32xf32>
    %665 = arith.addf %661, %664 : vector<8x32xf32>
    %666 = vector.extract_strided_slice %640 {offsets = [1, 1], sizes = [8, 32], strides = [1, 1]} : vector<12x36xf32> to vector<8x32xf32>
    %667 = vector.broadcast %72 : f32 to vector<8x32xf32>
    %668 = arith.mulf %666, %667 : vector<8x32xf32>
    %669 = arith.addf %665, %668 : vector<8x32xf32>
    %670 = vector.extract_strided_slice %640 {offsets = [1, 2], sizes = [8, 32], strides = [1, 1]} : vector<12x36xf32> to vector<8x32xf32>
    %671 = vector.broadcast %74 : f32 to vector<8x32xf32>
    %672 = arith.mulf %670, %671 : vector<8x32xf32>
    %673 = arith.addf %669, %672 : vector<8x32xf32>
    %674 = vector.extract_strided_slice %640 {offsets = [1, 3], sizes = [8, 32], strides = [1, 1]} : vector<12x36xf32> to vector<8x32xf32>
    %675 = vector.broadcast %76 : f32 to vector<8x32xf32>
    %676 = arith.mulf %674, %675 : vector<8x32xf32>
    %677 = arith.addf %673, %676 : vector<8x32xf32>
    %678 = vector.extract_strided_slice %640 {offsets = [1, 4], sizes = [8, 32], strides = [1, 1]} : vector<12x36xf32> to vector<8x32xf32>
    %679 = vector.broadcast %78 : f32 to vector<8x32xf32>
    %680 = arith.mulf %678, %679 : vector<8x32xf32>
    %681 = arith.addf %677, %680 : vector<8x32xf32>
    %682 = vector.extract_strided_slice %640 {offsets = [2, 0], sizes = [8, 32], strides = [1, 1]} : vector<12x36xf32> to vector<8x32xf32>
    %683 = vector.broadcast %80 : f32 to vector<8x32xf32>
    %684 = arith.mulf %682, %683 : vector<8x32xf32>
    %685 = arith.addf %681, %684 : vector<8x32xf32>
    %686 = vector.extract_strided_slice %640 {offsets = [2, 1], sizes = [8, 32], strides = [1, 1]} : vector<12x36xf32> to vector<8x32xf32>
    %687 = vector.broadcast %82 : f32 to vector<8x32xf32>
    %688 = arith.mulf %686, %687 : vector<8x32xf32>
    %689 = arith.addf %685, %688 : vector<8x32xf32>
    %690 = vector.extract_strided_slice %640 {offsets = [2, 2], sizes = [8, 32], strides = [1, 1]} : vector<12x36xf32> to vector<8x32xf32>
    %691 = vector.broadcast %84 : f32 to vector<8x32xf32>
    %692 = arith.mulf %690, %691 : vector<8x32xf32>
    %693 = arith.addf %689, %692 : vector<8x32xf32>
    %694 = vector.extract_strided_slice %640 {offsets = [2, 3], sizes = [8, 32], strides = [1, 1]} : vector<12x36xf32> to vector<8x32xf32>
    %695 = vector.broadcast %86 : f32 to vector<8x32xf32>
    %696 = arith.mulf %694, %695 : vector<8x32xf32>
    %697 = arith.addf %693, %696 : vector<8x32xf32>
    %698 = vector.extract_strided_slice %640 {offsets = [2, 4], sizes = [8, 32], strides = [1, 1]} : vector<12x36xf32> to vector<8x32xf32>
    %699 = vector.broadcast %88 : f32 to vector<8x32xf32>
    %700 = arith.mulf %698, %699 : vector<8x32xf32>
    %701 = arith.addf %697, %700 : vector<8x32xf32>
    %702 = vector.extract_strided_slice %640 {offsets = [3, 0], sizes = [8, 32], strides = [1, 1]} : vector<12x36xf32> to vector<8x32xf32>
    %703 = vector.broadcast %90 : f32 to vector<8x32xf32>
    %704 = arith.mulf %702, %703 : vector<8x32xf32>
    %705 = arith.addf %701, %704 : vector<8x32xf32>
    %706 = vector.extract_strided_slice %640 {offsets = [3, 1], sizes = [8, 32], strides = [1, 1]} : vector<12x36xf32> to vector<8x32xf32>
    %707 = vector.broadcast %92 : f32 to vector<8x32xf32>
    %708 = arith.mulf %706, %707 : vector<8x32xf32>
    %709 = arith.addf %705, %708 : vector<8x32xf32>
    %710 = vector.extract_strided_slice %640 {offsets = [3, 2], sizes = [8, 32], strides = [1, 1]} : vector<12x36xf32> to vector<8x32xf32>
    %711 = vector.broadcast %94 : f32 to vector<8x32xf32>
    %712 = arith.mulf %710, %711 : vector<8x32xf32>
    %713 = arith.addf %709, %712 : vector<8x32xf32>
    %714 = vector.extract_strided_slice %640 {offsets = [3, 3], sizes = [8, 32], strides = [1, 1]} : vector<12x36xf32> to vector<8x32xf32>
    %715 = vector.broadcast %96 : f32 to vector<8x32xf32>
    %716 = arith.mulf %714, %715 : vector<8x32xf32>
    %717 = arith.addf %713, %716 : vector<8x32xf32>
    %718 = vector.extract_strided_slice %640 {offsets = [3, 4], sizes = [8, 32], strides = [1, 1]} : vector<12x36xf32> to vector<8x32xf32>
    %719 = vector.broadcast %98 : f32 to vector<8x32xf32>
    %720 = arith.mulf %718, %719 : vector<8x32xf32>
    %721 = arith.addf %717, %720 : vector<8x32xf32>
    %722 = vector.extract_strided_slice %640 {offsets = [4, 0], sizes = [8, 32], strides = [1, 1]} : vector<12x36xf32> to vector<8x32xf32>
    %723 = vector.broadcast %100 : f32 to vector<8x32xf32>
    %724 = arith.mulf %722, %723 : vector<8x32xf32>
    %725 = arith.addf %721, %724 : vector<8x32xf32>
    %726 = vector.extract_strided_slice %640 {offsets = [4, 1], sizes = [8, 32], strides = [1, 1]} : vector<12x36xf32> to vector<8x32xf32>
    %727 = vector.broadcast %102 : f32 to vector<8x32xf32>
    %728 = arith.mulf %726, %727 : vector<8x32xf32>
    %729 = arith.addf %725, %728 : vector<8x32xf32>
    %730 = vector.extract_strided_slice %640 {offsets = [4, 2], sizes = [8, 32], strides = [1, 1]} : vector<12x36xf32> to vector<8x32xf32>
    %731 = vector.broadcast %104 : f32 to vector<8x32xf32>
    %732 = arith.mulf %730, %731 : vector<8x32xf32>
    %733 = arith.addf %729, %732 : vector<8x32xf32>
    %734 = vector.extract_strided_slice %640 {offsets = [4, 3], sizes = [8, 32], strides = [1, 1]} : vector<12x36xf32> to vector<8x32xf32>
    %735 = vector.broadcast %106 : f32 to vector<8x32xf32>
    %736 = arith.mulf %734, %735 : vector<8x32xf32>
    %737 = arith.addf %733, %736 : vector<8x32xf32>
    %738 = vector.extract_strided_slice %640 {offsets = [4, 4], sizes = [8, 32], strides = [1, 1]} : vector<12x36xf32> to vector<8x32xf32>
    %739 = vector.broadcast %108 : f32 to vector<8x32xf32>
    %740 = arith.mulf %738, %739 : vector<8x32xf32>
    %741 = arith.addf %737, %740 : vector<8x32xf32>
    %742 = vector.broadcast %110 : f32 to vector<8x32xf32>
    %743 = arith.addf %741, %742 : vector<8x32xf32>
    %744 = vector.broadcast %112 : f32 to vector<8x32xf32>
    %745 = arith.mulf %743, %744 : vector<8x32xf32>
    %746 = vector.broadcast %114 : f32 to vector<8x32xf32>
    %747 = arith.addf %745, %746 : vector<8x32xf32>
    %cst_132 = arith.constant 0.000000e+00 : f32
    %748 = vector.broadcast %cst_132 : f32 to vector<8x32xf32>
    %749 = arith.maximumf %747, %748 : vector<8x32xf32>
    %750 = arith.addf %577, %749 : vector<8x32xf32>
    %cst_133 = arith.constant dense<0.000000e+00> : vector<8xf32>
    %751 = vector.multi_reduction <add>, %750, %cst_133 [1] : vector<8x32xf32> to vector<8xf32>
    %752 = vector.shape_cast %751 : vector<8xf32> to vector<8x1xf32>
    %cst_134 = arith.constant 3.200000e+01 : f32
    %753 = vector.broadcast %cst_134 : f32 to vector<8x1xf32>
    %754 = arith.divf %752, %753 : vector<8x1xf32>
    %755 = vector.broadcast %754 : vector<8x1xf32> to vector<8x32xf32>
    %756 = arith.subf %750, %755 : vector<8x32xf32>
    %757 = arith.mulf %756, %756 : vector<8x32xf32>
    %cst_135 = arith.constant dense<0.000000e+00> : vector<8xf32>
    %758 = vector.multi_reduction <add>, %757, %cst_135 [1] : vector<8x32xf32> to vector<8xf32>
    %759 = vector.shape_cast %758 : vector<8xf32> to vector<8x1xf32>
    %cst_136 = arith.constant 3.200000e+01 : f32
    %760 = vector.broadcast %cst_136 : f32 to vector<8x1xf32>
    %761 = arith.divf %759, %760 : vector<8x1xf32>
    %762 = vector.broadcast %754 : vector<8x1xf32> to vector<8x32xf32>
    %763 = arith.subf %750, %762 : vector<8x32xf32>
    %cst_137 = arith.constant 9.99999974E-6 : f32
    %764 = vector.broadcast %cst_137 : f32 to vector<8x1xf32>
    %765 = arith.addf %761, %764 : vector<8x1xf32>
    %766 = math.rsqrt %765 : vector<8x1xf32>
    %767 = vector.broadcast %766 : vector<8x1xf32> to vector<8x32xf32>
    %768 = arith.mulf %763, %767 : vector<8x32xf32>
    %769 = vector.broadcast %24 : vector<1x32xf32> to vector<8x32xf32>
    %770 = arith.mulf %768, %769 : vector<8x32xf32>
    %771 = vector.broadcast %26 : vector<1x32xf32> to vector<8x32xf32>
    %772 = arith.addf %770, %771 : vector<8x32xf32>
    %c0_138 = arith.constant 0 : index
    %c0_139 = arith.constant 0 : index
    %c0_140 = arith.constant 0 : index
    %773 = vector.load %arg16[%c0_138, %c0_139, %c0_140] : memref<2x8x32xf32, #tpu.memory_space<vmem>>, vector<1x8x32xf32>
    %774 = vector.shape_cast %773 : vector<1x8x32xf32> to vector<8x32xf32>
    %775 = vector.shape_cast %450 : vector<8x32xf32> to vector<1x8x32xf32>
    tpu.vector_store %arg16[%c0_138, %c0_139, %c0_140], %775 {strides = array<i32>} : memref<2x8x32xf32, #tpu.memory_space<vmem>>, vector<1x8x32xf32>,
    %c1_141 = arith.constant 1 : index
    %c0_142 = arith.constant 0 : index
    %c0_143 = arith.constant 0 : index
    %776 = vector.load %arg16[%c1_141, %c0_142, %c0_143] : memref<2x8x32xf32, #tpu.memory_space<vmem>>, vector<1x8x32xf32>
    %777 = vector.shape_cast %776 : vector<1x8x32xf32> to vector<8x32xf32>
    %778 = vector.shape_cast %772 : vector<8x32xf32> to vector<1x8x32xf32>
    tpu.vector_store %arg16[%c1_141, %c0_142, %c0_143], %778 {strides = array<i32>} : memref<2x8x32xf32, #tpu.memory_space<vmem>>, vector<1x8x32xf32>,
    %c1_i32 = arith.constant 1 : i32
    %779 = arith.cmpi eq, %arg0, %c1_i32 : i32
    %780 = arith.extui %779 : i1 to i32
    %c0_i32_144 = arith.constant 0 : i32
    %781 = arith.cmpi ne, %780, %c0_i32_144 : i32
    scf.if %781 {
      %c0_145 = arith.constant 0 : index
      %c0_146 = arith.constant 0 : index
      %c0_147 = arith.constant 0 : index
      %782 = vector.load %arg15[%c0_145, %c0_146, %c0_147] : memref<2x8x32xf32, #tpu.memory_space<vmem>>, vector<1x8x32xf32>
      %783 = vector.shape_cast %782 : vector<1x8x32xf32> to vector<8x32xf32>
      %784 = vector.shape_cast %450 : vector<8x32xf32> to vector<1x8x32xf32>
      tpu.vector_store %arg15[%c0_145, %c0_146, %c0_147], %784 {strides = array<i32>} : memref<2x8x32xf32, #tpu.memory_space<vmem>>, vector<1x8x32xf32>,
      %c1_148 = arith.constant 1 : index
      %c0_149 = arith.constant 0 : index
      %c0_150 = arith.constant 0 : index
      %785 = vector.load %arg15[%c1_148, %c0_149, %c0_150] : memref<2x8x32xf32, #tpu.memory_space<vmem>>, vector<1x8x32xf32>
      %786 = vector.shape_cast %785 : vector<1x8x32xf32> to vector<8x32xf32>
      %787 = vector.shape_cast %772 : vector<8x32xf32> to vector<1x8x32xf32>
      tpu.vector_store %arg15[%c1_148, %c0_149, %c0_150], %787 {strides = array<i32>} : memref<2x8x32xf32, #tpu.memory_space<vmem>>, vector<1x8x32xf32>,
    } else {
    }
    return
  }
  func.func @transform_0(%arg0: i32) -> (i32, i32) {
    %c0_i32 = arith.constant 0 : i32
    %c0_i32_0 = arith.constant 0 : i32
    %c0_i32_1 = arith.constant 0 : i32
    return %c0_i32, %c0_i32_0 : i32, i32
  }
  func.func @transform_1(%arg0: i32) -> (i32, i32, i32) {
    %c0_i32 = arith.constant 0 : i32
    %c0_i32_0 = arith.constant 0 : i32
    %c0_i32_1 = arith.constant 0 : i32
    %c0_i32_2 = arith.constant 0 : i32
    return %c0_i32, %c0_i32_0, %c0_i32_1 : i32, i32, i32
  }
  func.func @transform_2(%arg0: i32) -> (i32, i32, i32) {
    %c0_i32 = arith.constant 0 : i32
    %c0_i32_0 = arith.constant 0 : i32
    %c0_i32_1 = arith.constant 0 : i32
    return %arg0, %c0_i32, %c0_i32_0 : i32, i32, i32
  }
  func.func @transform_3(%arg0: i32) -> (i32, i32, i32) {
    %c0_i32 = arith.constant 0 : i32
    %c0_i32_0 = arith.constant 0 : i32
    %c0_i32_1 = arith.constant 0 : i32
    return %arg0, %c0_i32, %c0_i32_0 : i32, i32, i32
  }
  func.func @transform_4(%arg0: i32) -> (i32, i32, i32) {
    %c0_i32 = arith.constant 0 : i32
    %c0_i32_0 = arith.constant 0 : i32
    %c0_i32_1 = arith.constant 0 : i32
    return %arg0, %c0_i32, %c0_i32_0 : i32, i32, i32
  }
  func.func @transform_5(%arg0: i32) -> (i32, i32, i32) {
    %c0_i32 = arith.constant 0 : i32
    %c0_i32_0 = arith.constant 0 : i32
    %c0_i32_1 = arith.constant 0 : i32
    return %arg0, %c0_i32, %c0_i32_0 : i32, i32, i32
  }
  func.func @transform_6(%arg0: i32) -> (i32, i32, i32) {
    %c0_i32 = arith.constant 0 : i32
    %c0_i32_0 = arith.constant 0 : i32
    %c0_i32_1 = arith.constant 0 : i32
    return %arg0, %c0_i32, %c0_i32_0 : i32, i32, i32
  }
  func.func @transform_7(%arg0: i32) -> (i32, i32, i32) {
    %c0_i32 = arith.constant 0 : i32
    %c0_i32_0 = arith.constant 0 : i32
    %c0_i32_1 = arith.constant 0 : i32
    return %arg0, %c0_i32, %c0_i32_0 : i32, i32, i32
  }
  func.func @transform_8(%arg0: i32) -> (i32, i32, i32) {
    %c0_i32 = arith.constant 0 : i32
    %c0_i32_0 = arith.constant 0 : i32
    %c0_i32_1 = arith.constant 0 : i32
    return %arg0, %c0_i32, %c0_i32_0 : i32, i32, i32
  }
  func.func @transform_9(%arg0: i32) -> (i32, i32, i32) {
    %c0_i32 = arith.constant 0 : i32
    %c0_i32_0 = arith.constant 0 : i32
    %c0_i32_1 = arith.constant 0 : i32
    return %arg0, %c0_i32, %c0_i32_0 : i32, i32, i32
  }
  func.func @transform_10(%arg0: i32) -> (i32, i32, i32) {
    %c0_i32 = arith.constant 0 : i32
    %c0_i32_0 = arith.constant 0 : i32
    %c0_i32_1 = arith.constant 0 : i32
    return %arg0, %c0_i32, %c0_i32_0 : i32, i32, i32
  }
  func.func @transform_11(%arg0: i32) -> (i32, i32, i32) {
    %c0_i32 = arith.constant 0 : i32
    %c0_i32_0 = arith.constant 0 : i32
    %c0_i32_1 = arith.constant 0 : i32
    return %arg0, %c0_i32, %c0_i32_0 : i32, i32, i32
  }
  func.func @transform_12(%arg0: i32) -> (i32, i32, i32) {
    %c0_i32 = arith.constant 0 : i32
    %c0_i32_0 = arith.constant 0 : i32
    %c0_i32_1 = arith.constant 0 : i32
    return %arg0, %c0_i32, %c0_i32_0 : i32, i32, i32
  }
  func.func @transform_13(%arg0: i32) -> (i32, i32, i32) {
    %c0_i32 = arith.constant 0 : i32
    %c0_i32_0 = arith.constant 0 : i32
    %c0_i32_1 = arith.constant 0 : i32
    return %arg0, %c0_i32, %c0_i32_0 : i32, i32, i32
  }
  func.func @transform_14(%arg0: i32) -> (i32, i32, i32) {
    %c0_i32 = arith.constant 0 : i32
    %c0_i32_0 = arith.constant 0 : i32
    %c0_i32_1 = arith.constant 0 : i32
    %c0_i32_2 = arith.constant 0 : i32
    return %c0_i32, %c0_i32_0, %c0_i32_1 : i32, i32, i32
  }
}

</mosaic_0001>

<bundles_post_ra>
// kernel: tpu_custom_call.1
= control target key start
LH: loop header
LB: loop body
LE: loop exit
PB: predicated region body
PF: predicated region fallthrough
CT: control target
= control target key end

     0   :  { %s6484_s0 = inlined_call_operand.hbm [shape: f32[2,44], index: 0, kind: input, shape index: {}]   ;;  %s6485_s1 = inlined_call_operand.hbm [shape: f32[2,8,32], index: 1, kind: input, shape index: {}]   ;;  %s6486_s2 = inlined_call_operand.hbm [shape: f32[2,32,96], index: 2, kind: input, shape index: {}]   ;;  %s6487_s3 = inlined_call_operand.vmem [shape: f32[2,1,96], index: 3, kind: input, shape index: {}]   ;;  %s6488_s4 = inlined_call_operand.hbm [shape: f32[2,32,32], index: 4, kind: input, shape index: {}]   ;;  %s6489_s5 = inlined_call_operand.vmem [shape: f32[2,1,32], index: 5, kind: input, shape index: {}]   ;;  %s6490_s6 = inlined_call_operand.hbm [shape: f32[2,8,24], index: 6, kind: input, shape index: {}]   ;;  %s6491_s7 = inlined_call_operand.vmem [shape: f32[2,1,24], index: 7, kind: input, shape index: {}]   ;;  %s6492_s8 = inlined_call_operand.hbm [shape: f32[2,8,8], index: 8, kind: input, shape index: {}]   ;;  %s6493_s9 = inlined_call_operand.vmem [shape: f32[2,1,8], index: 9, kind: input, shape index: {}]   ;;  %s6494_s10 = inlined_call_operand.hbm [shape: f32[2,1,32], index: 10, kind: input, shape index: {}]   ;;  %s6495_s11 = inlined_call_operand.vmem [shape: f32[2,1,32], index: 11, kind: input, shape index: {}]   ;;  %s6496_s12 = inlined_call_operand.hbm [shape: f32[2,1,32], index: 12, kind: input, shape index: {}]   ;;  %s6497_s13 = inlined_call_operand.vmem [shape: f32[2,1,32], index: 13, kind: input, shape index: {}]   ;;  %s6498_s14 = inlined_call_operand.hbm [shape: f32[2,8,32], index: 14, kind: output, shape index: {}]  }
   0x1   :  { %6518 = sst [smem:[#allocation27_spill]] %s6484_s0 }
   0x2   :  { %6519 = sst [smem:[#allocation28_spill]] %s6485_s1 }
   0x3   :  { %6520 = sst [smem:[#allocation29_spill]] %s6486_s2 }
   0x4   :  { %6521 = sst [smem:[#allocation30_spill]] %s6487_s3 }
   0x5   :  { %6522 = sst [smem:[#allocation31_spill]] %s6488_s4 }
   0x6   :  { %6523 = sst [smem:[#allocation32_spill]] %s6489_s5 }
   0x7   :  { %6524 = sst [smem:[#allocation33_spill]] %s6490_s6 }
   0x8   :  { %6525 = sst [smem:[#allocation34_spill]] %s6491_s7 }
   0x9   :  { %6526 = sst [smem:[#allocation35_spill]] %s6492_s8 }
   0xa   :  { %6527 = sst [smem:[#allocation36_spill]] %s6493_s9 }
   0xb   :  { %6528 = sst [smem:[#allocation37_spill]] %s6495_s11 }
   0xc   :  { %6529 = sst [smem:[#allocation38_spill]] %s6497_s13 }
   0xd   :  { %6530 = sst [smem:[#allocation39_spill]] %s6498_s14 }
   0xe   :  { %19 = vsyncpa [#allocation6], 0 }
   0xf   :  { %20 = vsyncpa [#allocation4], 0 }
  0x10   :  { %21 = vsyncpa [#allocation9], 0 }
  0x11   :  { %23 = vsyncpa [#allocation9 + $0x1], 0 }
  0x12   :  { %24 = vsyncpa [#allocation12], 0 }
  0x13   :  { %26 = vsyncpa [#allocation12 + $0x1], 0 }
  0x14   :  { %27 = vsyncpa [#allocation15], 0 }
  0x15   :  { %29 = vsyncpa [#allocation15 + $0x1], 0 }
  0x16   :  { %30 = vsyncpa [#allocation5], 0  ;;  %s4848_s29 = smov 0   ;;  %s4850_s30 = smov 0  }
  0x17   :  { %s4852_s15 = smov 0   ;;  %s4854_s16 = smov 0  }
  0x18 LB: > { %6531 = sst [smem:[#allocation24_spill]] %s4738_s15  ;;  %s4869_s17 = sadd.s32 1, %s4742_s16   ;;  %s4742_s16 = sphi %s4854_s16, %s6572_s16   ;;  %s4738_s15 = sphi %s4852_s15, %s6574_s15   ;;  %s4734_s30 = sphi %s4850_s30, %s6576_s30   ;;  %s4730_s29 = sphi %s4848_s29, %s6575_s29  }
  0x19   : > { %6532 = sst [smem:[#allocation25_spill]] %s4869_s17  ;;  %s85_s18 = sadd.s32 1, %s4738_s15 }
  0x1a   : > { %s82_s19 = ssub.s32 %s4742_s16, %s4869_s17  ;;  %p92_p0 = scmp.ne.s32.totalorder %s4738_s15, %s4734_s30 }
  0x1b   : > { %p83_p1 = scmp.eq.s32.totalorder %s82_s19, 0  ;;  %p93_p2 = scmp.eq.s32.totalorder %s4742_s16, 0 }
  0x1c   : > { %p4209_p4 = scmp.lt.s32.totalorder %s4742_s16, 2  ;;  %s4882_s21 = sand.u32 1, %s4742_s16  }
  0x1d   : > { %s4878_s20 = scalar_select %p83_p1, %s4738_s15, %s85_s18  }
  0x1e   : > { %p94_p3 = por %p93_p2, %p92_p0  ;;  %s4885_s22 = sand.u32 1, %s4738_s15  }
  0x1f   : > { %6533 = sst [smem:[#allocation26_spill]] %s4878_s20  ;;  %s4039_s23 = sshll.u32 %s4885_s22, 5 }
  0x20   : > { %s4155_s24 = sshll.u32 %s4742_s16, 5  ;;  %s6534_s2 = sld [smem:[#allocation29_spill]] }
  0x21   : > { %s457_s17 = scalar_lea.vmem [#allocation8], %s4039_s23  ;;  %p4892_p5 = pnand %p4209_p4, %p94_p3 }
  0x22   : > { %s465_s19 = sshll.u32 %s457_s17, 4  ;;  %s6536_s4 = sld [smem:[#allocation31_spill]]  ;;  %s466_s19 = int_to_ptr.vmem [resolvable:$true] %s465_s19 }
  0x23   : > { %s485_s13 = scalar_lea.vmem [#allocation10], %s4039_s23  ;;  %s6502_s7 = scalar_lea.sflag [#allocation9], %s4882_s21 }
  0x24   : > { %s493_s11 = sshll.u32 %s485_s13, 4  ;;  %p4902_p7 = pneg %p4892_p5  ;;  %s4923_s11 = int_to_ptr.vmem [resolvable:$true] %s493_s11 }
  0x26   : > { %s462_s27 = scalar_lea.hbm %s6534_s2, %s4155_s24  ;;  %s4442_s23 = scalar_lea.hbm %s6534_s2, 64 }
  0x27   : > { %s463_s28 = sshll.u32 %s462_s27, 4  ;;  %s464_s28 = int_to_ptr.hbm [resolvable:$true] %s463_s28 }
  0x28   : > { %s490_s15 = scalar_lea.hbm %s6536_s4, %s4155_s24  ;;  %s4435_s25 = sshra.s32 %s464_s28, 4  ;;  %s4436_s25 = int_to_ptr.hbm [resolvable:$true] %s4435_s25 }
  0x29   : > { %s491_s9 = sshll.u32 %s490_s15, 4  ;;  %s4437_s26 = scalar_lea.hbm %s4436_s25, 32  ;;  %s4921_s9 = int_to_ptr.hbm [resolvable:$true] %s491_s9 }
  0x2a   : > { %p4438_p6 = scmp.ne.s32.totalorder %s4436_s25, %s4437_s26  ;;  %p4443_p10 = scmp.lt.s32.totalorder %s4436_s25, %s6534_s2 }
  0x2b   : > { %p4444_p11 = scmp.lt.s32.totalorder %s4442_s23, %s4437_s26 }
  0x2c   : > { %p4440_p8 = pnand %p4902_p7, %p4438_p6 }
  0x2d   : > { %p4445_p12 = por %p4444_p11, %p4443_p10 }
  0x2e   : > { %p4441_p9 = pneg %p4440_p8 }
  0x30   : > { %p4446_p13 = pnand %p4445_p12, %p4441_p9 }
  0x32   : > { %4449 = shalt.err (!%p4446_p13)
}
  0x33   : > { %s6503_s24 = smov 128   ;;  %s6505_s27 = smov 8  }
  0x34   : > { %4191 = dma.hbm_to_vmem [thread:$0]  (!%p4892_p5), %s464_s28, 512, %s466_s19, %s6502_s7, %s6503_s24, %s6503_s24, %s6505_s27  }
  0x35   : > { %s6507_s25 = sshll.u32 %s4885_s22, 3  ;;  %s4046_s26 = sshll.u32 %s4742_s16, 3 }
  0x36   : > { %s6538_s6 = sld [smem:[#allocation33_spill]]  ;;  %s513_s13 = scalar_lea.vmem [#allocation11], %s6507_s25 }
  0x37   : > { %s521_s15 = sshll.u32 %s513_s13, 4  ;;  %s6509_s5 = scalar_lea.sflag [#allocation12], %s4882_s21  ;;  %s522_s15 = int_to_ptr.vmem [resolvable:$true] %s521_s15 }
  0x3c   : > { %s517_s23 = scalar_lea.hbm %s6538_s6, %s4046_s26  ;;  %s4472_s24 = scalar_lea.hbm %s6538_s6, 16 }
  0x3d   : > { %s519_s2 = sshll.u32 %s517_s23, 4  ;;  %s520_s2 = int_to_ptr.hbm [resolvable:$true] %s519_s2 }
  0x3e   : > { %s4465_s3 = sshra.s32 %s520_s2, 4  ;;  %s4466_s3 = int_to_ptr.hbm [resolvable:$true] %s4465_s3 }
  0x3f   : > { %s4467_s28 = scalar_lea.hbm %s4466_s3, 8  ;;  %p4473_p3 = scmp.lt.s32.totalorder %s4466_s3, %s6538_s6 }
  0x40   : > { %p4468_p0 = scmp.ne.s32.totalorder %s4466_s3, %s4467_s28  ;;  %p4474_p4 = scmp.lt.s32.totalorder %s4472_s24, %s4467_s28 }
  0x42   : > { %p4470_p1 = pnand %p4468_p0, %p4902_p7  ;;  %p4475_p6 = por %p4474_p4, %p4473_p3 }
  0x44   : > { %p4471_p2 = pneg %p4470_p1 }
  0x46   : > { %p4476_p8 = pnand %p4475_p6, %p4471_p2 }
  0x48   : > { %4479 = shalt.err (!%p4476_p8)
}
  0x49   : > { %4197 = dma.hbm_to_vmem [thread:$0]  (!%p4892_p5), %s520_s2, 128, %s522_s15, %s6509_s5  }
  0x4a   : > { %s6539_s8 = sld [smem:[#allocation35_spill]]  ;;  %s565_s24 = scalar_lea.hbm %s6494_s10, %s4742_s16 }
  0x4b   : > { %s567_s28 = sshll.u32 %s565_s24, 4  ;;  %s562_s14 = scalar_lea.vmem [#allocation14], %s4885_s22  ;;  %s568_s28 = int_to_ptr.hbm [resolvable:$true] %s567_s28 }
  0x4c   : > { %s569_s20 = sshll.u32 %s562_s14, 4  ;;  %s6508_s27 = scalar_lea.sflag [#allocation15], %s4882_s21  ;;  %s570_s20 = int_to_ptr.vmem [resolvable:$true] %s569_s20 }
  0x4d   : > { %s4495_s25 = sshra.s32 %s568_s28, 4  ;;  %s4502_s15 = scalar_lea.hbm %s6494_s10, 2  ;;  %s4496_s25 = int_to_ptr.hbm [resolvable:$true] %s4495_s25 }
  0x4e   : > { %s4497_s6 = scalar_lea.hbm %s4496_s25, 1  ;;  %p4503_p12 = scmp.lt.s32.totalorder %s4496_s25, %s6494_s10 }
  0x4f   : > { %p4498_p9 = scmp.ne.s32.totalorder %s4496_s25, %s4497_s6  ;;  %p4504_p13 = scmp.lt.s32.totalorder %s4502_s15, %s4497_s6 }
  0x50   : > { %s4948_s13 = scalar_lea.hbm %s6539_s8, %s4046_s26 }
  0x51   : > { %p4500_p10 = pnand %p4498_p9, %p4902_p7  ;;  %p4505_p0 = por %p4504_p13, %p4503_p12 }
  0x53   : > { %p4501_p11 = pneg %p4500_p10 }
  0x55   : > { %p4506_p1 = pnand %p4505_p0, %p4501_p11 }
  0x57   : > { %4509 = shalt.err (!%p4506_p1)
}
  0x58   : > { %4203 = dma.hbm_to_vmem [thread:$0]  (!%p4892_p5), %s568_s28, 16, %s570_s20, %s6508_s27  }
  0x59   : > { %s4969_s19 = sadd.s32 4294967295, %s4742_s16   ;;  %p98_p3 = scmp.ne.s32.totalorder %s4734_s30, %s4730_s29 }
  0x5a   : > { %p99_p2 = scmp.eq.s32.totalorder %s4969_s19, 0  ;;  %p4035_p4 = scmp.ge.s32.totalorder %s4742_s16, 1 }
  0x5b   : > { %p416_p6 = scmp.lt.s32.totalorder %s4742_s16, 3  ;;  %p4036_p8 = scmp.ne.s32.totalorder %s4969_s19, 0 }
  0x5c   : > { %p4979_p9 = por %p99_p2, %p98_p3  ;;  %s6541_s0 = sld [smem:[#allocation27_spill]] }
  0x5d   : > { %p4986_p10 = pnand %p4035_p4, %p416_p6  ;;  %s6543_s1 = sld [smem:[#allocation28_spill]] }
  0x5e   : > { %s544_s2 = sshll.u32 %s4948_s13, 4  ;;  %s4746_s26 = smov [#allocation7]   ;;  %s4998_s2 = int_to_ptr.hbm [resolvable:$true] %s544_s2 }
  0x5f   : > { %p4181_p11 = pneg %p4986_p10  ;;  %s439_s15 = sshll.u32 %s4746_s26, 4  ;;  %s440_s15 = int_to_ptr.vmem [resolvable:$true] %s439_s15 }
  0x60   : > { %s6544_s23 = sshll.u32 %s4885_s22, 3  ;;  %s4747_s3 = smov [#allocation3]  }
  0x61   : > { %p4182_p12 = pnand %p4181_p11, %p99_p2  ;;  %s538_s7 = scalar_lea.vmem [#allocation13], %s6544_s23 }
  0x62   : > { %s428_s24 = sshll.u32 %s6541_s0, 4  ;;  %s546_s25 = sshll.u32 %s538_s7, 4  ;;  %s429_s24 = int_to_ptr.hbm [resolvable:$true] %s428_s24  ;;  %s547_s25 = int_to_ptr.vmem [resolvable:$true] %s546_s25 }
  0x63   : > { %s437_s20 = sshll.u32 %s6543_s1, 4  ;;  %s6545_s27 = smov 8   ;;  %s438_s20 = int_to_ptr.hbm [resolvable:$true] %s437_s20 }
  0x64   : > { %4184 = dma.hbm_to_smem (!%p4182_p12), %s429_s24, 32, %s4747_s3, [#allocation6]  }
  0x65   : > { %s6546_s29 = smov 128   ;;  %s4570_s14 = sshra.s32 %s4921_s9, 4  ;;  %s4571_s14 = int_to_ptr.hbm [resolvable:$true] %s4570_s14 }
  0x66   : > { %4187 = dma.hbm_to_vmem [thread:$0]  (!%p4182_p12), %s438_s20, 256, %s440_s15, [#allocation4], %s6546_s29, %s6546_s29, %s6545_s27  }
  0x67   : > { %s4572_s5 = scalar_lea.hbm %s4571_s14, 32  ;;  %s4577_s0 = scalar_lea.hbm %s6536_s4, 64 }
  0x68   : > { %p4573_p13 = scmp.ne.s32.totalorder %s4571_s14, %s4572_s5  ;;  %p4578_p3 = scmp.lt.s32.totalorder %s4571_s14, %s6536_s4 }
  0x69   : > { %p4579_p4 = scmp.lt.s32.totalorder %s4577_s0, %s4572_s5 }
  0x6a   : > { %p4575_p0 = pnand %p4573_p13, %p4902_p7 }
  0x6b   : > { %p4580_p6 = por %p4579_p4, %p4578_p3 }
  0x6c   : > { %p4576_p1 = pneg %p4575_p0 }
  0x6e   : > { %p4581_p11 = pnand %p4580_p6, %p4576_p1 }
  0x70   : > { %4584 = shalt.err (!%p4581_p11)
}
  0x71   : > { %s6547_s24 = scalar_lea.sflag [#allocation9], %s4882_s21  ;;  %s4600_s20 = sshra.s32 %s4998_s2, 4  ;;  %s4601_s20 = int_to_ptr.hbm [resolvable:$true] %s4600_s20 }
  0x72   : > { %4194 = dma.hbm_to_vmem [thread:$0]  (!%p4892_p5), %s4921_s9, 512, %s4923_s11, %s6547_s24, %s6546_s29, %s6546_s29, %s6545_s27  }
  0x73   : > { %s4602_s1 = scalar_lea.hbm %s4601_s20, 8  ;;  %s4607_s15 = scalar_lea.hbm %s6539_s8, 16 }
  0x74   : > { %p4603_p12 = scmp.ne.s32.totalorder %s4601_s20, %s4602_s1  ;;  %p4608_p1 = scmp.lt.s32.totalorder %s4601_s20, %s6539_s8 }
  0x75   : > { %p4609_p3 = scmp.lt.s32.totalorder %s4607_s15, %s4602_s1 }
  0x76   : > { %p4605_p13 = pnand %p4603_p12, %p4902_p7 }
  0x77   : > { %p4610_p4 = por %p4609_p3, %p4608_p1 }
  0x78   : > { %p4606_p0 = pneg %p4605_p13 }
  0x7a   : > { %p4611_p6 = pnand %p4610_p4, %p4606_p0 }
  0x7c   : > { %4614 = shalt.err (!%p4611_p6)
}
  0x7d   : > { %s6548_s9 = scalar_lea.sflag [#allocation12], %s4882_s21  ;;  %s588_s29 = scalar_lea.hbm %s6496_s12, %s4742_s16 }
  0x7e   : > { %4200 = dma.hbm_to_vmem [thread:$0]  (!%p4892_p5), %s4998_s2, 128, %s547_s25, %s6548_s9  }
  0x7f   : > { %s585_s14 = scalar_lea.vmem [#allocation16], %s4885_s22  ;;  %s590_s26 = sshll.u32 %s588_s29, 4  ;;  %s591_s26 = int_to_ptr.hbm [resolvable:$true] %s590_s26 }
  0x80   : > { %s592_s13 = sshll.u32 %s585_s14, 4  ;;  %s4630_s23 = sshra.s32 %s591_s26, 4  ;;  %s593_s13 = int_to_ptr.vmem [resolvable:$true] %s592_s13  ;;  %s4631_s23 = int_to_ptr.hbm [resolvable:$true] %s4630_s23 }
  0x81   : > { %s4632_s24 = scalar_lea.hbm %s4631_s23, 1  ;;  %s4637_s2 = scalar_lea.hbm %s6496_s12, 2 }
  0x82   : > { %p4633_p11 = scmp.ne.s32.totalorder %s4631_s23, %s4632_s24  ;;  %p4638_p0 = scmp.lt.s32.totalorder %s4631_s23, %s6496_s12 }
  0x83   : > { %p4639_p1 = scmp.lt.s32.totalorder %s4637_s2, %s4632_s24 }
  0x84   : > { %p4635_p12 = pnand %p4633_p11, %p4902_p7 }
  0x85   : > { %p4640_p3 = por %p4639_p1, %p4638_p0 }
  0x86   : > { %p4636_p13 = pneg %p4635_p12 }
  0x88   : > { %p4641_p4 = pnand %p4640_p3, %p4636_p13 }
  0x8a   : > { %4644 = shalt.err (!%p4641_p4)
}
  0x8b   : > { %s6549_s16 = scalar_lea.sflag [#allocation15], %s4882_s21  ;;  %607 = sbr.rel (%p4986_p10) target bundleno = 4454 (0x1166), region = 76 }
  0x8c   : > { %4206 = dma.hbm_to_vmem [thread:$0]  (!%p4892_p5), %s591_s26, 16, %s593_s13, %s6549_s16  }
  0x90   : > { %4705 = dma.done.wait (%p99_p2), [#allocation6], 32  }
  0x91   : > { %4707 = vsyncadd (%p99_p2), [#allocation6], 4294967264 }
  0x92   : > { %4709 = dma.done.wait (%p99_p2), [#allocation4], 256  }
  0x93   : > { %4711 = vsyncadd (%p99_p2), [#allocation4], 4294967040  ;;  %s619_s21 = sand.u32 1, %s4969_s19   ;;  %s5066_s22 = sand.u32 1, %s4734_s30  }
  0x94   : > { %s4052_s18 = sshll.u32 %s5066_s22, 5  ;;  %s620_s17 = scalar_lea.sflag [#allocation9], %s619_s21 }
  0x95   : > { %s5069_s28 = scalar_lea.vmem [#allocation8], %s4052_s18 }
  0x96   : > { %4713 = dma.done.wait (%p4979_p9), %s620_s17, 1024  }
  0x97   : > { %4715 = vsyncadd (%p4979_p9), %s620_s17, 4294966272  ;;  %s4054_s5 = sshll.u32 %s5066_s22, 3  ;;  %s5076_s15 = scalar_lea.vmem [#allocation10], %s4052_s18 }
  0x98   : > { %s640_s7 = scalar_lea.sflag [#allocation12], %s619_s21  ;;  %s5078_s3 = scalar_lea.vmem [#allocation11], %s4054_s5 }
  0x99   : > { %4717 = dma.done.wait (%p4979_p9), %s640_s7, 256  }
  0x9a   : > { %4719 = vsyncadd (%p4979_p9), %s640_s7, 4294967040  ;;  %s5084_s9 = scalar_lea.vmem [#allocation13], %s4054_s5  ;;  %s660_s11 = scalar_lea.sflag [#allocation15], %s619_s21 }
  0x9b   : > { %4721 = dma.done.wait (%p4979_p9), %s660_s11, 32  }
  0x9c   : > { %4723 = vsyncadd (%p4979_p9), %s660_s11, 4294967264 }
  0x9d   : > { %677 = sfence }
  0x9e   : > { %p754_p5 = scmp.lt.s32.totalorder %s4969_s19, 1  ;;  %s6550_s23 = sld [smem:[#allocation30_spill]] }
  0x9f   : > { %s6551_s1 = sld [smem:[#allocation32_spill]] }
  0xa0   : > { %s5094_s14 = scalar_select %p754_p5, %s4969_s19, 1 }
  0xa1   : > { %s6552_s16 = sld [smem:[#allocation34_spill]] }
  0xa2   : > { %s6553_s5 = sld [smem:[#allocation36_spill]] }
  0xa3   : > { %s6554_s26 = sld [smem:[#allocation37_spill]] }
  0xa4   : > { %s756_s24 = scalar_lea.vmem %s6550_s23, %s5094_s14 }
  0xa5   : > { %s759_s2 = scalar_lea.vmem %s6551_s1, %s5094_s14  ;;  %775 = sbr.rel (%p4036_p8) target bundleno = 173 (0xad), region = 112 }
  0xa7   : > { %s762_s21 = scalar_lea.vmem %s6552_s16, %s5094_s14 }
  0xa8   : > { %s765_s7 = scalar_lea.vmem %s6553_s5, %s5094_s14 }
  0xa9   : > { %s768_s29 = scalar_lea.vmem %s6554_s26, %s5094_s14 }
  0xaa   : > { %v776_v0 = vld [vmem:[#allocation7] sm:$0xff]  ;;  %vm778_vm0 = vcmask 261120   ;;  %v777_v1 = vld [vmem:[#allocation7 + $0x8] sm:$0xff] }
  0xab   : > { %779 = vst.msk [vmem:[#allocation2] sm:$0xff] %vm778_vm0, %v776_v0 }
  0xac   : > { %780 = vst.msk [vmem:[#allocation2 + $0x8] sm:$0xff] %vm778_vm0, %v777_v1 }
  0xad PF: > { %v784_v2 = vld [vmem:[%s5069_s28 + $0x18] sm:$0xff]  ;;  %v783_v3 = vld [vmem:[%s5069_s28 + $0x10] sm:$0xff]  ;;  %v782_v4 = vld [vmem:[%s5069_s28 + $0x8] sm:$0xff]  ;;  %vm893_vm1 = vcmask 261120   ;;  %s4748_s4 = smov 88   ;;  %s4749_s8 = smov 96  }
  0xae   : > { %912 = vmatpush.msra.mxu0 %v784_v2  ;;  %v781_v5 = vld [vmem:[%s5069_s28] sm:$0xff]  ;;  %s4750_s28 = smov 120   ;;  %s4751_s27 = smov 80   ;;  %vm990_vm2 = vcmask 64512  }
  0xaf   : > { %v5130_v7 = vld [vmem:[%s756_s24] ss:$0 sm:$0xff]  ;;  %s4752_s24 = smov 112   ;;  %s4753_s6 = smov 72  }
  0xb0   : > { %913 = vmatpush.msra.mxu0 %v783_v3  ;;  %s4754_s20 = smov 64   ;;  %s4755_s1 = smov 104   ;;  %v791_v55 = vld [vmem:[%s5078_s3] sm:$0xff] }
  0xb1   : > { %s4756_s25 = smov 48   ;;  %s4757_s0 = smov 56   ;;  %1030 = vmatpush.msra.mxu1 %v791_v55 }
  0xb2   : > { %914 = vmatpush.msra.mxu0 %v782_v4  ;;  %v5126_v6 = vld [vmem:[#allocation2] sm:$0xff]  ;;  %s4758_s3 = smov 40   ;;  %s6511_s5 = smov 124  }
  0xb3   : > { %v5186_v3 = vld [vmem:[#allocation2 + $0x8] sm:$0xff]  ;;  %s4761_s11 = smov 24   ;;  %s6510_s13 = smov 8  }
  0xb4   : > { %915 = vmatpush.msra.mxu0 %v781_v5  ;;  %s4763_s26 = smov 16   ;;  %p4150_p7 = scmp.ne.s32.totalorder %s4969_s19, 1 }
  0xb5   : > { %4058 = vmatmul.msk.f32.vlgmr.msra.gmra.mxu0 %vm893_vm1, %v5126_v6 }
  0xbd   : > { %4059 = vmatmul.msk.f32.gmra.mxu0 %vm893_vm1, %v5186_v3 }
 0x132   : > { %v917_v8 = vpop.f32.mrf.mxu0 }
 0x133   : > { %v5133_v9 = vadd.f32 %v5130_v7, %v917_v8 }
 0x135   : > { %1137 = vrot.lane.b32.xlu2 %v5133_v9, %s4748_s4  ;;  %1058 = vrot.lane.b32.xlu0 %v5133_v9, %s4749_s8  ;;  %v1056_v10 = vmul.f32 0.35355338, %v5133_v9 }
 0x13d   : > { %1135 = vrot.lane.b32.xlu2 %v1056_v10, %s4750_s28 }
 0x145   : > { %1215 = vrot.lane.b32.xlu2 %v5133_v9, %s4751_s27 }
 0x14d   : > { %1213 = vrot.lane.b32.xlu2 %v1056_v10, %s4752_s24 }
 0x155   : > { %1293 = vrot.lane.b32.xlu2 %v5133_v9, %s4753_s6 }
 0x18f   : > { %v1138_v19 = vpop.permute.xlu2 %1137 }
 0x197   : > { %v1136_v21 = vpop.permute.xlu2 %1135 }
 0x19f   : > { %v1216_v26 = vpop.permute.xlu2 %1215 }
 0x1a7   : > { %v1059_v11 = vpop.permute.xlu0 %1058  ;;  %v1214_v33 = vpop.permute.xlu2 %1213 }
 0x1a8   : > { %4068 = vmatpush.xpose.msk.msra.mxu2 %vm990_vm2, %v1059_v11 }
 0x1ab   : > { %4069 = vmatmul.msk.f32.vlgmr.msra.gmra.mxu2 %vm990_vm2, %v1056_v10 }
 0x1af   : > { %v1294_v36 = vpop.permute.xlu2 %1293 }
 0x22e   : > { %v1082_v12 = vpop.f32.mrf.mxu2 }
 0x22f   : > { %v1085_v13 = vsel %vm990_vm2, %v1082_v12, -inf }
 0x230   : > { %1086 = vmax.xlane.f32.xlu0 %v1085_v13 }
 0x2a3   : > { %v1087_v14 = vpop.xlane.xlu0 %1086 }
 0x2a4   : > { %v1088_v15 = vsub.f32 %v1082_v12, %v1087_v14 }
 0x2a6   : > { %v1089_v16 = vmul.f32 1.442695, %v1088_v15 }
 0x2a8   : > { %4324 = vpow2.f32 %v1089_v16 }
 0x2ae   : > { %v4325_v17 = vpop.eup %4324 }
 0x2af   : > { %v1091_v18 = vsel %vm990_vm2, %v4325_v17, 0.0 }
 0x2b0   : > { %1092 = vadd.xlane.f32.xlu1 %v1091_v18 }
 0x2c9   : > { %1109 = vrot.lane.b32.xlu1 %v5133_v9, %s4754_s20 }
 0x2d1   : > { %1291 = vrot.lane.b32.xlu1 %v1056_v10, %s4755_s1 }
 0x323   : > { %v1093_v20 = vpop.xlane.xlu1 %1092 }
 0x324   : > { %4326 = vrcp.f32 %v1093_v20  ;;  %v1105_v28 = vand.u32 2147483648, %v1093_v20  ;;  %vm1099_vm4 = vweird.f32 %v1093_v20  ;;  %v1103_v29 = vand.u32 2147483647, %v1093_v20 }
 0x326   : > { %v1106_v31 = vor.u32 1.1754944e-38, %v1105_v28  ;;  %vm1104_vm6 = vcmp.eq.f32.partialorder %v1103_v29, 8.507059e+37 }
 0x32a   : > { %v4327_v22 = vpop.eup %4326 }
 0x32b   : > { %v1095_v23 = vmul.f32 %v4327_v22, %v1093_v20  ;;  %vm1100_vm3 = vweird.f32 %v4327_v22 }
 0x32c   : > { %vm1101_vm5 = vmor %vm1099_vm4, %vm1100_vm3 }
 0x32d   : > { %v1096_v24 = vsub.f32 1.0, %v1095_v23 }
 0x32f   : > { %v1097_v25 = vmul.f32 %v4327_v22, %v1096_v24 }
 0x331   : > { %v1098_v27 = vadd.f32 %v4327_v22, %v1097_v25 }
 0x333   : > { %v1102_v30 = vsel %vm1101_vm5, %v4327_v22, %v1098_v27  ;;  %vm1428_vm5 = vcmask 31744  }
 0x334   : > { %v1107_v32 = vsel %vm1104_vm6, %v1106_v31, %v1102_v30  ;;  %vm1382_vm6 = vcmask 130048  }
 0x335   : > { %v1108_v35 = vmul.f32 %v4325_v17, %v1107_v32 }
 0x33b   : > { %v1110_v34 = vpop.permute.xlu1 %1109 }
 0x33c   : > { %1130 = vmatpush.msra.mxu3 %v1110_v34 }
 0x33d   : > { %4070 = vmatmul.msk.f32.vlgmr.msra.gmra.mxu3 %vm990_vm2, %v1108_v35 }
 0x33e   : > { %4071 = vmatpush.xpose.msk.msrb.mxu3 %vm990_vm2, %v1138_v19 }
 0x342   : > { %4074 = vmatpush.xpose.msk.msra.mxu3 %vm990_vm2, %v1216_v26 }
 0x343   : > { %v1292_v37 = vpop.permute.xlu1 %1291 }
 0x345   : > { %4072 = vmatmul.msk.f32.vlgmr.msrb.gmra.mxu3 %vm990_vm2, %v1136_v21 }
 0x346   : > { %4077 = vmatpush.xpose.msk.msrb.mxu3 %vm990_vm2, %v1294_v36 }
 0x34d   : > { %4075 = vmatmul.msk.f32.vlgmr.msra.gmra.mxu3 %vm990_vm2, %v1214_v33 }
 0x355   : > { %4078 = vmatmul.msk.f32.vlgmr.msrb.gmra.mxu3 %vm990_vm2, %v1292_v37 }
 0x3c0   : > { %v5160_v38 = vpop.f32.mrf.mxu3 }
 0x3c8   : > { %v1160_v39 = vpop.f32.mrf.mxu3 }
 0x3c9   : > { %v1163_v40 = vsel %vm990_vm2, %v1160_v39, -inf }
 0x3ca   : > { %1164 = vmax.xlane.f32.xlu2 %v1163_v40 }
 0x3d0   : > { %v1238_v41 = vpop.f32.mrf.mxu3 }
 0x3d1   : > { %v1241_v42 = vsel %vm990_vm2, %v1238_v41, -inf }
 0x3d2   : > { %1242 = vmax.xlane.f32.xlu1 %v1241_v42 }
 0x3d8   : > { %v1316_v43 = vpop.f32.mrf.mxu3 }
 0x3d9   : > { %v1319_v44 = vsel %vm990_vm2, %v1316_v43, -inf }
 0x3da   : > { %1320 = vmax.xlane.f32.xlu0 %v1319_v44 }
 0x3eb   : > { %1265 = vrot.lane.b32.xlu1 %v5133_v9, %s4756_s25 }
 0x3ee   : > { %1187 = vrot.lane.b32.xlu0 %v5133_v9, %s4757_s0 }
 0x3f3   : > { %923 = vxpose.xlu2.b32.start.end [1/1] (short) (narrow) %v5126_v6, 32 }
 0x43d   : > { %v1165_v45 = vpop.xlane.xlu2 %1164 }
 0x43e   : > { %v1166_v46 = vsub.f32 %v1160_v39, %v1165_v45 }
 0x440   : > { %v1167_v47 = vmul.f32 1.442695, %v1166_v46 }
 0x442   : > { %4328 = vpow2.f32 %v1167_v47 }
 0x445   : > { %v1243_v48 = vpop.xlane.xlu1 %1242 }
 0x446   : > { %v1244_v49 = vsub.f32 %v1238_v41, %v1243_v48 }
 0x448   : > { %v4329_v50 = vpop.eup %4328  ;;  %v1245_v51 = vmul.f32 1.442695, %v1244_v49 }
 0x449   : > { %v1169_v52 = vsel %vm990_vm2, %v4329_v50, 0.0 }
 0x44a   : > { %4330 = vpow2.f32 %v1245_v51  ;;  %1170 = vadd.xlane.f32.xlu0 %v1169_v52 }
 0x44d   : > { %v1321_v53 = vpop.xlane.xlu0 %1320 }
 0x44e   : > { %v1322_v54 = vsub.f32 %v1316_v43, %v1321_v53  ;;  %v5200_v43 = vld [vmem:[%s762_s21] ss:$0 sm:$0xff]  ;;  %s4759_s21 = smov 116  }
 0x450   : > { %v5172_v56 = vpop.eup %4330  ;;  %v1323_v57 = vmul.f32 1.442695, %v1322_v54 }
 0x451   : > { %v1247_v58 = vsel %vm990_vm2, %v5172_v56, 0.0 }
 0x452   : > { %4332 = vpow2.f32 %v1323_v57  ;;  %1248 = vadd.xlane.f32.xlu0 %v1247_v58 }
 0x458   : > { %v5176_v59 = vpop.eup %4332 }
 0x459   : > { %v1325_v60 = vsel %vm990_vm2, %v5176_v59, 0.0 }
 0x45a   : > { %1326 = vadd.xlane.f32.xlu0 %v1325_v60 }
 0x45d   : > { %v1266_v62 = vpop.permute.xlu1 %1265 }
 0x460   : > { %v1188_v61 = vpop.permute.xlu0 %1187 }
 0x461   : > { %1208 = vmatpush.msrb.mxu2 %v1188_v61 }
 0x463   : > { %1286 = vmatpush.msra.mxu2 %v1266_v62  ;;  %v789_v62 = vld [vmem:[%s5076_s15 + $0x18] sm:$0xff] }
 0x46e   : > { %1343 = vrot.lane.b32.xlu0 %v5133_v9, %s4758_s3 }
 0x48c   : > { %v939_v63 = vpop.trf.xlu2 }
 0x48d   : > { %4060 = vmatmul.msk.f32.vlgmr.msra.gmra.mxu1 %vm990_vm2, %v939_v63  ;;  %v788_v63 = vld [vmem:[%s5076_s15 + $0x10] sm:$0xff] }
 0x494   : > { %v940_v0 = vpop.trf.xlu2 }
 0x495   : > { %4061 = vmatmul.msk.f32.gmra.mxu1 %vm990_vm2, %v940_v0  ;;  %v787_v0 = vld [vmem:[%s5076_s15 + $0x8] sm:$0xff] }
 0x49c   : > { %v941_v1 = vpop.trf.xlu2 }
 0x49d   : > { %4062 = vmatmul.msk.f32.gmra.mxu1 %vm990_vm2, %v941_v1 }
 0x4a4   : > { %v942_v2 = vpop.trf.xlu2 }
 0x4a5   : > { %4063 = vmatmul.msk.f32.gmra.mxu1 %vm990_vm2, %v942_v2  ;;  %v5249_v2 = vld [vmem:[%s5076_s15] sm:$0xff] }
 0x4bd   : > { %v1171_v4 = vpop.xlane.xlu0 %1170 }
 0x4be   : > { %4334 = vrcp.f32 %v1171_v4  ;;  %v1183_v11 = vand.u32 2147483648, %v1171_v4  ;;  %v1181_v12 = vand.u32 2147483647, %v1171_v4  ;;  %vm1177_vm8 = vweird.f32 %v1171_v4 }
 0x4c0   : > { %v1184_v15 = vor.u32 1.1754944e-38, %v1183_v11  ;;  %vm1182_vm10 = vcmp.eq.f32.partialorder %v1181_v12, 8.507059e+37 }
 0x4c4   : > { %v4335_v5 = vpop.eup %4334 }
 0x4c5   : > { %v1173_v6 = vmul.f32 %v4335_v5, %v1171_v4  ;;  %v1249_v8 = vpop.xlane.xlu0 %1248  ;;  %vm1178_vm7 = vweird.f32 %v4335_v5 }
 0x4c6   : > { %4336 = vrcp.f32 %v1249_v8  ;;  %vm1179_vm9 = vmor %vm1177_vm8, %vm1178_vm7  ;;  %v1261_v21 = vand.u32 2147483648, %v1249_v8  ;;  %v1259_v24 = vand.u32 2147483647, %v1249_v8  ;;  %vm1255_vm12 = vweird.f32 %v1249_v8 }
 0x4c7   : > { %v1174_v9 = vsub.f32 1.0, %v1173_v6  ;;  %vm1384_vm7 = vcmask 195584  }
 0x4c8   : > { %v1262_v27 = vor.u32 1.1754944e-38, %v1261_v21  ;;  %vm1260_vm14 = vcmp.eq.f32.partialorder %v1259_v24, 8.507059e+37 }
 0x4c9   : > { %v1175_v10 = vmul.f32 %v4335_v5, %v1174_v9 }
 0x4cb   : > { %v1176_v13 = vadd.f32 %v4335_v5, %v1175_v10 }
 0x4cc   : > { %v4337_v14 = vpop.eup %4336 }
 0x4cd   : > { %v1251_v16 = vmul.f32 %v4337_v14, %v1249_v8  ;;  %v1327_v17 = vpop.xlane.xlu0 %1326  ;;  %v1180_v18 = vsel %vm1179_vm9, %v4335_v5, %v1176_v13  ;;  %vm1256_vm11 = vweird.f32 %v4337_v14 }
 0x4ce   : > { %4338 = vrcp.f32 %v1327_v17  ;;  %v1185_v20 = vsel %vm1182_vm10, %v1184_v15, %v1180_v18  ;;  %vm1257_vm13 = vmor %vm1255_vm12, %vm1256_vm11  ;;  %v1339_v33 = vand.u32 2147483648, %v1327_v17  ;;  %v1337_v35 = vand.u32 2147483647, %v1327_v17 }
 0x4cf   : > { %v1252_v19 = vsub.f32 1.0, %v1251_v16  ;;  %v1186_v22 = vmul.f32 %v4329_v50, %v1185_v20  ;;  %vm1333_vm0 = vweird.f32 %v1327_v17 }
 0x4d0   : > { %v1340_v37 = vor.u32 1.1754944e-38, %v1339_v33  ;;  %vm1338_vm4 = vcmp.eq.f32.partialorder %v1337_v35, 8.507059e+37 }
 0x4d1   : > { %v1253_v23 = vmul.f32 %v4337_v14, %v1252_v19  ;;  %4073 = vmatmul.msk.f32.vlgmr.msrb.gmra.mxu2 %vm990_vm2, %v1186_v22 }
 0x4d2   : > { %1404 = vmatpush.msrb.mxu2 %v789_v62 }
 0x4d3   : > { %v1254_v25 = vadd.f32 %v4337_v14, %v1253_v23 }
 0x4d4   : > { %v4339_v26 = vpop.eup %4338  ;;  %1405 = vmatpush.msrb.mxu2 %v788_v63 }
 0x4d5   : > { %v1258_v28 = vsel %vm1257_vm13, %v4337_v14, %v1254_v25  ;;  %v1329_v29 = vmul.f32 %v4339_v26, %v1327_v17  ;;  %vm1334_vm15 = vweird.f32 %v4339_v26 }
 0x4d6   : > { %v1263_v30 = vsel %vm1260_vm14, %v1262_v27, %v1258_v28  ;;  %vm1335_vm3 = vmor %vm1333_vm0, %vm1334_vm15  ;;  %1406 = vmatpush.msrb.mxu2 %v787_v0 }
 0x4d7   : > { %v1330_v31 = vsub.f32 1.0, %v1329_v29  ;;  %v1264_v32 = vmul.f32 %v5172_v56, %v1263_v30  ;;  %v920_v56 = vpop.f32.mrf.mxu0 }
 0x4d8   : > { %v5221_v57 = vadd.f32 %v5130_v7, %v920_v56  ;;  %1407 = vmatpush.msrb.mxu2 %v5249_v2 }
 0x4d9   : > { %v1331_v34 = vmul.f32 %v4339_v26, %v1330_v31  ;;  %4076 = vmatmul.msk.f32.vlgmr.msra.gmra.mxu2 %vm990_vm2, %v1264_v32 }
 0x4db   : > { %v1332_v36 = vadd.f32 %v4339_v26, %v1331_v34 }
 0x4dd   : > { %v1336_v39 = vsel %vm1335_vm3, %v4339_v26, %v1332_v36 }
 0x4de   : > { %v1341_v40 = vsel %vm1338_vm4, %v1340_v37, %v1336_v39 }
 0x4df   : > { %v1342_v41 = vmul.f32 %v5176_v59, %v1341_v40  ;;  %v5227_v59 = vmul.f32 0.35355338, %v5221_v57 }
 0x4e0   : > { %v1344_v42 = vpop.permute.xlu0 %1343 }
 0x4e1   : > { %1364 = vmatpush.msra.mxu3 %v1344_v42 }
 0x4e2   : > { %4079 = vmatmul.msk.f32.vlgmr.msra.gmra.mxu3 %vm990_vm2, %v1342_v41 }
 0x50a   : > { %v1032_v44 = vpop.f32.mrf.mxu1 }
 0x50b   : > { %v1033_v45 = vadd.f32 %v5200_v43, %v1032_v44 }
 0x50d   : > { %1420 = vrot.lane.b32.xlu2 %v1033_v45, %s4750_s28  ;;  %v1412_v54 = vmul.f32 0.5, %v1033_v45 }
 0x512   : > { %v1035_v46 = vpop.f32.mrf.mxu1 }
 0x513   : > { %v1036_v47 = vadd.f32 %v5200_v43, %v1035_v46 }
 0x515   : > { %v5205_v48 = vpack.i.bf16 %v1033_v45, %v1036_v47  ;;  %v1413_v55 = vmul.f32 0.5, %v1036_v47 }
 0x51a   : > { %v1038_v49 = vpop.f32.mrf.mxu1 }
 0x51b   : > { %v1039_v50 = vadd.f32 %v5200_v43, %v1038_v49 }
 0x51d   : > { %1424 = vrot.lane.b32.xlu0 %v1039_v50, %s4750_s28  ;;  %v1414_v58 = vmul.f32 0.5, %v1039_v50 }
 0x522   : > { %v1041_v51 = vpop.f32.mrf.mxu1 }
 0x523   : > { %v1042_v52 = vadd.f32 %v5200_v43, %v1041_v51 }
 0x525   : > { %1426 = vrot.lane.b32.xlu1 %v1042_v52, %s4750_s28  ;;  %1641 = vrot.lane.b32.xlu0 %v1042_v52, %s4759_s21  ;;  %v5212_v53 = vpack.i.bf16 %v1039_v50, %v1042_v52  ;;  %v1415_v60 = vmul.f32 0.5, %v1042_v52 }
 0x52d   : > { %1422 = vrot.lane.b32.xlu1 %v1036_v47, %s4750_s28  ;;  %1639 = vrot.lane.b32.xlu0 %v1039_v50, %s4759_s21 }
 0x535   : > { %1637 = vrot.lane.b32.xlu1 %v1036_v47, %s4759_s21  ;;  %1635 = vrot.lane.b32.xlu0 %v1033_v45, %s4759_s21 }
 0x53d   : > { %1627 = vrot.lane.b32.xlu1 %v1412_v54, %s6511_s5  ;;  %1629 = vrot.lane.b32.xlu0 %v1413_v55, %s6511_s5 }
 0x545   : > { %1631 = vrot.lane.b32.xlu1 %v1414_v58, %s6511_s5  ;;  %2543 = vrot.lane.b32.xlu0 %v5221_v57, %s4748_s4  ;;  %s4764_s4 = smov 108  }
 0x54d   : > { %2541 = vrot.lane.b32.xlu1 %v5227_v59, %s4750_s28  ;;  %1633 = vrot.lane.b32.xlu0 %v1415_v60, %s6511_s5 }
 0x554   : > { %v1210_v61 = vpop.f32.mrf.mxu2 }
 0x555   : > { %2621 = vrot.lane.b32.xlu1 %v5221_v57, %s4751_s27  ;;  %2619 = vrot.lane.b32.xlu0 %v5227_v59, %s4752_s24 }
 0x55c   : > { %v1288_v1 = vpop.f32.mrf.mxu2 }
 0x55d   : > { %2699 = vrot.lane.b32.xlu1 %v5221_v57, %s4753_s6  ;;  %2697 = vrot.lane.b32.xlu0 %v5227_v59, %s4755_s1 }
 0x565   : > { %2464 = vrot.lane.b32.xlu1 %v5221_v57, %s4749_s8  ;;  %v1366_v7 = vpop.f32.mrf.mxu3  ;;  %s4765_s8 = smov 4  }
 0x566   : > { %1378 = vrot.lane.b32.xlu0 %v1366_v7, %s4761_s11 }
 0x567   : > { %v1421_v10 = vpop.permute.xlu2 %1420 }
 0x56d   : > { %1370 = vrot.lane.b32.xlu1 %v1210_v61, %s6510_s13 }
 0x575   : > { %1374 = vrot.lane.b32.xlu1 %v1288_v1, %s4763_s26 }
 0x588   : > { %955 = vxpose.xlu0.b32.start.end [1/1] (short) (narrow) %v5186_v3, 32 }
 0x58f   : > { %v1425_v4 = vpop.permute.xlu0 %1424 }
 0x597   : > { %v1642_v5 = vpop.permute.xlu0 %1641  ;;  %v1427_v6 = vpop.permute.xlu1 %1426 }
 0x598   : > { %4081 = vmatpush.xpose.msk.msrb.mxu0 %vm1428_vm5, %v1427_v6  ;;  %4093 = vmatpush.xpose.msk.msra.mxu2 %vm1428_vm5, %v1642_v5 }
 0x59c   : > { %4082 = vmatpush.xpose.msk.msrb.mxu0 %vm1428_vm5, %v1425_v4 }
 0x59f   : > { %v1640_v8 = vpop.permute.xlu0 %1639  ;;  %v1423_v9 = vpop.permute.xlu1 %1422 }
 0x5a0   : > { %4083 = vmatpush.xpose.msk.msrb.mxu0 %vm1428_vm5, %v1423_v9  ;;  %4094 = vmatpush.xpose.msk.msra.mxu2 %vm1428_vm5, %v1640_v8 }
 0x5a4   : > { %4084 = vmatpush.xpose.msk.msrb.mxu0 %vm1428_vm5, %v1421_v10 }
 0x5a7   : > { %v1636_v3 = vpop.permute.xlu0 %1635  ;;  %4085 = vmatmul.msk.f32.vlgmr.msrb.gmra.mxu0 %vm1428_vm5, %v1412_v54  ;;  %v1638_v11 = vpop.permute.xlu1 %1637 }
 0x5a8   : > { %4095 = vmatpush.xpose.msk.msra.mxu2 %vm1428_vm5, %v1638_v11 }
 0x5ac   : > { %4096 = vmatpush.xpose.msk.msra.mxu2 %vm1428_vm5, %v1636_v3 }
 0x5af   : > { %v1630_v12 = vpop.permute.xlu0 %1629  ;;  %4086 = vmatmul.msk.f32.gmra.mxu0 %vm1428_vm5, %v1413_v55  ;;  %v1628_v13 = vpop.permute.xlu1 %1627 }
 0x5b7   : > { %v2544_v14 = vpop.permute.xlu0 %2543  ;;  %4087 = vmatmul.msk.f32.gmra.mxu0 %vm1428_vm5, %v1414_v58  ;;  %v1632_v15 = vpop.permute.xlu1 %1631 }
 0x5b8   : > { %4112 = vmatpush.xpose.msk.msra.mxu0 %vm990_vm2, %v2544_v14 }
 0x5bf   : > { %4088 = vmatmul.msk.f32.gmra.mxu0 %vm1428_vm5, %v1415_v60  ;;  %v2542_v16 = vpop.permute.xlu1 %2541  ;;  %v1634_v17 = vpop.permute.xlu0 %1633 }
 0x5c7   : > { %4113 = vmatmul.msk.f32.vlgmr.msra.gmra.mxu0 %vm990_vm2, %v2542_v16  ;;  %v2622_v18 = vpop.permute.xlu1 %2621  ;;  %v2620_v19 = vpop.permute.xlu0 %2619 }
 0x5c8   : > { %4115 = vmatpush.xpose.msk.msrb.mxu0 %vm990_vm2, %v2622_v18 }
 0x5cf   : > { %4116 = vmatmul.msk.f32.vlgmr.msrb.gmra.mxu0 %vm990_vm2, %v2620_v19  ;;  %v2700_v20 = vpop.permute.xlu1 %2699  ;;  %v2698_v21 = vpop.permute.xlu0 %2697 }
 0x5d0   : > { %4118 = vmatpush.xpose.msk.msra.mxu0 %vm990_vm2, %v2700_v20 }
 0x5d7   : > { %4119 = vmatmul.msk.f32.vlgmr.msra.gmra.mxu0 %vm990_vm2, %v2698_v21  ;;  %v2465_v22 = vpop.permute.xlu1 %2464 }
 0x5d8   : > { %v1379_v26 = vpop.permute.xlu0 %1378 }
 0x5df   : > { %v1371_v23 = vpop.permute.xlu1 %1370 }
 0x5e0   : > { %v1381_v24 = vsel %vm990_vm2, %v5160_v38, %v1371_v23 }
 0x5e7   : > { %v1375_v25 = vpop.permute.xlu1 %1374 }
 0x5e8   : > { %v1383_v27 = vsel %vm1382_vm6, %v1381_v24, %v1375_v25 }
 0x5e9   : > { %v1385_v28 = vsel %vm1384_vm7, %v1383_v27, %v1379_v26 }
 0x5ea   : > { %4080 = vmatmul.msk.f32.vlgmr.msrb.gmra.mxu2 %vm893_vm1, %v1385_v28 }
 0x5eb   : > { %4109 = vmatpush.xpose.msk.msrb.mxu2 %vm990_vm2, %v2465_v22 }
 0x5f2   : > { %4097 = vmatmul.msk.f32.vlgmr.msra.gmra.mxu2 %vm1428_vm5, %v1628_v13 }
 0x5fa   : > { %4098 = vmatmul.msk.f32.gmra.mxu2 %vm1428_vm5, %v1630_v12 }
 0x602   : > { %4099 = vmatmul.msk.f32.gmra.mxu2 %vm1428_vm5, %v1632_v15 }
 0x60a   : > { %4100 = vmatmul.msk.f32.gmra.mxu2 %vm1428_vm5, %v1634_v17 }
 0x612   : > { %4110 = vmatmul.msk.f32.vlgmr.msrb.gmra.mxu2 %vm990_vm2, %v5227_v59 }
 0x624   : > { %v5283_v38 = vpop.f32.mrf.mxu0 }
 0x625   : > { %v1478_v10 = vsel %vm893_vm1, %v5283_v38, -inf }
 0x62c   : > { %v971_v29 = vpop.trf.xlu0  ;;  %v5285_v30 = vpop.f32.mrf.mxu0 }
 0x62d   : > { %4064 = vmatmul.msk.f32.gmra.mxu1 %vm990_vm2, %v971_v29 }
 0x634   : > { %v972_v31 = vpop.trf.xlu0  ;;  %v5288_v32 = vpop.f32.mrf.mxu0 }
 0x635   : > { %4065 = vmatmul.msk.f32.gmra.mxu1 %vm990_vm2, %v972_v31  ;;  %v1484_v16 = vsel %vm893_vm1, %v5288_v32, -inf }
 0x63c   : > { %v973_v33 = vpop.trf.xlu0  ;;  %v5291_v34 = vpop.f32.mrf.mxu0 }
 0x63d   : > { %4066 = vmatmul.msk.f32.gmra.mxu1 %vm990_vm2, %v973_v33 }
 0x644   : > { %v974_v35 = vpop.trf.xlu0  ;;  %v2566_v36 = vpop.f32.mrf.mxu0 }
 0x645   : > { %4067 = vmatmul.msk.f32.gmra.mxu1 %vm990_vm2, %v974_v35  ;;  %v2569_v37 = vsel %vm990_vm2, %v2566_v36, -inf }
 0x646   : > { %2570 = vmax.xlane.f32.xlu1 %v2569_v37 }
 0x64c   : > { %v2644_v39 = vpop.f32.mrf.mxu0 }
 0x64d   : > { %v2647_v47 = vsel %vm990_vm2, %v2644_v39, -inf }
 0x654   : > { %v2722_v40 = vpop.f32.mrf.mxu0 }
 0x655   : > { %v2725_v41 = vsel %vm990_vm2, %v2722_v40, -inf }
 0x656   : > { %2726 = vmax.xlane.f32.xlu2 %v2725_v41 }
 0x65f   : > { %4277 = vrot.lane.b32.xlu1 %v5212_v53, %s4764_s4 }
 0x66d   : > { %v5299_v42 = vpop.f32.mrf.mxu2 }
 0x66e   : > { %4282 = vrot.lane.b32.xlu2 %v5205_v48, %s4764_s4 }
 0x675   : > { %v5303_v44 = vpop.f32.mrf.mxu2 }
 0x676   : > { %2749 = vrot.lane.b32.xlu2 %v5221_v57, %s4758_s3  ;;  %v1688_v6 = vsel %vm893_vm1, %v5303_v44, -inf }
 0x67d   : > { %v5307_v45 = vpop.f32.mrf.mxu2 }
 0x67e   : > { %v1691_v46 = vsel %vm893_vm1, %v5307_v45, -inf }
 0x67f   : > { %1692 = vmax.xlane.f32.xlu0 %v1691_v46 }
 0x685   : > { %v1682_v21 = vpop.f32.mrf.mxu2 }
 0x689   : > { %2648 = vmax.xlane.f32.xlu1 %v2647_v47 }
 0x68d   : > { %v1685_v22 = vpop.f32.mrf.mxu2 }
 0x68e   : > { %v1697_v23 = vsel %vm893_vm1, %v1685_v22, -inf }
 0x695   : > { %v2488_v24 = vpop.f32.mrf.mxu2 }
 0x696   : > { %v2491_v25 = vsel %vm990_vm2, %v2488_v24, -inf }
 0x6aa   : > { %v1044_v49 = vpop.f32.mrf.mxu1 }
 0x6ab   : > { %v5342_v18 = vadd.f32 %v5200_v43, %v1044_v49 }
 0x6ad   : > { %v5382_v46 = vmul.f32 0.5, %v5342_v18 }
 0x6b2   : > { %v1047_v50 = vpop.f32.mrf.mxu1 }
 0x6b3   : > { %v5335_v14 = vadd.f32 %v5200_v43, %v1047_v50 }
 0x6b9   : > { %v2571_v55 = vpop.xlane.xlu1 %2570 }
 0x6ba   : > { %v1050_v51 = vpop.f32.mrf.mxu1  ;;  %v2572_v8 = vsub.f32 %v2566_v36, %v2571_v55 }
 0x6bb   : > { %v5328_v11 = vadd.f32 %v5200_v43, %v1050_v51 }
 0x6bc   : > { %v2573_v9 = vmul.f32 1.442695, %v2572_v8 }
 0x6c2   : > { %v1053_v52 = vpop.f32.mrf.mxu1 }
 0x6c3   : > { %v5313_v54 = vadd.f32 %v5200_v43, %v1053_v52  ;;  %v1694_v43 = vsel %vm893_vm1, %v1682_v21, -inf }
 0x6c5   : > { %3041 = vrot.lane.b32.xlu0 %v5313_v54, %s4759_s21 }
 0x6c9   : > { %v2727_v56 = vpop.xlane.xlu2 %2726 }
 0x6ca   : > { %v2728_v58 = vsub.f32 %v2722_v40, %v2727_v56 }
 0x6cc   : > { %v2729_v59 = vmul.f32 1.442695, %v2728_v58 }
 0x6ce   : > { %4340 = vpow2.f32 %v2729_v59 }
 0x6cf   : > { %4342 = vpow2.f32 %v2573_v9 }
 0x6d1   : > { %v4283_v60 = vpop.permute.xlu2 %4282  ;;  %v4278_v7 = vpop.permute.xlu1 %4277 }
 0x6d2   : > { %v4279_v61 = vunpack.i.l.bf16 %v4278_v7  ;;  %v4280_v63 = vunpack.i.h.bf16 %v4278_v7  ;;  %v4284_v1 = vunpack.i.l.bf16 %v4283_v60  ;;  %v4285_v4 = vunpack.i.h.bf16 %v4283_v60 }
 0x6d3   : > { %v1481_v7 = vsel %vm893_vm1, %v5285_v30, -inf }
 0x6d4   : > { %v5317_v62 = vpop.eup %4340  ;;  %1820 = vmatpush.msrb.mxu1 %v4279_v61 }
 0x6d5   : > { %v2731_v0 = vsel %vm990_vm2, %v5317_v62, 0.0  ;;  %v5325_v3 = vpop.eup %4342 }
 0x6d6   : > { %2732 = vadd.xlane.f32.xlu1 %v2731_v0  ;;  %1821 = vmatpush.msrb.mxu1 %v4280_v63  ;;  %v2575_v12 = vsel %vm990_vm2, %v5325_v3, 0.0 }
 0x6d8   : > { %1822 = vmatpush.msrb.mxu1 %v4284_v1 }
 0x6d9   : > { %v2750_v5 = vpop.permute.xlu2 %2749 }
 0x6da   : > { %1823 = vmatpush.msrb.mxu1 %v4285_v4 }
 0x6dc   : > { %2770 = vmatpush.msra.mxu1 %v2750_v5 }
 0x6de   : > { %1689 = vmax.xlane.f32.xlu1 %v1688_v6 }
 0x6ef   : > { %1479 = vmax.xlane.f32.xlu0 %v1478_v10 }
 0x6f2   : > { %v1693_v27 = vpop.xlane.xlu0 %1692 }
 0x6f3   : > { %v1701_v31 = vsub.f32 %v5307_v45, %v1693_v27 }
 0x6f5   : > { %v1706_v35 = vmul.f32 1.442695, %v1701_v31 }
 0x6f7   : > { %3039 = vrot.lane.b32.xlu1 %v5328_v11, %s4759_s21  ;;  %2576 = vadd.xlane.f32.xlu0 %v2575_v12 }
 0x6fc   : > { %v2649_v13 = vpop.xlane.xlu1 %2648 }
 0x6fd   : > { %v2650_v15 = vsub.f32 %v2644_v39, %v2649_v13 }
 0x6ff   : > { %v2651_v17 = vmul.f32 1.442695, %v2650_v15  ;;  %3037 = vrot.lane.b32.xlu1 %v5335_v14, %s4759_s21  ;;  %1485 = vmax.xlane.f32.xlu0 %v1484_v16  ;;  %v5411_v15 = vmul.f32 0.5, %v5328_v11  ;;  %v5416_v16 = vmul.f32 0.5, %v5313_v54 }
 0x701   : > { %4344 = vpow2.f32 %v2651_v17 }
 0x707   : > { %v5344_v19 = vpop.eup %4344  ;;  %3035 = vrot.lane.b32.xlu1 %v5342_v18, %s4759_s21 }
 0x708   : > { %v2653_v20 = vsel %vm990_vm2, %v5344_v19, 0.0 }
 0x709   : > { %2654 = vadd.xlane.f32.xlu0 %v2653_v20  ;;  %v5423_v20 = vmul.f32 0.5, %v5335_v14 }
 0x71d   : > { %2515 = vrot.lane.b32.xlu0 %v5221_v57, %s4754_s20 }
 0x725   : > { %2593 = vrot.lane.b32.xlu0 %v5221_v57, %s4757_s0  ;;  %s6561_s0 = scalar_lea.vmem [#allocation14], %s5066_s22 }
 0x72d   : > { %2827 = vrot.lane.b32.xlu0 %v5313_v54, %s4750_s28 }
 0x731   : > { %1695 = vmax.xlane.f32.xlu1 %v1694_v43 }
 0x735   : > { %2825 = vrot.lane.b32.xlu0 %v5328_v11, %s4750_s28 }
 0x737   : > { %v5371_v39 = vpop.permute.xlu0 %3041 }
 0x739   : > { %1698 = vmax.xlane.f32.xlu1 %v1697_v23 }
 0x73d   : > { %2823 = vrot.lane.b32.xlu0 %v5335_v14, %s4750_s28 }
 0x741   : > { %2492 = vmax.xlane.f32.xlu1 %v2491_v25 }
 0x749   : > { %v5363_v26 = vpop.xlane.xlu1 %2732 }
 0x751   : > { %v1690_v28 = vpop.xlane.xlu1 %1689 }
 0x752   : > { %v1700_v29 = vsub.f32 %v5303_v44, %v1690_v28 }
 0x754   : > { %v1704_v33 = vmul.f32 1.442695, %v1700_v29 }
 0x756   : > { %4346 = vpow2.f32 %v1704_v33 }
 0x757   : > { %4348 = vpow2.f32 %v1706_v35 }
 0x75c   : > { %v5367_v36 = vpop.eup %4346 }
 0x75d   : > { %v1712_v37 = vsel %vm893_vm1, %v5367_v36, 0.0  ;;  %v5373_v40 = vpop.eup %4348 }
 0x75e   : > { %1713 = vadd.xlane.f32.xlu1 %v1712_v37  ;;  %v1715_v41 = vsel %vm893_vm1, %v5373_v40, 0.0 }
 0x762   : > { %v5377_v44 = vpop.xlane.xlu0 %1479 }
 0x766   : > { %1716 = vadd.xlane.f32.xlu1 %v1715_v41 }
 0x769   : > { %v5390_v50 = vpop.permute.xlu1 %3039 }
 0x76a   : > { %v5379_v45 = vpop.xlane.xlu0 %2576 }
 0x771   : > { %v5392_v52 = vpop.permute.xlu1 %3037 }
 0x772   : > { %v5384_v47 = vpop.xlane.xlu0 %1485 }
 0x779   : > { %v5394_v56 = vpop.permute.xlu1 %3035 }
 0x77c   : > { %v5388_v49 = vpop.xlane.xlu0 %2654 }
 0x77f   : > { %3027 = vrot.lane.b32.xlu1 %v5382_v46, %s6511_s5 }
 0x78f   : > { %v2516_v51 = vpop.permute.xlu0 %2515 }
 0x790   : > { %2536 = vmatpush.msra.mxu2 %v2516_v51 }
 0x797   : > { %v2594_v55 = vpop.permute.xlu0 %2593 }
 0x798   : > { %2614 = vmatpush.msrb.mxu2 %v2594_v55 }
 0x7a4   : > { %v1696_v58 = vpop.xlane.xlu1 %1695 }
 0x7a5   : > { %v1702_v59 = vsub.f32 %v1682_v21, %v1696_v58 }
 0x7a7   : > { %v1708_v60 = vmul.f32 1.442695, %v1702_v59 }
 0x7a9   : > { %4350 = vpow2.f32 %v1708_v60  ;;  %1482 = vmax.xlane.f32.xlu1 %v1481_v7 }
 0x7ac   : > { %v1699_v61 = vpop.xlane.xlu1 %1698 }
 0x7ad   : > { %v1703_v63 = vsub.f32 %v1685_v22, %v1699_v61 }
 0x7af   : > { %v5398_v0 = vpop.eup %4350  ;;  %v1710_v1 = vmul.f32 1.442695, %v1703_v63 }
 0x7b0   : > { %v1718_v4 = vsel %vm893_vm1, %v5398_v0, 0.0 }
 0x7b1   : > { %4352 = vpow2.f32 %v1710_v1  ;;  %1719 = vadd.xlane.f32.xlu2 %v1718_v4 }
 0x7b4   : > { %v2493_v5 = vpop.xlane.xlu1 %2492 }
 0x7b5   : > { %v2494_v6 = vsub.f32 %v2488_v24, %v2493_v5 }
 0x7b7   : > { %v5402_v8 = vpop.eup %4352  ;;  %v2495_v9 = vmul.f32 1.442695, %v2494_v6 }
 0x7b8   : > { %v1721_v10 = vsel %vm893_vm1, %v5402_v8, 0.0 }
 0x7b9   : > { %4354 = vpow2.f32 %v2495_v9  ;;  %1722 = vadd.xlane.f32.xlu2 %v1721_v10 }
 0x7bf   : > { %v5406_v12 = vpop.eup %4354 }
 0x7c0   : > { %v2497_v13 = vsel %vm990_vm2, %v5406_v12, 0.0 }
 0x7c1   : > { %2498 = vadd.xlane.f32.xlu2 %v2497_v13 }
 0x7c2   : > { %3031 = vrot.lane.b32.xlu1 %v5411_v15, %s6511_s5 }
 0x7ca   : > { %3033 = vrot.lane.b32.xlu1 %v5416_v16, %s6511_s5 }
 0x7d1   : > { %v1714_v17 = vpop.xlane.xlu1 %1713 }
 0x7d2   : > { %4356 = vrcp.f32 %v1714_v17  ;;  %2671 = vrot.lane.b32.xlu1 %v5221_v57, %s4756_s25  ;;  %v1735_v24 = vand.u32 2147483648, %v1714_v17  ;;  %v1733_v27 = vand.u32 2147483647, %v1714_v17  ;;  %vm1729_vm9 = vweird.f32 %v1714_v17 }
 0x7d4   : > { %v1736_v29 = vor.u32 1.1754944e-38, %v1735_v24  ;;  %vm1734_vm11 = vcmp.eq.f32.partialorder %v1733_v27, 8.507059e+37 }
 0x7d8   : > { %v4357_v21 = vpop.eup %4356 }
 0x7d9   : > { %v1725_v43 = vmul.f32 %v4357_v21, %v1714_v17  ;;  %3029 = vrot.lane.b32.xlu2 %v5423_v20, %s6511_s5  ;;  %v1717_v22 = vpop.xlane.xlu1 %1716  ;;  %vm1730_vm8 = vweird.f32 %v4357_v21 }
 0x7da   : > { %4358 = vrcp.f32 %v1717_v22  ;;  %2821 = vrot.lane.b32.xlu1 %v5342_v18, %s4750_s28  ;;  %vm1731_vm10 = vmor %vm1729_vm9, %vm1730_vm8  ;;  %v1750_v51 = vand.u32 2147483648, %v1717_v22  ;;  %v1748_v58 = vand.u32 2147483647, %v1717_v22  ;;  %vm1744_vm13 = vweird.f32 %v1717_v22  ;;  %s6514_s28 = smov 127  }
 0x7db   : > { %v1726_v23 = vsub.f32 1.0, %v1725_v43 }
 0x7dc   : > { %v1751_v60 = vor.u32 1.1754944e-38, %v1750_v51  ;;  %vm1749_vm15 = vcmp.eq.f32.partialorder %v1748_v58, 8.507059e+37 }
 0x7dd   : > { %v1727_v25 = vmul.f32 %v4357_v21, %v1726_v23 }
 0x7df   : > { %v1728_v28 = vadd.f32 %v4357_v21, %v1727_v25 }
 0x7e0   : > { %v4359_v57 = vpop.eup %4358 }
 0x7e1   : > { %v1740_v31 = vmul.f32 %v4359_v57, %v1717_v22  ;;  %v1732_v33 = vsel %vm1731_vm10, %v4357_v21, %v1728_v28  ;;  %vm1745_vm12 = vweird.f32 %v4359_v57 }
 0x7e2   : > { %4287 = vrot.lane.b32.xlu1 %v5212_v53, %s4752_s24  ;;  %v1737_v35 = vsel %vm1734_vm11, %v1736_v29, %v1732_v33  ;;  %vm1746_vm14 = vmor %vm1744_vm13, %vm1745_vm12 }
 0x7e3   : > { %v1741_v37 = vsub.f32 1.0, %v1740_v31  ;;  %v1738_v41 = vmul.f32 %v5367_v36, %v1737_v35 }
 0x7e5   : > { %v1742_v55 = vmul.f32 %v4359_v57, %v1741_v37  ;;  %4101 = vmatmul.msk.f32.vlgmr.msrb.gmra.mxu1 %vm893_vm1, %v1738_v41 }
 0x7e6   : > { %4134 = vmatpush.xpose.msk.msrb.mxu1 %vm1428_vm5, %v5371_v39  ;;  %v1490_v39 = vsub.f32 %v5283_v38, %v5377_v44 }
 0x7e7   : > { %v1743_v59 = vadd.f32 %v4359_v57, %v1742_v55 }
 0x7e8   : > { %v1494_v61 = vmul.f32 1.442695, %v1490_v39 }
 0x7e9   : > { %v1747_v7 = vsel %vm1746_vm14, %v4359_v57, %v1743_v59  ;;  %vm2739_vm14 = vweird.f32 %v5363_v26 }
 0x7ea   : > { %4135 = vmatpush.xpose.msk.msrb.mxu1 %vm1428_vm5, %v5390_v50  ;;  %4292 = vrot.lane.b32.xlu1 %v5205_v48, %s4752_s24  ;;  %v1752_v53 = vsel %vm1749_vm15, %v1751_v60, %v1747_v7  ;;  %4360 = vpow2.f32 %v1494_v61  ;;  %v1492_v50 = vsub.f32 %v5288_v32, %v5384_v47  ;;  %v1487_v48 = vsel %vm893_vm1, %v5291_v34, -inf }
 0x7eb   : > { %v1753_v36 = vmul.f32 %v5373_v40, %v1752_v53  ;;  %v5484_v53 = vpack.i.bf16 %v5328_v11, %v5313_v54  ;;  %v2745_v54 = vand.u32 2147483648, %v5363_v26 }
 0x7ec   : > { %v1498_v40 = vmul.f32 1.442695, %v1492_v50 }
 0x7ed   : > { %4102 = vmatmul.msk.f32.gmra.mxu1 %vm893_vm1, %v1753_v36 }
 0x7ee   : > { %4136 = vmatpush.xpose.msk.msrb.mxu1 %vm1428_vm5, %v5392_v52  ;;  %4362 = vpow2.f32 %v1498_v40 }
 0x7f0   : > { %v5451_v63 = vpop.eup %4360 }
 0x7f1   : > { %v1502_v52 = vsel %vm893_vm1, %v5451_v63, 0.0  ;;  %v5459_v44 = vpop.permute.xlu1 %3027 }
 0x7f2   : > { %4137 = vmatpush.xpose.msk.msrb.mxu1 %vm1428_vm5, %v5394_v56 }
 0x7f4   : > { %v5455_v56 = vpop.eup %4362 }
 0x7f5   : > { %v1508_v38 = vsel %vm893_vm1, %v5455_v56, 0.0 }
 0x802   : > { %1488 = vmax.xlane.f32.xlu2 %v1487_v48 }
 0x80a   : > { %1503 = vadd.xlane.f32.xlu2 %v1502_v52 }
 0x812   : > { %1509 = vadd.xlane.f32.xlu2 %v1508_v38 }
 0x81c   : > { %v1483_v32 = vpop.xlane.xlu1 %1482 }
 0x81d   : > { %v1491_v47 = vsub.f32 %v5285_v30, %v1483_v32 }
 0x81f   : > { %v1496_v1 = vmul.f32 1.442695, %v1491_v47  ;;  %v2743_v47 = vand.u32 2147483647, %v5363_v26 }
 0x821   : > { %4364 = vpow2.f32 %v1496_v1 }
 0x822   : > { %4366 = vrcp.f32 %v5363_v26 }
 0x824   : > { %v1720_v4 = vpop.xlane.xlu2 %1719 }
 0x825   : > { %4368 = vrcp.f32 %v1720_v4  ;;  %v1765_v22 = vand.u32 2147483648, %v1720_v4  ;;  %v1763_v23 = vand.u32 2147483647, %v1720_v4  ;;  %vm1759_vm3 = vweird.f32 %v1720_v4 }
 0x827   : > { %v5463_v5 = vpop.eup %4364  ;;  %v1766_v35 = vor.u32 1.1754944e-38, %v1765_v22  ;;  %vm1764_vm8 = vcmp.eq.f32.partialorder %v1763_v23, 8.507059e+37 }
 0x828   : > { %v1505_v6 = vsel %vm893_vm1, %v5463_v5, 0.0  ;;  %v5467_v9 = vpop.eup %4366 }
 0x829   : > { %1506 = vadd.xlane.f32.xlu0 %v1505_v6  ;;  %v2735_v30 = vmul.f32 %v5467_v9, %v5363_v26  ;;  %vm2740_vm11 = vweird.f32 %v5467_v9 }
 0x82a   : > { %vm5496_vm15 = vmor %vm2739_vm14, %vm2740_vm11  ;;  %vm2583_vm11 = vweird.f32 %v5379_v45 }
 0x82b   : > { %v4369_v10 = vpop.eup %4368  ;;  %v2736_v24 = vsub.f32 1.0, %v2735_v30 }
 0x82c   : > { %v1755_v13 = vmul.f32 %v4369_v10, %v1720_v4  ;;  %v1723_v17 = vpop.xlane.xlu2 %1722  ;;  %vm1760_vm0 = vweird.f32 %v4369_v10 }
 0x82d   : > { %4370 = vrcp.f32 %v1723_v17  ;;  %vm1761_vm4 = vmor %vm1759_vm3, %vm1760_vm0  ;;  %v2737_v37 = vmul.f32 %v5467_v9, %v2736_v24  ;;  %v1780_v59 = vand.u32 2147483648, %v1723_v17  ;;  %v1778_v7 = vand.u32 2147483647, %v1723_v17  ;;  %v2828_v24 = vpop.permute.xlu0 %2827 }
 0x82e   : > { %4372 = vrcp.f32 %v5379_v45  ;;  %v1756_v21 = vsub.f32 1.0, %v1755_v13  ;;  %vm1774_vm10 = vweird.f32 %v1723_v17  ;;  %vm2744_vm3 = vcmp.eq.f32.partialorder %v2743_v47, 8.507059e+37 }
 0x82f   : > { %v2738_v61 = vadd.f32 %v5467_v9, %v2737_v37  ;;  %vm1779_vm13 = vcmp.eq.f32.partialorder %v1778_v7, 8.507059e+37 }
 0x830   : > { %v1757_v43 = vmul.f32 %v4369_v10, %v1756_v21 }
 0x831   : > { %v2742_v6 = vsel %vm5496_vm15, %v5467_v9, %v2738_v61  ;;  %vm2661_vm15 = vweird.f32 %v5388_v49 }
 0x832   : > { %v1758_v25 = vadd.f32 %v4369_v10, %v1757_v43  ;;  %v2746_v43 = vor.u32 1.1754944e-38, %v2745_v54 }
 0x833   : > { %v4371_v27 = vpop.eup %4370 }
 0x834   : > { %v5472_v28 = vpop.eup %4372  ;;  %v1770_v57 = vmul.f32 %v4371_v27, %v1723_v17  ;;  %v2499_v29 = vpop.xlane.xlu2 %2498  ;;  %v1762_v33 = vsel %vm1761_vm4, %v4369_v10, %v1758_v25  ;;  %vm1775_vm9 = vweird.f32 %v4371_v27  ;;  %v2747_v9 = vsel %vm2744_vm3, %v2746_v43, %v2742_v6 }
 0x835   : > { %v5474_v31 = vpop.permute.xlu1 %3031  ;;  %4374 = vrcp.f32 %v2499_v29  ;;  %v1767_v51 = vsel %vm1764_vm8, %v1766_v35, %v1762_v33  ;;  %v2579_v55 = vmul.f32 %v5472_v28, %v5379_v45  ;;  %vm1776_vm12 = vmor %vm1774_vm10, %vm1775_vm9  ;;  %v2511_v13 = vand.u32 2147483648, %v2499_v29 }
 0x836   : > { %v1771_v41 = vsub.f32 1.0, %v1770_v57  ;;  %4376 = vrcp.f32 %v5388_v49  ;;  %v1768_v58 = vmul.f32 %v5398_v0, %v1767_v51  ;;  %v1781_v0 = vor.u32 1.1754944e-38, %v1780_v59 }
 0x837   : > { %v2580_v50 = vsub.f32 1.0, %v2579_v55  ;;  %v2509_v21 = vand.u32 2147483647, %v2499_v29  ;;  %vm2505_vm4 = vweird.f32 %v2499_v29  ;;  %vm2584_vm8 = vweird.f32 %v5472_v28 }
 0x838   : > { %v1772_v60 = vmul.f32 %v4371_v27, %v1771_v41  ;;  %4103 = vmatmul.msk.f32.gmra.mxu1 %vm893_vm1, %v1768_v58  ;;  %v2589_v57 = vand.u32 2147483648, %v5379_v45  ;;  %v2587_v35 = vand.u32 2147483647, %v5379_v45  ;;  %v2748_v37 = vmul.f32 %v5317_v62, %v2747_v9 }
 0x839   : > { %v2581_v10 = vmul.f32 %v5472_v28, %v2580_v50  ;;  %vm2510_vm10 = vcmp.eq.f32.partialorder %v2509_v21, 8.507059e+37  ;;  %v2667_v59 = vand.u32 2147483648, %v5388_v49  ;;  %v2665_v62 = vand.u32 2147483647, %v5388_v49 }
 0x83a   : > { %v1773_v36 = vadd.f32 %v4371_v27, %v1772_v60  ;;  %v2590_v55 = vor.u32 1.1754944e-38, %v2589_v57 }
 0x83b   : > { %v4375_v39 = vpop.eup %4374  ;;  %v2582_v22 = vadd.f32 %v5472_v28, %v2581_v10  ;;  %vm2666_vm3 = vcmp.eq.f32.partialorder %v2665_v62, 8.507059e+37 }
 0x83c   : > { %v2501_v48 = vmul.f32 %v4375_v39, %v2499_v29  ;;  %v1777_v52 = vsel %vm1776_vm12, %v4371_v27, %v1773_v36  ;;  %v5490_v38 = vpop.eup %4376  ;;  %vm2506_vm0 = vweird.f32 %v4375_v39  ;;  %vm2585_vm12 = vmor %vm2583_vm11, %vm2584_vm8  ;;  %v2668_v36 = vor.u32 1.1754944e-38, %v2667_v59 }
 0x83d   : > { %v5488_v40 = vpop.permute.xlu1 %3033  ;;  %4297 = vrot.lane.b32.xlu0 %v5484_v53, %s4764_s4  ;;  %v1782_v11 = vsel %vm1779_vm13, %v1781_v0, %v1777_v52  ;;  %v2657_v17 = vmul.f32 %v5490_v38, %v5388_v49  ;;  %vm2507_vm9 = vmor %vm2505_vm4, %vm2506_vm0  ;;  %v2586_v41 = vsel %vm2585_vm12, %v5472_v28, %v2582_v22  ;;  %vm2588_vm13 = vcmp.eq.f32.partialorder %v2587_v35, 8.507059e+37  ;;  %v2826_v28 = vpop.permute.xlu0 %2825 }
 0x83e   : > { %v2502_v1 = vsub.f32 1.0, %v2501_v48  ;;  %v1783_v4 = vmul.f32 %v5402_v8, %v1782_v11  ;;  %v2512_v8 = vor.u32 1.1754944e-38, %v2511_v13  ;;  %v2591_v58 = vsel %vm2588_vm13, %v2590_v55, %v2586_v41  ;;  %v3030_v0 = vpop.permute.xlu2 %3029 }
 0x83f   : > { %v2658_v23 = vsub.f32 1.0, %v2657_v17  ;;  %vm2662_vm14 = vweird.f32 %v5490_v38  ;;  %v2592_v60 = vmul.f32 %v5325_v3, %v2591_v58 }
 0x840   : > { %v2503_v30 = vmul.f32 %v4375_v39, %v2502_v1  ;;  %4104 = vmatmul.msk.f32.gmra.mxu1 %vm893_vm1, %v1783_v4  ;;  %vm2663_vm0 = vmor %vm2661_vm15, %vm2662_vm14 }
 0x841   : > { %v2659_v51 = vmul.f32 %v5490_v38, %v2658_v23 }
 0x842   : > { %v2504_v26 = vadd.f32 %v4375_v39, %v2503_v30 }
 0x843   : > { %v2660_v45 = vadd.f32 %v5490_v38, %v2659_v51 }
 0x844   : > { %v2508_v25 = vsel %vm2507_vm9, %v4375_v39, %v2504_v26 }
 0x845   : > { %v2672_v27 = vpop.permute.xlu1 %2671  ;;  %v2513_v33 = vsel %vm2510_vm10, %v2512_v8, %v2508_v25  ;;  %v2664_v7 = vsel %vm2663_vm0, %v5490_v38, %v2660_v45  ;;  %v2824_v3 = vpop.permute.xlu0 %2823 }
 0x846   : > { %v2514_v29 = vmul.f32 %v5406_v12, %v2513_v33  ;;  %v2669_v39 = vsel %vm2666_vm3, %v2668_v36, %v2664_v7 }
 0x847   : > { %v2670_v50 = vmul.f32 %v5344_v19, %v2669_v39 }
 0x848   : > { %4111 = vmatmul.msk.f32.vlgmr.msra.gmra.mxu2 %vm990_vm2, %v2514_v29  ;;  %4120 = vmatmul.msk.f32.vlgmr.msra.gmra.mxu1 %vm990_vm2, %v2748_v37 }
 0x849   : > { %2692 = vmatpush.msra.mxu2 %v2672_v27 }
 0x84d   : > { %v2822_v12 = vpop.permute.xlu1 %2821 }
 0x850   : > { %4114 = vmatmul.msk.f32.vlgmr.msrb.gmra.mxu2 %vm990_vm2, %v2592_v60  ;;  %4138 = vmatmul.msk.f32.vlgmr.msrb.gmra.mxu1 %vm1428_vm5, %v5459_v44 }
 0x851   : > { %4122 = vmatpush.xpose.msk.msrb.mxu2 %vm1428_vm5, %v2828_v24 }
 0x855   : > { %v4288_v61 = vpop.permute.xlu1 %4287  ;;  %4123 = vmatpush.xpose.msk.msrb.mxu2 %vm1428_vm5, %v2826_v28 }
 0x856   : > { %v4289_v49 = vunpack.i.l.bf16 %v4288_v61  ;;  %v4290_v48 = vunpack.i.h.bf16 %v4288_v61 }
 0x858   : > { %1610 = vmatpush.msrb.mxu3 %v4289_v49  ;;  %4117 = vmatmul.msk.f32.vlgmr.msra.gmra.mxu2 %vm990_vm2, %v2670_v50 }
 0x859   : > { %4124 = vmatpush.xpose.msk.msrb.mxu2 %vm1428_vm5, %v2824_v3  ;;  %4139 = vmatmul.msk.f32.gmra.mxu1 %vm1428_vm5, %v3030_v0 }
 0x85a   : > { %1611 = vmatpush.msrb.mxu3 %v4290_v48 }
 0x85d   : > { %v4293_v44 = vpop.permute.xlu1 %4292  ;;  %4125 = vmatpush.xpose.msk.msrb.mxu2 %vm1428_vm5, %v2822_v12 }
 0x85e   : > { %v4294_v52 = vunpack.i.l.bf16 %v4293_v44  ;;  %v4295_v38 = vunpack.i.h.bf16 %v4293_v44 }
 0x860   : > { %1612 = vmatpush.msrb.mxu3 %v4294_v52  ;;  %4126 = vmatmul.msk.f32.vlgmr.msrb.gmra.mxu2 %vm1428_vm5, %v5382_v46  ;;  %v5588_v52 = vld [vmem:[%s5084_s9] sm:$0xff]  ;;  %s6516_s9 = smov 126  }
 0x861   : > { %4140 = vmatmul.msk.f32.gmra.mxu1 %vm1428_vm5, %v5474_v31 }
 0x862   : > { %1613 = vmatpush.msrb.mxu3 %v4295_v38  ;;  %v1825_v19 = vpop.f32.mrf.mxu1 }
 0x863   : > { %1841 = vrot.lane.b32.xlu0 %v1825_v19, %s4765_s8  ;;  %v4430_v19 = vld [vmem:[%s5076_s15 + $0x18] sm:$0xff] }
 0x864   : > { %1887 = vmatpush.msra.mxu3 %v5588_v52 }
 0x868   : > { %4127 = vmatmul.msk.f32.gmra.mxu2 %vm1428_vm5, %v5423_v20 }
 0x869   : > { %4141 = vmatmul.msk.f32.gmra.mxu1 %vm1428_vm5, %v5488_v40 }
 0x86a   : > { %v1828_v21 = vpop.f32.mrf.mxu1 }
 0x870   : > { %4128 = vmatmul.msk.f32.gmra.mxu2 %vm1428_vm5, %v5411_v15 }
 0x875   : > { %v1489_v54 = vpop.xlane.xlu2 %1488 }
 0x876   : > { %v1493_v46 = vsub.f32 %v5291_v34, %v1489_v54  ;;  %v4431_v54 = vld [vmem:[%s5076_s15 + $0x10] sm:$0xff] }
 0x878   : > { %v1500_v11 = vmul.f32 1.442695, %v1493_v46  ;;  %4129 = vmatmul.msk.f32.gmra.mxu2 %vm1428_vm5, %v5416_v16 }
 0x87a   : > { %4378 = vpow2.f32 %v1500_v11  ;;  %v4432_v11 = vld [vmem:[%s5076_s15 + $0x8] sm:$0xff] }
 0x87d   : > { %v1504_v31 = vpop.xlane.xlu2 %1503 }
 0x87e   : > { %4380 = vrcp.f32 %v1504_v31  ;;  %v1525_v15 = vand.u32 2147483648, %v1504_v31  ;;  %v1523_v34 = vand.u32 2147483647, %v1504_v31  ;;  %vm1519_vm8 = vweird.f32 %v1504_v31 }
 0x880   : > { %v5553_v32 = vpop.eup %4378  ;;  %v1526_v16 = vor.u32 1.1754944e-38, %v1525_v15  ;;  %vm1524_vm10 = vcmp.eq.f32.partialorder %v1523_v34, 8.507059e+37 }
 0x881   : > { %v1511_v20 = vsel %vm893_vm1, %v5553_v32, 0.0 }
 0x882   : > { %1512 = vadd.xlane.f32.xlu2 %v1511_v20 }
 0x884   : > { %v4381_v40 = vpop.eup %4380 }
 0x885   : > { %v1515_v47 = vmul.f32 %v4381_v40, %v1504_v31  ;;  %vm1520_vm4 = vweird.f32 %v4381_v40  ;;  %v1510_v30 = vpop.xlane.xlu2 %1509 }
 0x886   : > { %vm1521_vm9 = vmor %vm1519_vm8, %vm1520_vm4  ;;  %4382 = vrcp.f32 %v1510_v30  ;;  %v1555_v51 = vand.u32 2147483648, %v1510_v30  ;;  %vm1549_vm0 = vweird.f32 %v1510_v30  ;;  %v1553_v58 = vand.u32 2147483647, %v1510_v30 }
 0x887   : > { %v1516_v1 = vsub.f32 1.0, %v1515_v47 }
 0x888   : > { %v1556_v12 = vor.u32 1.1754944e-38, %v1555_v51  ;;  %vm1554_vm4 = vcmp.eq.f32.partialorder %v1553_v58, 8.507059e+37 }
 0x889   : > { %v1517_v4 = vmul.f32 %v4381_v40, %v1516_v1 }
 0x88b   : > { %v1518_v6 = vadd.f32 %v4381_v40, %v1517_v4 }
 0x88c   : > { %v4383_v26 = vpop.eup %4382 }
 0x88d   : > { %v1522_v10 = vsel %vm1521_vm9, %v4381_v40, %v1518_v6  ;;  %v1545_v8 = vmul.f32 %v4383_v26, %v1510_v30  ;;  %vm1550_vm15 = vweird.f32 %v4383_v26 }
 0x88e   : > { %v1527_v13 = vsel %vm1524_vm10, %v1526_v16, %v1522_v10  ;;  %vm1551_vm3 = vmor %vm1549_vm0, %vm1550_vm15 }
 0x88f   : > { %v1528_v17 = vmul.f32 %v5451_v63, %v1527_v13  ;;  %v1546_v22 = vsub.f32 1.0, %v1545_v8 }
 0x891   : > { %4089 = vmatmul.msk.f32.vlgmr.msrb.gmra.mxu3 %vm893_vm1, %v1528_v17  ;;  %v1547_v63 = vmul.f32 %v4383_v26, %v1546_v22 }
 0x892   : > { %2805 = vmatpush.msrb.mxu3 %v4430_v19 }
 0x893   : > { %v1548_v37 = vadd.f32 %v4383_v26, %v1547_v63 }
 0x894   : > { %2806 = vmatpush.msrb.mxu3 %v4431_v54 }
 0x895   : > { %v1552_v45 = vsel %vm1551_vm3, %v4383_v26, %v1548_v37 }
 0x896   : > { %v1557_v59 = vsel %vm1554_vm4, %v1556_v12, %v1552_v45  ;;  %2807 = vmatpush.msrb.mxu3 %v4432_v11 }
 0x897   : > { %v1558_v28 = vmul.f32 %v5455_v56, %v1557_v59 }
 0x898   : > { %2808 = vmatpush.msrb.mxu3 %v5249_v2 }
 0x89a   : > { %1843 = vrot.lane.b32.xlu2 %v1828_v21, %s4765_s8 }
 0x89c   : > { %v1507_v43 = vpop.xlane.xlu0 %1506 }
 0x89d   : > { %4384 = vrcp.f32 %v1507_v43  ;;  %v1540_v25 = vand.u32 2147483648, %v1507_v43  ;;  %v1538_v57 = vand.u32 2147483647, %v1507_v43  ;;  %vm1534_vm12 = vweird.f32 %v1507_v43 }
 0x89f   : > { %v1541_v35 = vor.u32 1.1754944e-38, %v1540_v25  ;;  %vm1539_vm14 = vcmp.eq.f32.partialorder %v1538_v57, 8.507059e+37 }
 0x8a3   : > { %v4385_v9 = vpop.eup %4384 }
 0x8a4   : > { %v1530_v23 = vmul.f32 %v4385_v9, %v1507_v43  ;;  %vm1535_vm11 = vweird.f32 %v4385_v9 }
 0x8a5   : > { %vm1536_vm13 = vmor %vm1534_vm12, %vm1535_vm11 }
 0x8a6   : > { %v1531_v24 = vsub.f32 1.0, %v1530_v23 }
 0x8a8   : > { %v1532_v27 = vmul.f32 %v4385_v9, %v1531_v24 }
 0x8aa   : > { %v1533_v33 = vadd.f32 %v4385_v9, %v1532_v27 }
 0x8ac   : > { %v1537_v29 = vsel %vm1536_vm13, %v4385_v9, %v1533_v33 }
 0x8ad   : > { %v1542_v41 = vsel %vm1539_vm14, %v1541_v35, %v1537_v29 }
 0x8ae   : > { %v1543_v55 = vmul.f32 %v5463_v5, %v1542_v41 }
 0x8af   : > { %v4298_v8 = vpop.permute.xlu0 %4297 }
 0x8b0   : > { %4090 = vmatmul.msk.f32.gmra.mxu3 %vm893_vm1, %v1543_v55  ;;  %v4299_v23 = vunpack.i.l.bf16 %v4298_v8  ;;  %v4300_v25 = vunpack.i.h.bf16 %v4298_v8 }
 0x8b5   : > { %v1831_v62 = vpop.f32.mrf.mxu1 }
 0x8b6   : > { %1845 = vrot.lane.b32.xlu0 %v1831_v62, %s4765_s8 }
 0x8b8   : > { %4091 = vmatmul.msk.f32.gmra.mxu3 %vm893_vm1, %v1558_v28 }
 0x8bd   : > { %v1834_v60 = vpop.f32.mrf.mxu1 }
 0x8be   : > { %1847 = vrot.lane.b32.xlu0 %v1834_v60, %s4765_s8 }
 0x8c5   : > { %v2772_v5 = vpop.f32.mrf.mxu1 }
 0x8c6   : > { %2784 = vrot.lane.b32.xlu1 %v2772_v5, %s4761_s11 }
 0x8cb   : > { %v5567_v7 = vpop.f32.mrf.mxu2 }
 0x8cd   : > { %v5569_v36 = vpop.f32.mrf.mxu1 }
 0x8ce   : > { %v3088_v31 = vsel %vm893_vm1, %v5569_v36, -inf }
 0x8d3   : > { %v2616_v39 = vpop.f32.mrf.mxu2 }
 0x8d4   : > { %2776 = vrot.lane.b32.xlu0 %v2616_v39, %s6510_s13 }
 0x8d5   : > { %v1842_v9 = vpop.permute.xlu0 %1841 }
 0x8d6   : > { %v5572_v56 = vpop.f32.mrf.mxu1 }
 0x8d7   : > { %v3091_v61 = vsel %vm893_vm1, %v5572_v56, -inf }
 0x8d8   : > { %3092 = vmax.xlane.f32.xlu2 %v3091_v61 }
 0x8db   : > { %v2694_v49 = vpop.f32.mrf.mxu2 }
 0x8dc   : > { %2780 = vrot.lane.b32.xlu0 %v2694_v49, %s4763_s26 }
 0x8de   : > { %v5577_v50 = vpop.f32.mrf.mxu1 }
 0x8df   : > { %v3094_v3 = vsel %vm893_vm1, %v5577_v50, -inf }
 0x8e0   : > { %3095 = vmax.xlane.f32.xlu2 %v3094_v3 }
 0x8e3   : > { %v5581_v0 = vpop.f32.mrf.mxu2 }
 0x8e4   : > { %v2878_v47 = vsel %vm893_vm1, %v5581_v0, -inf }
 0x8e6   : > { %v5583_v48 = vpop.f32.mrf.mxu1 }
 0x8e7   : > { %v3097_v44 = vsel %vm893_vm1, %v5583_v48, -inf }
 0x8e8   : > { %3098 = vmax.xlane.f32.xlu2 %v3097_v44 }
 0x8eb   : > { %v5591_v38 = vpop.f32.mrf.mxu2 }
 0x8ec   : > { %v2881_v46 = vsel %vm893_vm1, %v5591_v38, -inf }
 0x8f0   : > { %2882 = vmax.xlane.f32.xlu2 %v2881_v46  ;;  %3089 = vmax.xlane.f32.xlu1 %v3088_v31 }
 0x8f3   : > { %v5601_v20 = vpop.f32.mrf.mxu2 }
 0x8f4   : > { %v2884_v2 = vsel %vm893_vm1, %v5601_v20, -inf }
 0x8f5   : > { %v1513_v40 = vpop.xlane.xlu2 %1512 }
 0x8f6   : > { %4386 = vrcp.f32 %v1513_v40  ;;  %v1570_v16 = vand.u32 2147483648, %v1513_v40  ;;  %v1568_v13 = vand.u32 2147483647, %v1513_v40  ;;  %vm1564_vm9 = vweird.f32 %v1513_v40 }
 0x8f8   : > { %2879 = vmax.xlane.f32.xlu1 %v2878_v47  ;;  %v1571_v30 = vor.u32 1.1754944e-38, %v1570_v16  ;;  %vm1569_vm11 = vcmp.eq.f32.partialorder %v1568_v13, 8.507059e+37 }
 0x8fb   : > { %v5605_v1 = vpop.f32.mrf.mxu2 }
 0x8fc   : > { %v4387_v15 = vpop.eup %4386  ;;  %v2887_v4 = vsel %vm893_vm1, %v5605_v1, -inf }
 0x8fd   : > { %v1560_v34 = vmul.f32 %v4387_v15, %v1513_v40  ;;  %2888 = vmax.xlane.f32.xlu2 %v2887_v4  ;;  %vm1565_vm8 = vweird.f32 %v4387_v15  ;;  %v1844_v27 = vpop.permute.xlu2 %1843 }
 0x8fe   : > { %vm1566_vm10 = vmor %vm1564_vm9, %vm1565_vm8 }
 0x8ff   : > { %v1561_v6 = vsub.f32 1.0, %v1560_v34 }
 0x900   : > { %2885 = vmax.xlane.f32.xlu1 %v2884_v2 }
 0x901   : > { %v1562_v10 = vmul.f32 %v4387_v15, %v1561_v6 }
 0x903   : > { %v1563_v17 = vadd.f32 %v4387_v15, %v1562_v10  ;;  %v4301_v10 = vpack.i.bf16 %v5342_v18, %v5335_v14 }
 0x905   : > { %v1567_v21 = vsel %vm1566_vm10, %v4387_v15, %v1563_v17 }
 0x906   : > { %v1572_v43 = vsel %vm1569_vm11, %v1571_v30, %v1567_v21 }
 0x907   : > { %v1573_v26 = vmul.f32 %v5553_v32, %v1572_v43 }
 0x909   : > { %4092 = vmatmul.msk.f32.gmra.mxu3 %vm893_vm1, %v1573_v26 }
 0x914   : > { %v1615_v22 = vpop.f32.mrf.mxu3 }
 0x915   : > { %v1853_v24 = vsel %vm1428_vm5, %v1615_v22, %v1842_v9 }
 0x916   : > { %4105 = vmatmul.msk.f32.vlgmr.msra.gmra.mxu3 %vm990_vm2, %v1853_v24 }
 0x917   : > { %3220 = vmatpush.msra.mxu3 %v4299_v23 }
 0x919   : > { %3221 = vmatpush.msra.mxu3 %v4300_v25 }
 0x928   : > { %v1846_v32 = vpop.permute.xlu0 %1845 }
 0x930   : > { %v1848_v15 = vpop.permute.xlu0 %1847 }
 0x933   : > { %v1618_v57 = vpop.f32.mrf.mxu3 }
 0x934   : > { %v1854_v63 = vsel %vm1428_vm5, %v1618_v57, %v1844_v27 }
 0x935   : > { %4106 = vmatmul.msk.f32.gmra.mxu3 %vm990_vm2, %v1854_v63 }
 0x938   : > { %v2785_v58 = vpop.permute.xlu1 %2784 }
 0x93b   : > { %v1621_v33 = vpop.f32.mrf.mxu3 }
 0x93c   : > { %v1855_v35 = vsel %vm1428_vm5, %v1621_v33, %v1846_v32 }
 0x93d   : > { %4107 = vmatmul.msk.f32.gmra.mxu3 %vm990_vm2, %v1855_v35 }
 0x946   : > { %v2777_v6 = vpop.permute.xlu0 %2776 }
 0x947   : > { %v2787_v13 = vsel %vm990_vm2, %v5567_v7, %v2777_v6 }
 0x94b   : > { %v3093_v29 = vpop.xlane.xlu2 %3092 }
 0x94e   : > { %v2781_v16 = vpop.permute.xlu0 %2780 }
 0x94f   : > { %v2788_v17 = vsel %vm1382_vm6, %v2787_v13, %v2781_v16 }
 0x950   : > { %v2789_v30 = vsel %vm1384_vm7, %v2788_v17, %v2785_v58 }
 0x953   : > { %v3096_v37 = vpop.xlane.xlu2 %3095 }
 0x954   : > { %v3102_v41 = vsub.f32 %v5577_v50, %v3096_v37  ;;  %v3101_v50 = vsub.f32 %v5572_v56, %v3093_v29 }
 0x956   : > { %v3108_v51 = vmul.f32 1.442695, %v3102_v41  ;;  %v3106_v44 = vmul.f32 1.442695, %v3101_v50 }
 0x958   : > { %4388 = vpow2.f32 %v3108_v51 }
 0x95b   : > { %v3099_v55 = vpop.xlane.xlu2 %3098 }
 0x95c   : > { %v3103_v45 = vsub.f32 %v5583_v48, %v3099_v55 }
 0x95e   : > { %v5621_v12 = vpop.eup %4388  ;;  %v3110_v59 = vmul.f32 1.442695, %v3103_v45 }
 0x95f   : > { %v3118_v62 = vsel %vm893_vm1, %v5621_v12, 0.0 }
 0x960   : > { %4390 = vpow2.f32 %v3110_v59  ;;  %3119 = vadd.xlane.f32.xlu0 %v3118_v62 }
 0x963   : > { %v2883_v28 = vpop.xlane.xlu2 %2882  ;;  %v3090_v5 = vpop.xlane.xlu1 %3089 }
 0x964   : > { %v2891_v60 = vsub.f32 %v5591_v38, %v2883_v28  ;;  %v3100_v39 = vsub.f32 %v5569_v36, %v3090_v5 }
 0x966   : > { %v5627_v61 = vpop.eup %4390  ;;  %v2896_v49 = vmul.f32 1.442695, %v2891_v60  ;;  %v3104_v3 = vmul.f32 1.442695, %v3100_v39 }
 0x967   : > { %v3121_v48 = vsel %vm893_vm1, %v5627_v61, 0.0 }
 0x968   : > { %4392 = vpow2.f32 %v2896_v49  ;;  %3122 = vadd.xlane.f32.xlu2 %v3121_v48 }
 0x969   : > { %4394 = vpow2.f32 %v3104_v3 }
 0x96a   : > { %4396 = vpow2.f32 %v3106_v44 }
 0x96b   : > { %v2880_v19 = vpop.xlane.xlu1 %2879 }
 0x96c   : > { %v2890_v14 = vsub.f32 %v5581_v0, %v2880_v19 }
 0x96e   : > { %v5632_v54 = vpop.eup %4392  ;;  %v2894_v7 = vmul.f32 1.442695, %v2890_v14 }
 0x96f   : > { %v5634_v38 = vpop.eup %4394  ;;  %v2905_v36 = vsel %vm893_vm1, %v5632_v54, 0.0 }
 0x970   : > { %2906 = vadd.xlane.f32.xlu2 %v2905_v36  ;;  %v3112_v56 = vsel %vm893_vm1, %v5634_v38, 0.0  ;;  %v5640_v11 = vpop.eup %4396 }
 0x971   : > { %3113 = vadd.xlane.f32.xlu1 %v3112_v56  ;;  %v3115_v47 = vsel %vm893_vm1, %v5640_v11, 0.0 }
 0x973   : > { %v2886_v46 = vpop.xlane.xlu1 %2885 }
 0x974   : > { %v2892_v31 = vsub.f32 %v5601_v20, %v2886_v46 }
 0x976   : > { %v2898_v40 = vmul.f32 1.442695, %v2892_v31 }
 0x978   : > { %4398 = vpow2.f32 %v2898_v40 }
 0x979   : > { %3116 = vadd.xlane.f32.xlu1 %v3115_v47 }
 0x97e   : > { %v5645_v4 = vpop.eup %4398 }
 0x97f   : > { %v2908_v34 = vsel %vm893_vm1, %v5645_v4, 0.0 }
 0x980   : > { %2909 = vadd.xlane.f32.xlu0 %v2908_v34 }
 0x988   : > { %4307 = vrot.lane.b32.xlu2 %v5484_v53, %s4752_s24  ;;  %v2889_v53 = vpop.xlane.xlu2 %2888 }
 0x989   : > { %v2893_v21 = vsub.f32 %v5605_v1, %v2889_v53 }
 0x98b   : > { %v2900_v43 = vmul.f32 1.442695, %v2893_v21 }
 0x98c   : > { %v1624_v2 = vpop.f32.mrf.mxu3 }
 0x98d   : > { %v1856_v20 = vsel %vm1428_vm5, %v1624_v2, %v1848_v15  ;;  %4400 = vpow2.f32 %v2900_v43 }
 0x98e   : > { %4108 = vmatmul.msk.f32.gmra.mxu3 %vm990_vm2, %v1856_v20  ;;  %4402 = vpow2.f32 %v2894_v7 }
 0x992   : > { %4302 = vrot.lane.b32.xlu1 %v4301_v10, %s4764_s4 }
 0x993   : > { %v5664_v18 = vpop.eup %4400 }
 0x994   : > { %4312 = vrot.lane.b32.xlu0 %v4301_v10, %s4752_s24  ;;  %v2911_v26 = vsel %vm893_vm1, %v5664_v18, 0.0  ;;  %v5668_v8 = vpop.eup %4402 }
 0x995   : > { %v2902_v9 = vsel %vm893_vm1, %v5668_v8, 0.0 }
 0x996   : > { %4121 = vmatmul.msk.f32.vlgmr.msrb.gmra.mxu3 %vm893_vm1, %v2789_v30 }
 0x9b1   : > { %2912 = vadd.xlane.f32.xlu2 %v2911_v26 }
 0x9bc   : > { %2903 = vadd.xlane.f32.xlu1 %v2902_v9 }
 0x9d3   : > { %v3120_v32 = vpop.xlane.xlu0 %3119 }
 0x9d4   : > { %vm3159_vm8 = vweird.f32 %v3120_v32  ;;  %v3163_v17 = vand.u32 2147483647, %v3120_v32 }
 0x9d6   : > { %vm3164_vm10 = vcmp.eq.f32.partialorder %v3163_v17, 8.507059e+37 }
 0x9db   : > { %v5672_v22 = vpop.xlane.xlu2 %3122 }
 0x9dc   : > { %v3178_v26 = vand.u32 2147483647, %v5672_v22 }
 0x9e3   : > { %v5674_v1 = vpop.xlane.xlu2 %2906 }
 0x9e4   : > { %v3114_v23 = vpop.xlane.xlu1 %3113 }
 0x9e5   : > { %4404 = vrcp.f32 %v3114_v23  ;;  %v3135_v58 = vand.u32 2147483648, %v3114_v23  ;;  %vm3129_vm7 = vweird.f32 %v3114_v23  ;;  %v3133_v59 = vand.u32 2147483647, %v3114_v23 }
 0x9e7   : > { %v3136_v5 = vor.u32 1.1754944e-38, %v3135_v58  ;;  %vm3134_vm13 = vcmp.eq.f32.partialorder %v3133_v59, 8.507059e+37 }
 0x9eb   : > { %v4308_v0 = vpop.permute.xlu2 %4307  ;;  %v4405_v57 = vpop.eup %4404 }
 0x9ec   : > { %v4309_v24 = vunpack.i.l.bf16 %v4308_v0  ;;  %v4310_v25 = vunpack.i.h.bf16 %v4308_v0  ;;  %v3117_v27 = vpop.xlane.xlu1 %3116  ;;  %v3125_v63 = vmul.f32 %v4405_v57, %v3114_v23  ;;  %vm3130_vm6 = vweird.f32 %v4405_v57 }
 0x9ed   : > { %4406 = vrcp.f32 %v3117_v27  ;;  %vm3131_vm12 = vmor %vm3129_vm7, %vm3130_vm6  ;;  %v3150_v19 = vand.u32 2147483648, %v3117_v27  ;;  %vm3144_vm15 = vweird.f32 %v3117_v27  ;;  %v3148_v40 = vand.u32 2147483647, %v3117_v27 }
 0x9ee   : > { %3010 = vmatpush.msrb.mxu0 %v4309_v24  ;;  %v3126_v33 = vsub.f32 1.0, %v3125_v63  ;;  %4408 = vrcp.f32 %v3120_v32  ;;  %vm3174_vm6 = vweird.f32 %v5672_v22 }
 0x9ef   : > { %4410 = vrcp.f32 %v5672_v22  ;;  %v3151_v2 = vor.u32 1.1754944e-38, %v3150_v19  ;;  %vm3149_vm3 = vcmp.eq.f32.partialorder %v3148_v40, 8.507059e+37 }
 0x9f0   : > { %3011 = vmatpush.msrb.mxu0 %v4310_v25  ;;  %v3127_v29 = vmul.f32 %v4405_v57, %v3126_v33  ;;  %4412 = vrcp.f32 %v5674_v1 }
 0x9f2   : > { %v3128_v41 = vadd.f32 %v4405_v57, %v3127_v29 }
 0x9f3   : > { %v4407_v35 = vpop.eup %4406  ;;  %v5676_v45 = vpop.xlane.xlu0 %2909 }
 0x9f4   : > { %v3140_v37 = vmul.f32 %v4407_v35, %v3117_v27  ;;  %v4409_v55 = vpop.eup %4408  ;;  %v3132_v28 = vsel %vm3131_vm12, %v4405_v57, %v3128_v41  ;;  %vm3145_vm14 = vweird.f32 %v4407_v35  ;;  %vm3179_vm12 = vcmp.eq.f32.partialorder %v3178_v26, 8.507059e+37 }
 0x9f5   : > { %v3155_v62 = vmul.f32 %v4409_v55, %v3120_v32  ;;  %v3137_v49 = vsel %vm3134_vm13, %v3136_v5, %v3132_v28  ;;  %v4411_v44 = vpop.eup %4410  ;;  %vm3146_vm0 = vmor %vm3144_vm15, %vm3145_vm14  ;;  %vm3160_vm4 = vweird.f32 %v4409_v55 }
 0x9f6   : > { %v3141_v51 = vsub.f32 1.0, %v3140_v37  ;;  %v3138_v31 = vmul.f32 %v5634_v38, %v3137_v49  ;;  %v3170_v15 = vmul.f32 %v4411_v44, %v5672_v22  ;;  %v3165_v38 = vand.u32 2147483648, %v3120_v32  ;;  %vm3161_vm9 = vmor %vm3159_vm8, %vm3160_vm4  ;;  %v4413_v24 = vpop.eup %4412 }
 0x9f7   : > { %v3156_v3 = vsub.f32 1.0, %v3155_v62  ;;  %vm3175_vm11 = vweird.f32 %v4411_v44  ;;  %vm2934_vm4 = vweird.f32 %v5674_v1  ;;  %v2938_v49 = vand.u32 2147483647, %v5674_v1 }
 0x9f8   : > { %v3142_v60 = vmul.f32 %v4407_v35, %v3141_v51  ;;  %v3171_v16 = vsub.f32 1.0, %v3170_v15  ;;  %v3166_v21 = vor.u32 1.1754944e-38, %v3165_v38  ;;  %vm3176_vm7 = vmor %vm3174_vm6, %vm3175_vm11  ;;  %vm2949_vm11 = vweird.f32 %v5676_v45  ;;  %v1889_v38 = vpop.f32.mrf.mxu3 }
 0x9f9   : > { %v3157_v47 = vmul.f32 %v4409_v55, %v3156_v3 }
 0x9fa   : > { %v3143_v48 = vadd.f32 %v4407_v35, %v3142_v60  ;;  %v3172_v30 = vmul.f32 %v4411_v44, %v3171_v16  ;;  %v2940_v60 = vand.u32 2147483648, %v5674_v1 }
 0x9fb   : > { %v3158_v10 = vadd.f32 %v4409_v55, %v3157_v47 }
 0x9fc   : > { %v3147_v6 = vsel %vm3146_vm0, %v4407_v35, %v3143_v48  ;;  %v3173_v14 = vadd.f32 %v4411_v44, %v3172_v30  ;;  %vm2935_vm0 = vweird.f32 %v4413_v24 }
 0x9fd   : > { %v3152_v20 = vsel %vm3149_vm3, %v3151_v2, %v3147_v6  ;;  %v3162_v53 = vsel %vm3161_vm9, %v4409_v55, %v3158_v10  ;;  %vm2936_vm8 = vmor %vm2934_vm4, %vm2935_vm0  ;;  %vm2939_vm9 = vcmp.eq.f32.partialorder %v2938_v49, 8.507059e+37  ;;  %vm1984_vm4 = vcmask 1041408  }
 0x9fe   : > { %v3153_v13 = vmul.f32 %v5640_v11, %v3152_v20  ;;  %v3167_v43 = vsel %vm3164_vm10, %v3166_v21, %v3162_v53  ;;  %v3177_v11 = vsel %vm3176_vm7, %v4411_v44, %v3173_v14  ;;  %v2941_v44 = vor.u32 1.1754944e-38, %v2940_v60 }
 0x9ff   : > { %v3168_v7 = vmul.f32 %v5621_v12, %v3167_v43  ;;  %v2930_v12 = vmul.f32 %v4413_v24, %v5674_v1  ;;  %v2953_v1 = vand.u32 2147483647, %v5676_v45 }
 0xa01   : > { %v2931_v27 = vsub.f32 1.0, %v2930_v12  ;;  %vm2954_vm7 = vcmp.eq.f32.partialorder %v2953_v1, 8.507059e+37 }
 0xa03   : > { %v2932_v35 = vmul.f32 %v4413_v24, %v2931_v27 }
 0xa04   : > { %v4303_v39 = vpop.permute.xlu1 %4302 }
 0xa05   : > { %v4304_v50 = vunpack.i.l.bf16 %v4303_v39  ;;  %v4305_v36 = vunpack.i.h.bf16 %v4303_v39  ;;  %v2933_v62 = vadd.f32 %v4413_v24, %v2932_v35  ;;  %v4318_v35 = vld [vmem:[%s759_s2] ss:$0 sm:$0xff]  ;;  %s5744_s2 = sshll.u32 %s4969_s19, 7 }
 0xa06   : > { %v4313_v56 = vpop.permute.xlu0 %4312  ;;  %s801_s6 = sadd.s32 1, %s5744_s2  ;;  %s5748_s20 = sld [smem:[#allocation3 + %s5744_s2]] }
 0xa07   : > { %3222 = vmatpush.msra.mxu3 %v4304_v50  ;;  %v4314_v46 = vunpack.i.l.bf16 %v4313_v56  ;;  %v4315_v34 = vunpack.i.h.bf16 %v4313_v56  ;;  %v2937_v48 = vsel %vm2936_vm8, %v4413_v24, %v2933_v62  ;;  %s803_s1 = sadd.s32 2, %s5744_s2  ;;  %s5751_s25 = sld [smem:[#allocation3 + %s801_s6]]  ;;  %vm1995_vm8 = vcmask 15360  }
 0xa08   : > { %v2942_v19 = vsel %vm2939_vm9, %v2941_v44, %v2937_v48  ;;  %s805_s3 = sadd.s32 3, %s5744_s2  ;;  %s5758_s16 = sld [smem:[#allocation3 + %s803_s1]]  ;;  %vm1998_vm9 = vcmask 277504  }
 0xa09   : > { %3223 = vmatpush.msra.mxu3 %v4305_v36  ;;  %3012 = vmatpush.msrb.mxu0 %v4314_v46  ;;  %v2955_v46 = vand.u32 2147483648, %v5676_v45  ;;  %s5767_s11 = sld [smem:[#allocation3 + %s805_s3]]  ;;  %s811_s26 = sadd.s32 6, %s5744_s2 }
 0xa0a   : > { %4142 = vmatmul.msk.f32.vlgmr.msra.gmra.mxu3 %vm893_vm1, %v3138_v31  ;;  %s809_s4 = sadd.s32 5, %s5744_s2  ;;  %s815_s24 = sadd.s32 8, %s5744_s2 }
 0xa0b   : > { %3013 = vmatpush.msrb.mxu0 %v4315_v34  ;;  %v2956_v47 = vor.u32 1.1754944e-38, %v2955_v46  ;;  %s810_s15 = sld [smem:[#allocation3 + %s809_s4]]  ;;  %s817_s1 = sadd.s32 9, %s5744_s2 }
 0xa0c   : > { %s816_s6 = sld [smem:[#allocation3 + %s815_s24]]  ;;  %s823_s3 = sadd.s32 12, %s5744_s2 }
 0xa0d   : > { %3284 = vmatpush.msra.mxu0 %v5588_v52  ;;  %v3180_v52 = vand.u32 2147483648, %v5672_v22  ;;  %s824_s18 = sld [smem:[#allocation3 + %s823_s3]]  ;;  %s807_s17 = sadd.s32 4, %s5744_s2 }
 0xa0e   : > { %s837_s24 = sadd.s32 19, %s5744_s2  ;;  %s861_s23 = sadd.s32 31, %s5744_s2 }
 0xa0f   : > { %v3181_v9 = vor.u32 1.1754944e-38, %v3180_v52 }
 0xa11   : > { %v3182_v23 = vsel %vm3179_vm12, %v3181_v9, %v3177_v11 }
 0xa12   : > { %4143 = vmatmul.msk.f32.gmra.mxu3 %vm893_vm1, %v3153_v13  ;;  %v3183_v0 = vmul.f32 %v5627_v61, %v3182_v23  ;;  %v1892_v13 = vpop.f32.mrf.mxu3 }
 0xa1a   : > { %4144 = vmatmul.msk.f32.gmra.mxu3 %vm893_vm1, %v3168_v7  ;;  %v1895_v17 = vpop.f32.mrf.mxu3 }
 0xa22   : > { %4145 = vmatmul.msk.f32.gmra.mxu3 %vm893_vm1, %v3183_v0  ;;  %v1898_v30 = vpop.f32.mrf.mxu3 }
 0xa24   : > { %v2913_v57 = vpop.xlane.xlu2 %2912 }
 0xa25   : > { %v2970_v6 = vand.u32 2147483648, %v2913_v57  ;;  %v2968_v20 = vand.u32 2147483647, %v2913_v57 }
 0xa2a   : > { %v5710_v53 = vpop.f32.mrf.mxu3 }
 0xa2f   : > { %v2904_v25 = vpop.xlane.xlu1 %2903 }
 0xa30   : > { %4414 = vrcp.f32 %v2904_v25  ;;  %v2925_v61 = vand.u32 2147483648, %v2904_v25  ;;  %v2923_v41 = vand.u32 2147483647, %v2904_v25  ;;  %vm2919_vm14 = vweird.f32 %v2904_v25 }
 0xa31   : > { %4416 = vrcp.f32 %v5676_v45 }
 0xa32   : > { %4418 = vrcp.f32 %v2913_v57  ;;  %v2926_v55 = vor.u32 1.1754944e-38, %v2925_v61  ;;  %vm2924_vm3 = vcmp.eq.f32.partialorder %v2923_v41, 8.507059e+37  ;;  %v1410_v61 = vadd.f32 %v4318_v35, %v5299_v42 }
 0xa33   : > { %v4766_v42 = vmov 32.0  }
 0xa34   : > { %4420 = vrcp.f32 %v4766_v42 }
 0xa36   : > { %v4415_v22 = vpop.eup %4414 }
 0xa37   : > { %v2915_v63 = vmul.f32 %v4415_v22, %v2904_v25  ;;  %v4417_v32 = vpop.eup %4416  ;;  %vm2920_vm13 = vweird.f32 %v4415_v22 }
 0xa38   : > { %v2945_v29 = vmul.f32 %v4417_v32, %v5676_v45  ;;  %vm2921_vm15 = vmor %vm2919_vm14, %vm2920_vm13  ;;  %v4419_v28 = vpop.eup %4418  ;;  %vm2950_vm10 = vweird.f32 %v4417_v32  ;;  %vm2964_vm13 = vweird.f32 %v2913_v57  ;;  %v2971_v45 = vor.u32 1.1754944e-38, %v2970_v6 }
 0xa39   : > { %v2916_v33 = vsub.f32 1.0, %v2915_v63  ;;  %v2960_v3 = vmul.f32 %v4419_v28, %v2913_v57  ;;  %vm2951_vm6 = vmor %vm2949_vm11, %vm2950_vm10  ;;  %vm2965_vm12 = vweird.f32 %v4419_v28  ;;  %vm2082_vm10 = vcmask 1045504  }
 0xa3a   : > { %v2946_v58 = vsub.f32 1.0, %v2945_v29  ;;  %vm2966_vm14 = vmor %vm2964_vm13, %vm2965_vm12  ;;  %v4433_v29 = vld [vmem:[#allocation2] sm:$0xff]  ;;  %vm2037_vm11 = vcmask 1046528   ;;  %vm2135_vm13 = vcmask 1040384  }
 0xa3b   : > { %v2917_v37 = vmul.f32 %v4415_v22, %v2916_v33  ;;  %v2961_v36 = vsub.f32 1.0, %v2960_v3 }
 0xa3c   : > { %v2947_v50 = vmul.f32 %v4417_v32, %v2946_v58 }
 0xa3d   : > { %v2918_v51 = vadd.f32 %v4415_v22, %v2917_v37  ;;  %v2962_v31 = vmul.f32 %v4419_v28, %v2961_v36  ;;  %v1933_v37 = vadd.f32 %v4433_v29, %v1410_v61 }
 0xa3e   : > { %v2948_v56 = vadd.f32 %v4417_v32, %v2947_v50  ;;  %v4421_v50 = vpop.eup %4420 }
 0xa3f   : > { %v2922_v59 = vsel %vm2921_vm15, %v4415_v22, %v2918_v51  ;;  %v2963_v34 = vadd.f32 %v4419_v28, %v2962_v31  ;;  %vm2969_vm15 = vcmp.eq.f32.partialorder %v2968_v20, 8.507059e+37  ;;  %v1939_v3 = vmul.f32 32.0, %v4421_v50 }
 0xa40   : > { %v2927_v5 = vsel %vm2924_vm3, %v2926_v55, %v2922_v59  ;;  %v2952_v40 = vsel %vm2951_vm6, %v4417_v32, %v2948_v56 }
 0xa41   : > { %v2928_v39 = vmul.f32 %v5668_v8, %v2927_v5  ;;  %v2943_v8 = vmul.f32 %v5632_v54, %v2942_v19  ;;  %v2957_v15 = vsel %vm2954_vm7, %v2956_v47, %v2952_v40  ;;  %v2967_v54 = vsel %vm2966_vm14, %v4419_v28, %v2963_v34  ;;  %v4434_v47 = vld [vmem:[#allocation2 + $0x8] sm:$0xff] }
 0xa42   : > { %v2958_v2 = vmul.f32 %v5645_v4, %v2957_v15  ;;  %v2972_v16 = vsel %vm2969_vm15, %v2971_v45, %v2967_v54  ;;  %v1940_v48 = vsub.f32 1.0, %v1939_v3  ;;  %v2811_v40 = vadd.f32 %v4318_v35, %v5710_v53  ;;  %v5755_v53 = vld [vmem:[%s6561_s0] ss:$0 sm:$0xff]  ;;  %s818_s0 = sld [smem:[#allocation3 + %s817_s1]]  ;;  %s833_s1 = sadd.s32 17, %s5744_s2 }
 0xa43   : > { %4130 = vmatmul.msk.f32.vlgmr.msrb.gmra.mxu0 %vm893_vm1, %v2928_v39  ;;  %v2973_v10 = vmul.f32 %v5664_v18, %v2972_v16  ;;  %v4319_v18 = vld [vmem:[%s765_s7] ss:$0 sm:$0xff]  ;;  %s821_s7 = sadd.s32 11, %s5744_s2  ;;  %vm2311_vm14 = vcmask 1044480   ;;  %vm2370_vm15 = vcmask 1043456  }
 0xa44   : > { %v1890_v52 = vadd.f32 %v4319_v18, %v1889_v38  ;;  %v1893_v7 = vadd.f32 %v4319_v18, %v1892_v13  ;;  %v1896_v26 = vadd.f32 %v4319_v18, %v1895_v17  ;;  %v1899_v11 = vadd.f32 %v4319_v18, %v1898_v30  ;;  %s822_s27 = sld [smem:[#allocation3 + %s821_s7]]  ;;  %s829_s7 = sadd.s32 15, %s5744_s2 }
 0xa45   : > { %v1941_v44 = vmul.f32 %v4421_v50, %v1940_v48  ;;  %v3330_v15 = vadd.f32 %v4434_v47, %v2811_v40 }
 0xa47   : > { %v1942_v19 = vadd.f32 %v4421_v50, %v1941_v44  ;;  %v5830_v44 = vstv %s816_s6  ;;  %s835_s6 = sadd.s32 18, %s5744_s2 }
 0xa48   : > { %s6019_s3 = sld [smem:[#allocation3 + %s835_s6]]  ;;  %s841_s6 = sadd.s32 21, %s5744_s2 }
 0xa4b   : > { %4131 = vmatmul.msk.f32.gmra.mxu0 %vm893_vm1, %v2943_v8 }
 0xa53   : > { %4132 = vmatmul.msk.f32.gmra.mxu0 %vm893_vm1, %v2958_v2 }
 0xa5b   : > { %4133 = vmatmul.msk.f32.gmra.mxu0 %vm893_vm1, %v2973_v10 }
 0xa8d   : > { %v3225_v4 = vpop.f32.mrf.mxu3 }
 0xa8e   : > { %3241 = vrot.lane.b32.xlu1 %v3225_v4, %s4765_s8 }
 0xa95   : > { %v3228_v21 = vpop.f32.mrf.mxu3 }
 0xa96   : > { %3243 = vrot.lane.b32.xlu0 %v3228_v21, %s4765_s8 }
 0xa9d   : > { %v3231_v43 = vpop.f32.mrf.mxu3 }
 0xa9e   : > { %3245 = vrot.lane.b32.xlu0 %v3231_v43, %s4765_s8  ;;  %v5765_v43 = vld [vmem:[%s768_s29] ss:$0 sm:$0xff]  ;;  %s6513_s29 = smov 2  }
 0xaa5   : > { %v3234_v14 = vpop.f32.mrf.mxu3 }
 0xaa6   : > { %3247 = vrot.lane.b32.xlu0 %v3234_v14, %s4765_s8  ;;  %s812_s8 = sld [smem:[#allocation3 + %s811_s26]]  ;;  %s825_s26 = sadd.s32 13, %s5744_s2 }
 0xaa7   : > { %s826_s4 = sld [smem:[#allocation3 + %s825_s26]] }
 0xaac   : > { %v5798_v29 = vstv %s812_s8  ;;  %s827_s8 = sadd.s32 14, %s5744_s2 }
 0xac0   : > { %v3015_v9 = vpop.f32.mrf.mxu0 }
 0xac3   : > { %1901 = vxpose.xlu1.b32.start [1/4] (short) (narrow) %v1890_v52, 8 }
 0xac8   : > { %v3018_v24 = vpop.f32.mrf.mxu0 }
 0xacb   : > { %1902 = vxpose.xlu1.b32.cont [2/4] (short) (narrow) %v1893_v7, 8  ;;  %v1974_v7 = vstv %s5751_s25  ;;  %s808_s25 = sld [smem:[#allocation3 + %s807_s17]] }
 0xad0   : > { %v3021_v22 = vpop.f32.mrf.mxu0 }
 0xad3   : > { %1903 = vxpose.xlu1.b32.cont [3/4] (short) (narrow) %v1896_v26, 8 }
 0xad8   : > { %v3024_v63 = vpop.f32.mrf.mxu0 }
 0xadb   : > { %1904 = vxpose.xlu1.b32.end [4/4] (short) (narrow) %v1899_v11, 8  ;;  %v1976_v11 = vstv %s5758_s16  ;;  %s819_s16 = sadd.s32 10, %s5744_s2 }
 0xb00   : > { %v3242_v23 = vpop.permute.xlu1 %3241 }
 0xb01   : > { %v3253_v0 = vsel %vm1428_vm5, %v3015_v9, %v3242_v23  ;;  %v1978_v23 = vstv %s5767_s11  ;;  %s820_s11 = sld [smem:[#allocation3 + %s819_s16]]  ;;  %s845_s16 = sadd.s32 23, %s5744_s2 }
 0xb02   : > { %4146 = vmatmul.msk.f32.vlgmr.msra.gmra.mxu0 %vm990_vm2, %v3253_v0 }
 0xb08   : > { %v3244_v25 = vpop.permute.xlu0 %3243 }
 0xb09   : > { %v3254_v12 = vsel %vm1428_vm5, %v3018_v24, %v3244_v25 }
 0xb0a   : > { %4147 = vmatmul.msk.f32.gmra.mxu0 %vm990_vm2, %v3254_v12 }
 0xb10   : > { %v3246_v27 = vpop.permute.xlu0 %3245 }
 0xb11   : > { %v3255_v57 = vsel %vm1428_vm5, %v3021_v22, %v3246_v27 }
 0xb12   : > { %4148 = vmatmul.msk.f32.gmra.mxu0 %vm990_vm2, %v3255_v57 }
 0xb18   : > { %v3248_v32 = vpop.permute.xlu0 %3247 }
 0xb19   : > { %v3256_v33 = vsel %vm1428_vm5, %v3024_v63, %v3248_v32 }
 0xb1a   : > { %4149 = vmatmul.msk.f32.gmra.mxu0 %vm990_vm2, %v3256_v33  ;;  %vm1943_vm2 = vweird.f32 %v4421_v50 }
 0xb1b   : > { %v5736_v36 = vsel %vm1943_vm2, %v4421_v50, %v1942_v19 }
 0xb67   : > { %v1917_v41 = vpop.trf.xlu1 }
 0xb68   : > { %v1934_v51 = vadd.f32 %v1933_v37, %v1917_v41  ;;  %v5800_v37 = vstv %s810_s15  ;;  %s828_s15 = sld [smem:[#allocation3 + %s827_s8]] }
 0xb6a   : > { %v1935_v55 = vsel %vm893_vm1, %v1934_v51, 0.0 }
 0xb6b   : > { %1936 = vadd.xlane.f32.xlu2 %v1935_v55 }
 0xb7f   : > { %v3286_v58 = vpop.f32.mrf.mxu0 }
 0xb80   : > { %v3287_v59 = vadd.f32 %v4319_v18, %v3286_v58 }
 0xb82   : > { %3298 = vxpose.xlu0.b32.start [1/4] (short) (narrow) %v3287_v59, 8 }
 0xb87   : > { %v3289_v62 = vpop.f32.mrf.mxu0 }
 0xb88   : > { %v3290_v28 = vadd.f32 %v4319_v18, %v3289_v62 }
 0xb8a   : > { %3299 = vxpose.xlu0.b32.cont [2/4] (short) (narrow) %v3290_v28, 8 }
 0xb8f   : > { %v3292_v60 = vpop.f32.mrf.mxu0 }
 0xb90   : > { %v3293_v5 = vadd.f32 %v4319_v18, %v3292_v60  ;;  %v5815_v60 = vstv %s822_s27  ;;  %s830_s27 = sld [smem:[#allocation3 + %s829_s7]]  ;;  %s853_s7 = sadd.s32 27, %s5744_s2 }
 0xb92   : > { %3300 = vxpose.xlu0.b32.cont [3/4] (short) (narrow) %v3293_v5, 8 }
 0xb97   : > { %v3295_v39 = vpop.f32.mrf.mxu0 }
 0xb98   : > { %v3296_v49 = vadd.f32 %v4319_v18, %v3295_v39  ;;  %v1972_v18 = vstv %s5748_s20  ;;  %s813_s20 = sadd.s32 7, %s5744_s2 }
 0xb99   : > { %s814_s21 = sld [smem:[#allocation3 + %s813_s20]]  ;;  %s839_s20 = sadd.s32 20, %s5744_s2 }
 0xb9a   : > { %3301 = vxpose.xlu0.b32.end [4/4] (short) (narrow) %v3296_v49, 8  ;;  %s6028_s17 = sld [smem:[#allocation3 + %s839_s20]]  ;;  %s851_s20 = sadd.s32 26, %s5744_s2 }
 0xbde   : > { %v1937_v56 = vpop.xlane.xlu2 %1936 }
 0xbdf   : > { %v1945_v46 = vmul.f32 %v5736_v36, %v1937_v56 }
 0xbe1   : > { %v1946_v8 = vsub.f32 %v1934_v51, %v1945_v46 }
 0xbe3   : > { %v1947_v1 = vmul.f32 %v1946_v8, %v1946_v8 }
 0xbe5   : > { %v1948_v31 = vsel %vm893_vm1, %v1947_v1, 0.0 }
 0xbe6   : > { %1949 = vadd.xlane.f32.xlu2 %v1948_v31 }
 0xc26   : > { %v3314_v34 = vpop.trf.xlu0 }
 0xc27   : > { %v3331_v6 = vadd.f32 %v3330_v15, %v3314_v34  ;;  %v5842_v34 = vstv %s818_s0  ;;  %s6017_s0 = sld [smem:[#allocation3 + %s837_s24]] }
 0xc29   : > { %v3332_v2 = vsel %vm893_vm1, %v3331_v6, 0.0 }
 0xc2a   : > { %3333 = vadd.xlane.f32.xlu2 %v3332_v2 }
 0xc59   : > { %v1950_v20 = vpop.xlane.xlu2 %1949 }
 0xc5a   : > { %v1951_v54 = vmul.f32 %v1950_v20, %v5736_v36 }
 0xc5c   : > { %v1952_v45 = vadd.f32 1e-05, %v1951_v54 }
 0xc5e   : > { %4422 = vrsqrt.f32 %v1952_v45  ;;  %vm1959_vm0 = vweird.f32 %v1952_v45 }
 0xc64   : > { %v4423_v16 = vpop.eup %4422 }
 0xc65   : > { %v1954_v10 = vmul.f32 %v4423_v16, %v1952_v45  ;;  %vm1960_vm5 = vweird.f32 %v4423_v16 }
 0xc66   : > { %vm1961_vm3 = vmor %vm1959_vm0, %vm1960_vm5 }
 0xc67   : > { %v1955_v38 = vmul.f32 %v4423_v16, %v1954_v10 }
 0xc69   : > { %v1956_v13 = vmul.f32 0.5, %v1955_v38 }
 0xc6b   : > { %v1957_v17 = vsub.f32 1.5, %v1956_v13 }
 0xc6d   : > { %v1958_v30 = vmul.f32 %v4423_v16, %v1957_v17 }
 0xc6f   : > { %v1962_v4 = vsel %vm1961_vm3, %v4423_v16, %v1958_v30 }
 0xc70   : > { %v1963_v21 = vmul.f32 %v1962_v4, %v1946_v8 }
 0xc72   : > { %v1967_v14 = vmul.f32 %v5755_v53, %v1963_v21 }
 0xc74   : > { %v5772_v52 = vadd.f32 %v5765_v43, %v1967_v14 }
 0xc76   : > { %v1973_v26 = vmul.f32 %v1972_v18, %v5772_v52 }
 0xc78   : > { %v1975_v9 = vadd.f32 %v1974_v7, %v1973_v26 }
 0xc7a   : > { %v1977_v0 = vmul.f32 %v1976_v11, %v1975_v9 }
 0xc7c   : > { %v1979_v24 = vadd.f32 %v1978_v23, %v1977_v0 }
 0xc7e   : > { %v1980_v25 = vmax.f32 %v1979_v24, 0.0  ;;  %v5873_v24 = vstv %s824_s18  ;;  %s6021_s18 = sld [smem:[#allocation3 + %s833_s1]] }
 0xc7f   : > { %s854_s1 = sld [smem:[#allocation3 + %s853_s7]] }
 0xc80   : > { %v1982_v12 = vrot.slane %v1980_v25, 6 }
 0xc82   : > { %v1985_v22 = vsel %vm1984_vm4, 0.0, %v1982_v12  ;;  %v1986_v35 = vsel %vm1984_vm4, %v1982_v12, 0.0 }
 0xc83   : > { %1989 = vrot.lane.b32.xlu2 %v1985_v22, %s6513_s29  ;;  %v2032_v22 = vstv %s814_s21  ;;  %s4770_s21 = smov 125  }
 0xc9d   : > { %v3334_v27 = vpop.xlane.xlu2 %3333 }
 0xc9e   : > { %v3335_v57 = vmul.f32 %v3334_v27, %v5736_v36 }
 0xca0   : > { %v5789_v63 = vsub.f32 %v3331_v6, %v3335_v57  ;;  %v5888_v57 = vstv %s808_s25  ;;  %s847_s25 = sadd.s32 24, %s5744_s2 }
 0xca1   : > { %s848_s26 = sld [smem:[#allocation3 + %s847_s25]] }
 0xca2   : > { %v3337_v32 = vmul.f32 %v5789_v63, %v5789_v63  ;;  %s852_s25 = sld [smem:[#allocation3 + %s851_s20]]  ;;  %s865_s20 = sadd.s32 33, %s5744_s2 }
 0xca4   : > { %v3338_v33 = vsel %vm893_vm1, %v3337_v32, 0.0 }
 0xcac   : > { %3339 = vadd.xlane.f32.xlu2 %v3338_v33 }
 0xcc4   : > { %1991 = vrot.lane.b32.xlu2 %v1986_v35, %s6513_s29 }
 0xcdd   : > { %v1990_v61 = vpop.permute.xlu2 %1989 }
 0xcde   : > { %v1996_v41 = vsel %vm1995_vm8, 0.0, %v1990_v61 }
 0xcdf   : > { %v5804_v51 = vsel %vm1998_vm9, %v1996_v41, 0.0 }
 0xce0   : > { %v2020_v55 = vmul.f32 %v5798_v29, %v5804_v51  ;;  %v2007_v58 = vmul.f32 %v5800_v37, %v5804_v51  ;;  %v2091_v49 = vmul.f32 %v5815_v60, %v5804_v51  ;;  %v2046_v31 = vmul.f32 %v5830_v44, %v5804_v51 }
 0xce1   : > { %v2062_v21 = vmul.f32 %v5842_v34, %v5804_v51  ;;  %v2033_v32 = vmul.f32 %v2032_v22, %v5804_v51  ;;  %v2002_v33 = vmul.f32 %v5888_v57, %v5804_v51 }
 0xce2   : > { %2024 = vrot.lane.b32.xlu2 %v2020_v55, %s6516_s9  ;;  %2011 = vrot.lane.b32.xlu1 %v2007_v58, %s6514_s28  ;;  %v2095_v46 = vrot.slane %v2091_v49, 2  ;;  %v2050_v2 = vrot.slane %v2046_v31, 1 }
 0xce3   : > { %v2066_v26 = vrot.slane %v2062_v21, 1 }
 0xd1f   : > { %v3340_v59 = vpop.xlane.xlu2 %3339 }
 0xd20   : > { %v3341_v62 = vmul.f32 %v3340_v59, %v5736_v36  ;;  %v2038_v59 = vrot.slane %v2033_v32, 1 }
 0xd22   : > { %v3342_v28 = vadd.f32 1e-05, %v3341_v62 }
 0xd24   : > { %4424 = vrsqrt.f32 %v3342_v28  ;;  %vm3349_vm7 = vweird.f32 %v3342_v28 }
 0xd27   : > { %v1992_v5 = vpop.permute.xlu2 %1991 }
 0xd28   : > { %v1997_v39 = vsel %vm1995_vm8, 0.0, %v1992_v5 }
 0xd29   : > { %v5822_v42 = vsel %vm1998_vm9, %v1997_v39, 0.0 }
 0xd2a   : > { %v4425_v50 = vpop.eup %4424  ;;  %v2008_v3 = vmul.f32 %v5800_v37, %v5822_v42  ;;  %v5828_v48 = vmul.f32 %v5815_v60, %v5822_v42  ;;  %v2047_v56 = vmul.f32 %v5830_v44, %v5822_v42  ;;  %v2063_v20 = vmul.f32 %v5842_v34, %v5822_v42 }
 0xd2b   : > { %v3344_v19 = vmul.f32 %v4425_v50, %v3342_v28  ;;  %vm3350_vm6 = vweird.f32 %v4425_v50  ;;  %v2021_v17 = vmul.f32 %v5798_v29, %v5822_v42  ;;  %v2003_v39 = vmul.f32 %v5888_v57, %v5822_v42 }
 0xd2c   : > { %2013 = vrot.lane.b32.xlu2 %v2008_v3, %s6514_s28  ;;  %v2096_v8 = vrot.slane %v5828_v48, 2  ;;  %v2051_v15 = vrot.slane %v2047_v56, 1  ;;  %vm3351_vm12 = vmor %vm3349_vm7, %vm3350_vm6  ;;  %v2067_v10 = vrot.slane %v2063_v20, 1 }
 0xd2d   : > { %v3345_v1 = vmul.f32 %v4425_v50, %v3344_v19 }
 0xd2e   : > { %v2097_v40 = vsel %vm2082_vm10, %v2095_v46, %v2096_v8  ;;  %v2052_v45 = vsel %vm2037_vm11, %v2050_v2, %v2051_v15 }
 0xd2f   : > { %v3346_v47 = vmul.f32 0.5, %v3345_v1  ;;  %2098 = vrot.lane.b32.xlu1 %v2097_v40, %s6514_s28  ;;  %v2077_v1 = vstv %s820_s11  ;;  %s843_s11 = sadd.s32 22, %s5744_s2 }
 0xd30   : > { %v5905_v31 = vmul.f32 %v2077_v1, %v5822_v42  ;;  %v2078_v40 = vmul.f32 %v2077_v1, %v5804_v51  ;;  %s844_s8 = sld [smem:[#allocation3 + %s843_s11]] }
 0xd31   : > { %v3347_v6 = vsub.f32 1.5, %v3346_v47  ;;  %s862_s11 = sld [smem:[#allocation3 + %s861_s23]] }
 0xd32   : > { %v2084_v48 = vrot.slane %v5905_v31, 2  ;;  %v2083_v47 = vrot.slane %v2078_v40, 2  ;;  %v2128_v40 = vstv %s830_s27  ;;  %s863_s27 = sadd.s32 32, %s5744_s2 }
 0xd33   : > { %v3348_v54 = vmul.f32 %v4425_v50, %v3347_v6  ;;  %s6062_s13 = sld [smem:[#allocation3 + %s863_s27]] }
 0xd34   : > { %2053 = vrot.lane.b32.xlu2 %v2052_v45, %s6514_s28  ;;  %v2085_v6 = vsel %vm2082_vm10, %v2083_v47, %v2084_v48 }
 0xd35   : > { %v3352_v16 = vsel %vm3351_vm12, %v4425_v50, %v3348_v54 }
 0xd36   : > { %v3353_v38 = vmul.f32 %v3352_v16, %v5789_v63  ;;  %v2034_v63 = vmul.f32 %v2032_v22, %v5822_v42 }
 0xd37   : > { %2071 = vrot.lane.b32.xlu1 %v2067_v10, %s6516_s9 }
 0xd38   : > { %v3354_v13 = vmul.f32 %v5755_v53, %v3353_v38  ;;  %v2039_v41 = vrot.slane %v2034_v63, 1 }
 0xd3a   : > { %v5854_v30 = vadd.f32 %v5765_v43, %v3354_v13  ;;  %v2068_v43 = vsel %vm2037_vm11, %v2066_v26, %v2067_v10  ;;  %v2040_v28 = vsel %vm2037_vm11, %v2038_v59, %v2039_v41 }
 0xd3c   : > { %2026 = vrot.lane.b32.xlu2 %v2021_v17, %s6516_s9  ;;  %v3356_v4 = vmul.f32 %v5854_v30, %v1972_v18  ;;  %v2025_v58 = vpop.permute.xlu2 %2024 }
 0xd3e   : > { %v3357_v14 = vadd.f32 %v3356_v4, %v1974_v7  ;;  %v5878_v7 = vmul.f32 %v5873_v24, %v5822_v42 }
 0xd40   : > { %v3358_v53 = vmul.f32 %v3357_v14, %v1976_v11  ;;  %v2107_v11 = vmul.f32 %v5873_v24, %v5804_v51 }
 0xd42   : > { %v3359_v9 = vadd.f32 %v3358_v53, %v1978_v23  ;;  %v2112_v23 = vrot.slane %v5878_v7, 2  ;;  %v2111_v12 = vrot.slane %v2107_v11, 2 }
 0xd44   : > { %2069 = vrot.lane.b32.xlu2 %v2068_v43, %s6516_s9  ;;  %v3360_v0 = vmax.f32 %v3359_v9, 0.0  ;;  %v2113_v27 = vsel %vm2082_vm10, %v2111_v12, %v2112_v23 }
 0xd46   : > { %v3362_v18 = vrot.slane %v3360_v0, 6 }
 0xd48   : > { %v3364_v25 = vsel %vm1984_vm4, 0.0, %v3362_v18  ;;  %v3365_v35 = vsel %vm1984_vm4, %v3362_v18, 0.0 }
 0xd49   : > { %3368 = vrot.lane.b32.xlu0 %v3364_v25, %s6513_s29 }
 0xd4c   : > { %2055 = vrot.lane.b32.xlu2 %v2051_v15, %s6514_s28 }
 0xd51   : > { %2114 = vrot.lane.b32.xlu0 %v2113_v27, %s6516_s9 }
 0xd54   : > { %v2012_v61 = vpop.permute.xlu1 %2011  ;;  %3370 = vrot.lane.b32.xlu2 %v3365_v35, %s6513_s29 }
 0xd55   : > { %v2017_v55 = vadd.f32 %v2012_v61, %v2002_v33 }
 0xd57   : > { %v2030_v62 = vadd.f32 %v2025_v58, %v2017_v55 }
 0xd59   : > { %2100 = vrot.lane.b32.xlu0 %v2096_v8, %s6514_s28  ;;  %v2043_v5 = vadd.f32 %v2040_v28, %v2030_v62 }
 0xd86   : > { %v2014_v49 = vpop.permute.xlu2 %2013 }
 0xd87   : > { %v2018_v50 = vadd.f32 %v2014_v49, %v2003_v39  ;;  %v5983_v49 = vstv %s826_s4  ;;  %s846_s4 = sld [smem:[#allocation3 + %s845_s16]]  ;;  %s871_s16 = sadd.s32 36, %s5744_s2 }
 0xd8e   : > { %v2054_v3 = vpop.permute.xlu2 %2053 }
 0xd8f   : > { %v2059_v19 = vadd.f32 %v2054_v3, %v2043_v5 }
 0xd96   : > { %v2027_v56 = vpop.permute.xlu2 %2026 }
 0xd97   : > { %v2031_v46 = vadd.f32 %v2027_v56, %v2018_v50  ;;  %v2125_v56 = vstv %s828_s15  ;;  %s855_s15 = sadd.s32 28, %s5744_s2 }
 0xd98   : > { %s856_s24 = sld [smem:[#allocation3 + %s855_s15]] }
 0xd99   : > { %v2044_v20 = vadd.f32 %v2039_v41, %v2031_v46 }
 0xd9e   : > { %v2070_v8 = vpop.permute.xlu2 %2069 }
 0xd9f   : > { %v2075_v15 = vadd.f32 %v2070_v8, %v2059_v19 }
 0xda1   : > { %v2088_v2 = vadd.f32 %v2085_v6, %v2075_v15  ;;  %v2099_v59 = vpop.permute.xlu1 %2098 }
 0xda3   : > { %v2104_v5 = vadd.f32 %v2099_v59, %v2088_v2 }
 0xda6   : > { %v2056_v54 = vpop.permute.xlu2 %2055 }
 0xda7   : > { %v5912_v45 = vadd.f32 %v2056_v54, %v2044_v20 }
 0xdae   : > { %v3371_v16 = vpop.permute.xlu2 %3370 }
 0xdaf   : > { %v3375_v42 = vsel %vm1995_vm8, 0.0, %v3371_v16 }
 0xdb0   : > { %v5916_v10 = vsel %vm1998_vm9, %v3375_v42, 0.0 }
 0xdb1   : > { %v3418_v51 = vmul.f32 %v5916_v10, %v5830_v44  ;;  %v3474_v13 = vmul.f32 %v5916_v10, %v5873_v24  ;;  %v5929_v53 = vmul.f32 %v5916_v10, %v2032_v22  ;;  %v5936_v43 = vmul.f32 %v5916_v10, %v2077_v1 }
 0xdb2   : > { %v3383_v35 = vmul.f32 %v5916_v10, %v5800_v37  ;;  %v3395_v61 = vmul.f32 %v5916_v10, %v5798_v29  ;;  %v3433_v41 = vmul.f32 %v5916_v10, %v5842_v34 }
 0xdb3   : > { %v3422_v38 = vrot.slane %v3418_v51, 1  ;;  %v3478_v4 = vrot.slane %v3474_v13, 2  ;;  %v3411_v11 = vrot.slane %v5929_v53, 1  ;;  %v3452_v32 = vrot.slane %v5936_v43, 2  ;;  %v2072_v51 = vpop.permute.xlu1 %2071 }
 0xdb4   : > { %v3437_v55 = vrot.slane %v3433_v41, 1 }
 0xdb5   : > { %3426 = vrot.lane.b32.xlu0 %v3422_v38, %s6514_s28 }
 0xdbb   : > { %v3369_v17 = vpop.permute.xlu0 %3368 }
 0xdbc   : > { %v3374_v21 = vsel %vm1995_vm8, 0.0, %v3369_v17  ;;  %v2076_v17 = vadd.f32 %v2072_v51, %v5912_v45  ;;  %v2183_v51 = vstv %s6028_s17  ;;  %s885_s17 = sadd.s32 43, %s5744_s2 }
 0xdbd   : > { %v5925_v14 = vsel %vm1998_vm9, %v3374_v21, 0.0  ;;  %3482 = vrot.lane.b32.xlu0 %v3478_v4, %s6516_s9 }
 0xdbe   : > { %v3382_v26 = vmul.f32 %v5925_v14, %v5800_v37  ;;  %v3473_v9 = vmul.f32 %v5925_v14, %v5873_v24  ;;  %v3406_v0 = vmul.f32 %v5925_v14, %v2032_v22  ;;  %v3447_v25 = vmul.f32 %v5925_v14, %v2077_v1 }
 0xdbf   : > { %v3394_v33 = vmul.f32 %v5925_v14, %v5798_v29  ;;  %v3417_v58 = vmul.f32 %v5925_v14, %v5830_v44  ;;  %v3458_v28 = vmul.f32 %v5925_v14, %v5815_v60  ;;  %v3378_v6 = vmul.f32 %v5925_v14, %v5888_v57 }
 0xdc0   : > { %3386 = vrot.lane.b32.xlu2 %v3382_v26, %s6514_s28  ;;  %v3477_v18 = vrot.slane %v3473_v9, 2  ;;  %v3410_v12 = vrot.slane %v3406_v0, 1  ;;  %v3451_v63 = vrot.slane %v3447_v25, 2  ;;  %v2089_v21 = vadd.f32 %v2084_v48, %v2076_v17 }
 0xdc1   : > { %v3421_v7 = vrot.slane %v3417_v58, 1  ;;  %v3462_v50 = vrot.slane %v3458_v28, 2 }
 0xdc2   : > { %v3479_v27 = vsel %vm2082_vm10, %v3477_v18, %v3478_v4  ;;  %v3412_v24 = vsel %vm2037_vm11, %v3410_v12, %v3411_v11  ;;  %v5951_v22 = vsel %vm2082_vm10, %v3451_v63, %v3452_v32 }
 0xdc3   : > { %3480 = vrot.lane.b32.xlu1 %v3479_v27, %s6516_s9  ;;  %v3423_v37 = vsel %vm2037_vm11, %v3421_v7, %v3422_v38  ;;  %v2115_v62 = vpop.permute.xlu0 %2114 }
 0xdc4   : > { %v2120_v39 = vadd.f32 %v2115_v62, %v2104_v5 }
 0xdc6   : > { %v2123_v19 = vadd.f32 %v5983_v49, %v2120_v39 }
 0xdc8   : > { %3398 = vrot.lane.b32.xlu2 %v3394_v33, %s6516_s9  ;;  %v2126_v1 = vmul.f32 %v2125_v56, %v2123_v19 }
 0xdca   : > { %v2129_v8 = vadd.f32 %v2128_v40, %v2126_v1 }
 0xdcb   : > { %2116 = vrot.lane.b32.xlu1 %v2112_v23, %s6516_s9  ;;  %v3432_v23 = vmul.f32 %v5925_v14, %v5842_v34  ;;  %v3459_v34 = vmul.f32 %v5916_v10, %v5815_v60  ;;  %v2101_v4 = vpop.permute.xlu0 %2100 }
 0xdcc   : > { %v2131_v47 = vmax.f32 %v2129_v8, 0.0  ;;  %v2105_v9 = vadd.f32 %v2101_v4, %v2089_v21  ;;  %v6066_v4 = vstv %s848_s26  ;;  %v6068_v21 = vstv %s846_s4  ;;  %s6081_s26 = sld [smem:[#allocation3 + %s871_s16]] }
 0xdcd   : > { %v3436_v29 = vrot.slane %v3432_v23, 1  ;;  %v3463_v3 = vrot.slane %v3459_v34, 2 }
 0xdce   : > { %v2136_v60 = vrot.slane %v2131_v47, 7 }
 0xdcf   : > { %v3438_v44 = vsel %vm2037_vm11, %v3436_v29, %v3437_v55  ;;  %v3464_v46 = vsel %vm2082_vm10, %v3462_v50, %v3463_v3 }
 0xdd0   : > { %3388 = vrot.lane.b32.xlu2 %v3383_v35, %s6514_s28 }
 0xdd8   : > { %3400 = vrot.lane.b32.xlu2 %v3395_v61, %s6516_s9 }
 0xde0   : > { %3441 = vrot.lane.b32.xlu2 %v3437_v55, %s6516_s9 }
 0xde8   : > { %3424 = vrot.lane.b32.xlu2 %v3423_v37, %s6514_s28 }
 0xdf0   : > { %3439 = vrot.lane.b32.xlu2 %v3438_v44, %s6516_s9 }
 0xdf8   : > { %3465 = vrot.lane.b32.xlu2 %v3464_v46, %s6514_s28 }
 0xe00   : > { %3467 = vrot.lane.b32.xlu2 %v3463_v3, %s6514_s28 }
 0xe08   : > { %2139 = vrot.lane.b32.xlu2 %v2136_v60, %s6514_s28 }
 0xe1a   : > { %v3387_v15 = vpop.permute.xlu2 %3386 }
 0xe1b   : > { %v3392_v2 = vadd.f32 %v3387_v15, %v3378_v6  ;;  %v2169_v15 = vstv %s6019_s3  ;;  %v2162_v6 = vstv %s6021_s18  ;;  %s883_s3 = sadd.s32 42, %s5744_s2 }
 0xe22   : > { %v3399_v20 = vpop.permute.xlu2 %3398 }
 0xe23   : > { %v3404_v54 = vadd.f32 %v3399_v20, %v3392_v2 }
 0xe25   : > { %v3415_v16 = vadd.f32 %v3412_v24, %v3404_v54  ;;  %v3379_v24 = vmul.f32 %v5916_v10, %v5888_v57 }
 0xe27   : > { %v3427_v7 = vpop.permute.xlu0 %3426 }
 0xe2a   : > { %v3389_v42 = vpop.permute.xlu2 %3388 }
 0xe2b   : > { %v3393_v45 = vadd.f32 %v3389_v42, %v3379_v24 }
 0xe2f   : > { %v3483_v39 = vpop.permute.xlu0 %3482 }
 0xe32   : > { %v3401_v38 = vpop.permute.xlu2 %3400 }
 0xe33   : > { %v3405_v48 = vadd.f32 %v3401_v38, %v3393_v45 }
 0xe35   : > { %v3481_v13 = vpop.permute.xlu1 %3480  ;;  %v3416_v58 = vadd.f32 %v3411_v11, %v3405_v48 }
 0xe37   : > { %v3431_v23 = vadd.f32 %v3427_v7, %v3416_v58 }
 0xe3a   : > { %v3442_v26 = vpop.permute.xlu2 %3441 }
 0xe3b   : > { %v3446_v10 = vadd.f32 %v3442_v26, %v3431_v23  ;;  %v6071_v26 = vstv %s844_s8  ;;  %v6109_v23 = vstv %s852_s25 }
 0xe3d   : > { %v2117_v0 = vpop.permute.xlu1 %2116  ;;  %v3457_v44 = vadd.f32 %v3452_v32, %v3446_v10 }
 0xe3e   : > { %v2121_v18 = vadd.f32 %v2117_v0, %v2105_v9 }
 0xe40   : > { %v2124_v14 = vadd.f32 %v5983_v49, %v2121_v18 }
 0xe42   : > { %v2127_v25 = vmul.f32 %v2125_v56, %v2124_v14  ;;  %v3425_v12 = vpop.permute.xlu2 %3424 }
 0xe43   : > { %v3430_v35 = vadd.f32 %v3425_v12, %v3415_v16 }
 0xe44   : > { %v2130_v27 = vadd.f32 %v2128_v40, %v2127_v25 }
 0xe46   : > { %v2132_v63 = vmax.f32 %v2130_v27, 0.0 }
 0xe48   : > { %v2137_v33 = vrot.slane %v2132_v63, 7 }
 0xe4a   : > { %v3440_v61 = vpop.permute.xlu2 %3439  ;;  %v2138_v31 = vsel %vm2135_vm13, %v2136_v60, %v2137_v33  ;;  %v2176_v60 = vstv %s6017_s0  ;;  %v6099_v33 = vstv %s856_s24  ;;  %s6565_s24 = smov 2   ;;  %s881_s0 = sadd.s32 41, %s5744_s2 }
 0xe4b   : > { %v3445_v41 = vadd.f32 %v3440_v61, %v3430_v35  ;;  %2141 = vrot.lane.b32.xlu0 %v2138_v31, %s6514_s28  ;;  %v6101_v61 = vstv %s854_s1  ;;  %s875_s1 = sadd.s32 38, %s5744_s2  ;;  %s882_s18 = sld [smem:[#allocation3 + %s881_s0]] }
 0xe4c   : > { %s876_s16 = sld [smem:[#allocation3 + %s875_s1]] }
 0xe4d   : > { %v3456_v55 = vadd.f32 %v5951_v22, %v3445_v41 }
 0xe52   : > { %v3466_v37 = vpop.permute.xlu2 %3465 }
 0xe53   : > { %v3471_v57 = vadd.f32 %v3466_v37, %v3456_v55 }
 0xe55   : > { %v3486_v29 = vadd.f32 %v3481_v13, %v3471_v57  ;;  %v6111_v57 = vstv %s862_s11  ;;  %s866_s11 = sld [smem:[#allocation3 + %s865_s20]] }
 0xe57   : > { %v3488_v59 = vadd.f32 %v3486_v29, %v5983_v49 }
 0xe59   : > { %v3490_v62 = vmul.f32 %v3488_v59, %v2125_v56 }
 0xe5a   : > { %v3468_v28 = vpop.permute.xlu2 %3467 }
 0xe5b   : > { %v3472_v5 = vadd.f32 %v3468_v28, %v3457_v44  ;;  %v3492_v34 = vadd.f32 %v3490_v62, %v2128_v40  ;;  %v6117_v62 = vstv %s6062_s13  ;;  %s869_s13 = sadd.s32 35, %s5744_s2 }
 0xe5c   : > { %s6155_s8 = sld [smem:[#allocation3 + %s869_s13]] }
 0xe5d   : > { %v3487_v22 = vadd.f32 %v3483_v39, %v3472_v5  ;;  %v3494_v50 = vmax.f32 %v3492_v34, 0.0  ;;  %v6129_v34 = vstv %s6081_s26  ;;  %s873_s26 = sadd.s32 37, %s5744_s2 }
 0xe5f   : > { %v3489_v53 = vadd.f32 %v3487_v22, %v5983_v49  ;;  %v3498_v11 = vrot.slane %v3494_v50, 7 }
 0xe61   : > { %v3491_v3 = vmul.f32 %v3489_v53, %v2125_v56  ;;  %3501 = vrot.lane.b32.xlu1 %v3498_v11, %s6514_s28 }
 0xe62   : > { %v2140_v46 = vpop.permute.xlu2 %2139 }
 0xe63   : > { %v3493_v19 = vadd.f32 %v3491_v3, %v2128_v40  ;;  %v2145_v32 = vsel %vm1984_vm4, 0.0, %v2140_v46 }
 0xe65   : > { %v3495_v1 = vmax.f32 %v3493_v19, 0.0 }
 0xe67   : > { %v3499_v43 = vrot.slane %v3495_v1, 7 }
 0xe69   : > { %2149 = vrot.lane.b32.xlu1 %v2145_v32, %s6513_s29  ;;  %v3500_v8 = vsel %vm2135_vm13, %v3498_v11, %v3499_v43 }
 0xe6a   : > { %3503 = vrot.lane.b32.xlu2 %v3500_v8, %s6514_s28 }
 0xebd   : > { %v2142_v49 = vpop.permute.xlu0 %2141 }
 0xebe   : > { %v2146_v47 = vsel %vm1984_vm4, %v2142_v49, 0.0 }
 0xebf   : > { %2151 = vrot.lane.b32.xlu2 %v2146_v47, %s6513_s29 }
 0xec4   : > { %v6057_v17 = vpop.permute.xlu2 %3503 }
 0xec5   : > { %v3508_v46 = vsel %vm1984_vm4, %v6057_v17, 0.0 }
 0xed3   : > { %v3502_v56 = vpop.permute.xlu1 %3501 }
 0xed4   : > { %v3507_v13 = vsel %vm1984_vm4, 0.0, %v3502_v56 }
 0xedb   : > { %v2150_v40 = vpop.permute.xlu1 %2149 }
 0xedc   : > { %v2155_v2 = vsel %vm1995_vm8, 0.0, %v2150_v40 }
 0xedd   : > { %v6031_v20 = vsel %vm1998_vm9, %v2155_v2, 0.0 }
 0xede   : > { %v2177_v54 = vmul.f32 %v2176_v60, %v6031_v20  ;;  %v2170_v16 = vmul.f32 %v2169_v15, %v6031_v20  ;;  %v2163_v42 = vmul.f32 %v2162_v6, %v6031_v20  ;;  %v2184_v38 = vmul.f32 %v2183_v51, %v6031_v20 }
 0xedf   : > { %v2225_v0 = vmul.f32 %v6066_v4, %v6031_v20  ;;  %v2213_v18 = vmul.f32 %v6068_v21, %v6031_v20  ;;  %v2201_v25 = vmul.f32 %v6071_v26, %v6031_v20  ;;  %v2271_v44 = vmul.f32 %v6099_v33, %v6031_v20 }
 0xee0   : > { %2179 = vrot.lane.b32.xlu2 %v2177_v54, %s4770_s21  ;;  %2172 = vrot.lane.b32.xlu1 %v2170_v16, %s6516_s9  ;;  %s849_s9 = sadd.s32 25, %s5744_s2  ;;  %v2259_v28 = vmul.f32 %v6101_v61, %v6031_v20  ;;  %v2249_v22 = vmul.f32 %v6109_v23, %v6031_v20  ;;  %v2307_v50 = vmul.f32 %v6111_v57, %v6031_v20 }
 0xee1   : > { %2165 = vrot.lane.b32.xlu0 %v2163_v42, %s6514_s28  ;;  %s879_s28 = sadd.s32 40, %s5744_s2  ;;  %s6091_s23 = sld [smem:[#allocation3 + %s849_s9]]  ;;  %v2229_v45 = vrot.slane %v2225_v0, 1  ;;  %v2217_v35 = vrot.slane %v2213_v18, 1  ;;  %v2205_v55 = vrot.slane %v2201_v25, 1  ;;  %v2318_v1 = vmul.f32 %v6117_v62, %v6031_v20 }
 0xee2   : > { %s6086_s4 = sld [smem:[#allocation3 + %s879_s28]]  ;;  %s867_s9 = sadd.s32 34, %s5744_s2  ;;  %v2275_v8 = vrot.slane %v2271_v44, 2  ;;  %v2263_v49 = vrot.slane %v2259_v28, 2  ;;  %v2366_v47 = vmul.f32 %v6129_v34, %v6031_v20  ;;  %v2253_v54 = vrot.slane %v2249_v22, 2 }
 0xee3   : > { %s857_s28 = sadd.s32 29, %s5744_s2  ;;  %s6161_s7 = sld [smem:[#allocation3 + %s867_s9]]  ;;  %v2312_v16 = vrot.slane %v2307_v50, 3  ;;  %v2322_v28 = vrot.slane %v2318_v1, 3  ;;  %v6205_v50 = vstv %s6155_s8 }
 0xee4   : > { %s6169_s27 = sld [smem:[#allocation3 + %s857_s28]] }
 0xee5   : > { %s6568_s28 = sld [smem:[#allocation38_spill]] }
 0xee7   : > { %v6143_v19 = vstv %s6091_s23  ;;  %s831_s23 = sadd.s32 16, %s5744_s2 }
 0xee8   : > { %v6140_v53 = vstv %s6086_s4  ;;  %s874_s4 = sld [smem:[#allocation3 + %s873_s26]] }
 0xee9   : > { %2186 = vrot.lane.b32.xlu0 %v2184_v38, %s6511_s5  ;;  %s859_s5 = sadd.s32 30, %s5744_s2  ;;  %v2413_v56 = vmul.f32 %v6140_v53, %v6031_v20  ;;  %s6269_s13 = sld [smem:[#allocation3 + %s831_s23]] }
 0xeea   : > { %s6074_s15 = sld [smem:[#allocation3 + %s859_s5]]  ;;  %s6563_s5 = smov 126  }
 0xeeb   : > { %s6569_s8 = scalar_lea.vmem %s6568_s28, %s5094_s14 }
 0xef0   : > { %v6126_v5 = vstv %s6074_s15  ;;  %s6566_s15 = smov 124  }
 0xef1   : > { %3511 = vrot.lane.b32.xlu0 %v3507_v13, %s6513_s29  ;;  %s842_s29 = sld [smem:[#allocation3 + %s841_s6]]  ;;  %v2295_v43 = vmul.f32 %v6126_v5, %v6031_v20  ;;  %s877_s6 = sadd.s32 39, %s5744_s2 }
 0xef2   : > { %s878_s25 = sld [smem:[#allocation3 + %s877_s6]]  ;;  %s6567_s2 = scalar_lea.vmem [#allocation16], %s5066_s22 }
 0xef7   : > { %v6103_v31 = vstv %s842_s29  ;;  %s6564_s29 = smov 127  }
 0xef8   : > { %v2191_v39 = vmul.f32 %v6103_v31, %v6031_v20 }
 0xefa   : > { %v2195_v40 = vrot.slane %v2191_v39, 1  ;;  %v2299_v39 = vrot.slane %v2295_v43, 2 }
 0xf19   : > { %v2152_v9 = vpop.permute.xlu2 %2151 }
 0xf1a   : > { %v2156_v14 = vsel %vm1995_vm8, 0.0, %v2152_v9 }
 0xf1b   : > { %v6089_v12 = vsel %vm1998_vm9, %v2156_v14, 0.0 }
 0xf1c   : > { %v2226_v27 = vmul.f32 %v6066_v4, %v6089_v12  ;;  %v2214_v63 = vmul.f32 %v6068_v21, %v6089_v12  ;;  %v2202_v24 = vmul.f32 %v6071_v26, %v6089_v12  ;;  %v2272_v7 = vmul.f32 %v6099_v33, %v6089_v12 }
 0xf1d   : > { %v2260_v37 = vmul.f32 %v6101_v61, %v6089_v12  ;;  %v2192_v32 = vmul.f32 %v6103_v31, %v6089_v12  ;;  %v2319_v13 = vmul.f32 %v6117_v62, %v6089_v12  ;;  %v2296_v17 = vmul.f32 %v6126_v5, %v6089_v12 }
 0xf1e   : > { %v2230_v48 = vrot.slane %v2226_v27, 1  ;;  %v2218_v41 = vrot.slane %v2214_v63, 1  ;;  %v2206_v58 = vrot.slane %v2202_v24, 1  ;;  %v2276_v11 = vrot.slane %v2272_v7, 2 }
 0xf1f   : > { %v2264_v3 = vrot.slane %v2260_v37, 2  ;;  %v2196_v2 = vrot.slane %v2192_v32, 1  ;;  %v2250_v0 = vmul.f32 %v6109_v23, %v6089_v12  ;;  %v2308_v18 = vmul.f32 %v6111_v57, %v6089_v12 }
 0xf20   : > { %v2231_v10 = vsel %vm2037_vm11, %v2229_v45, %v2230_v48  ;;  %v2219_v29 = vsel %vm2037_vm11, %v2217_v35, %v2218_v41  ;;  %v2207_v59 = vsel %vm2037_vm11, %v2205_v55, %v2206_v58  ;;  %v2277_v42 = vsel %vm2082_vm10, %v2275_v8, %v2276_v11 }
 0xf21   : > { %2232 = vrot.lane.b32.xlu0 %v2231_v10, %s4770_s21  ;;  %2220 = vrot.lane.b32.xlu2 %v2219_v29, %s6563_s5  ;;  %v2265_v38 = vsel %vm2082_vm10, %v2263_v49, %v2264_v3  ;;  %v6172_v9 = vsel %vm2037_vm11, %v2195_v40, %v2196_v2  ;;  %v2367_v14 = vmul.f32 %v6129_v34, %v6089_v12  ;;  %v2254_v63 = vrot.slane %v2250_v0, 2 }
 0xf22   : > { %2208 = vrot.lane.b32.xlu1 %v2207_v59, %s6564_s29  ;;  %v2238_v25 = vmul.f32 %v6143_v19, %v6089_v12  ;;  %v2414_v27 = vmul.f32 %v6140_v53, %v6089_v12  ;;  %v2313_v24 = vrot.slane %v2308_v18, 3  ;;  %v2371_v45 = vrot.slane %v2366_v47, 4 }
 0xf23   : > { %v2372_v35 = vrot.slane %v2367_v14, 4  ;;  %v2323_v48 = vrot.slane %v2319_v13, 3  ;;  %v2237_v41 = vmul.f32 %v6143_v19, %v6031_v20  ;;  %v2417_v55 = vrot.slane %v2413_v56, 4 }
 0xf24   : > { %v2418_v58 = vrot.slane %v2414_v27, 4  ;;  %v2300_v7 = vrot.slane %v2296_v17, 2  ;;  %v6193_v37 = vsel %vm2082_vm10, %v2253_v54, %v2254_v63  ;;  %v6196_v10 = vsel %vm2311_vm14, %v2312_v16, %v2313_v24 }
 0xf25   : > { %v6199_v29 = vsel %vm2370_vm15, %v2371_v45, %v2372_v35  ;;  %v2242_v59 = vrot.slane %v2238_v25, 1  ;;  %v2241_v22 = vrot.slane %v2237_v41, 1  ;;  %v6208_v11 = vstv %s6161_s7 }
 0xf26   : > { %v6202_v44 = vsel %vm2370_vm15, %v2417_v55, %v2418_v58  ;;  %v6211_v3 = vstv %s6169_s27  ;;  %v2301_v32 = vsel %vm2082_vm10, %v2299_v39, %v2300_v7  ;;  %v2355_v8 = vmul.f32 %v6205_v50, %v6089_v12 }
 0xf27   : > { %v2343_v1 = vmul.f32 %v6208_v11, %v6089_v12  ;;  %v2243_v43 = vsel %vm2037_vm11, %v2241_v22, %v2242_v59  ;;  %v2284_v49 = vmul.f32 %v6211_v3, %v6089_v12  ;;  %v2354_v47 = vmul.f32 %v6205_v50, %v6031_v20 }
 0xf28   : > { %v2342_v56 = vmul.f32 %v6208_v11, %v6031_v20  ;;  %v2283_v40 = vmul.f32 %v6211_v3, %v6031_v20  ;;  %v2359_v2 = vrot.slane %v2355_v8, 3  ;;  %v6232_v17 = vstv %s878_s25 }
 0xf29   : > { %2278 = vrot.lane.b32.xlu0 %v2277_v42, %s6563_s5  ;;  %2266 = vrot.lane.b32.xlu2 %v2265_v38, %s6564_s29  ;;  %v2347_v54 = vrot.slane %v2343_v1, 3  ;;  %v2288_v16 = vrot.slane %v2284_v49, 2  ;;  %v2358_v42 = vrot.slane %v2354_v47, 3  ;;  %v6234_v0 = vstv %s876_s16 }
 0xf2a   : > { %3513 = vrot.lane.b32.xlu1 %v3508_v46, %s6565_s24  ;;  %v2324_v46 = vsel %vm2311_vm14, %v2322_v28, %v2323_v48  ;;  %v2346_v38 = vrot.slane %v2342_v56, 3  ;;  %v2287_v13 = vrot.slane %v2283_v40, 2  ;;  %v6236_v18 = vstv %s866_s11 }
 0xf2b   : > { %v2360_v14 = vsel %vm2311_vm14, %v2358_v42, %v2359_v2  ;;  %v2402_v27 = vmul.f32 %v6232_v17, %v6089_v12  ;;  %v2390_v63 = vmul.f32 %v6234_v0, %v6089_v12  ;;  %v2331_v45 = vmul.f32 %v6236_v18, %v6089_v12 }
 0xf2c   : > { %v2348_v25 = vsel %vm2311_vm14, %v2346_v38, %v2347_v54  ;;  %v2289_v24 = vsel %vm2082_vm10, %v2287_v13, %v2288_v16  ;;  %v2401_v35 = vmul.f32 %v6232_v17, %v6031_v20  ;;  %v2389_v48 = vmul.f32 %v6234_v0, %v6031_v20 }
 0xf2d   : > { %v2330_v41 = vmul.f32 %v6236_v18, %v6031_v20  ;;  %v2406_v55 = vrot.slane %v2402_v27, 4  ;;  %v2394_v58 = vrot.slane %v2390_v63, 4  ;;  %v2335_v7 = vrot.slane %v2331_v45, 3 }
 0xf2e   : > { %v2405_v59 = vrot.slane %v2401_v35, 4  ;;  %v2393_v28 = vrot.slane %v2389_v48, 4  ;;  %v2159_v40 = vstv %s6269_s13 }
 0xf2f   : > { %v2334_v39 = vrot.slane %v2330_v41, 3 }
 0xf30   : > { %v2407_v22 = vsel %vm2370_vm15, %v2405_v59, %v2406_v55 }
 0xf31   : > { %2325 = vrot.lane.b32.xlu0 %v2324_v46, %s6564_s29  ;;  %2302 = vrot.lane.b32.xlu2 %v2301_v32, %s6566_s15  ;;  %v2395_v46 = vsel %vm2370_vm15, %v2393_v28, %v2394_v58  ;;  %v6258_v32 = vstv %s874_s4  ;;  %v2336_v8 = vsel %vm2311_vm14, %v2334_v39, %v2335_v7 }
 0xf32   : > { %2244 = vrot.lane.b32.xlu1 %v2243_v43, %s6566_s15  ;;  %v2378_v1 = vmul.f32 %v6258_v32, %v6089_v12  ;;  %v2377_v43 = vmul.f32 %v6258_v32, %v6031_v20  ;;  %v2160_v12 = vmul.f32 %v2159_v40, %v6031_v20 }
 0xf34   : > { %v2382_v49 = vrot.slane %v2378_v1, 4  ;;  %v2381_v47 = vrot.slane %v2377_v43, 4 }
 0xf36   : > { %v2383_v56 = vsel %vm2370_vm15, %v2381_v47, %v2382_v49 }
 0xf39   : > { %2361 = vrot.lane.b32.xlu0 %v2360_v14, %s6566_s15  ;;  %2349 = vrot.lane.b32.xlu2 %v2348_v25, %s4770_s21 }
 0xf3a   : > { %2290 = vrot.lane.b32.xlu1 %v2289_v24, %s4770_s21  ;;  %v2180_v38 = vpop.permute.xlu2 %2179 }
 0xf41   : > { %2408 = vrot.lane.b32.xlu0 %v2407_v22, %s4770_s21  ;;  %2396 = vrot.lane.b32.xlu2 %v2395_v46, %s6563_s5 }
 0xf42   : > { %2337 = vrot.lane.b32.xlu1 %v2336_v8, %s6563_s5 }
 0xf4a   : > { %2384 = vrot.lane.b32.xlu1 %v2383_v56, %s6564_s29 }
 0xf52   : > { %v2173_v16 = vpop.permute.xlu1 %2172 }
 0xf53   : > { %v2166_v2 = vpop.permute.xlu0 %2165 }
 0xf54   : > { %v2168_v54 = vadd.f32 %v2166_v2, %v2160_v12 }
 0xf56   : > { %v2175_v42 = vadd.f32 %v2173_v16, %v2168_v54 }
 0xf58   : > { %v2182_v13 = vadd.f32 %v2180_v38, %v2175_v42 }
 0xf5b   : > { %v2187_v14 = vpop.permute.xlu0 %2186 }
 0xf5c   : > { %v2189_v25 = vadd.f32 %v2187_v14, %v2182_v13 }
 0xf5e   : > { %v2199_v27 = vadd.f32 %v6172_v9, %v2189_v25 }
 0xf63   : > { %v3512_v63 = vpop.permute.xlu0 %3511 }
 0xf64   : > { %v3517_v24 = vsel %vm1995_vm8, 0.0, %v3512_v63 }
 0xf65   : > { %v6280_v45 = vsel %vm1998_vm9, %v3517_v24, 0.0 }
 0xf66   : > { %v3529_v20 = vmul.f32 %v6280_v45, %v2169_v15  ;;  %v3523_v35 = vmul.f32 %v6280_v45, %v2162_v6  ;;  %v3535_v48 = vmul.f32 %v6280_v45, %v2176_v60  ;;  %v3541_v9 = vmul.f32 %v6280_v45, %v2183_v51 }
 0xf67   : > { %v3578_v6 = vmul.f32 %v6280_v45, %v6066_v4  ;;  %v3567_v60 = vmul.f32 %v6280_v45, %v6068_v21  ;;  %v3556_v28 = vmul.f32 %v6280_v45, %v6071_v26  ;;  %v3620_v49 = vmul.f32 %v6280_v45, %v6099_v33 }
 0xf68   : > { %3531 = vrot.lane.b32.xlu0 %v3529_v20, %s6563_s5  ;;  %3525 = vrot.lane.b32.xlu2 %v3523_v35, %s6564_s29  ;;  %v3547_v63 = vmul.f32 %v6280_v45, %v6103_v31  ;;  %v3662_v35 = vmul.f32 %v6280_v45, %v6117_v62 }
 0xf69   : > { %3537 = vrot.lane.b32.xlu1 %v3535_v48, %s4770_s21  ;;  %v3582_v1 = vrot.slane %v3578_v6, 1  ;;  %v3571_v43 = vrot.slane %v3567_v60, 1  ;;  %v3560_v12 = vrot.slane %v3556_v28, 1 }
 0xf6a   : > { %v3551_v60 = vrot.slane %v3547_v63, 1 }
 0xf70   : > { %3543 = vrot.lane.b32.xlu2 %v3541_v9, %s6566_s15  ;;  %v3624_v9 = vrot.slane %v3620_v49, 2 }
 0xf7b   : > { %v2221_v15 = vpop.permute.xlu2 %2220 }
 0xf83   : > { %v2267_v54 = vpop.permute.xlu2 %2266 }
 0xf93   : > { %v2233_v58 = vpop.permute.xlu0 %2232 }
 0xf94   : > { %v2209_v41 = vpop.permute.xlu1 %2208 }
 0xf95   : > { %v2211_v55 = vadd.f32 %v2209_v41, %v2199_v27  ;;  %v3589_v27 = vmul.f32 %v6280_v45, %v6143_v19 }
 0xf97   : > { %v2223_v39 = vadd.f32 %v2221_v15, %v2211_v55  ;;  %v3593_v15 = vrot.slane %v3589_v27, 1 }
 0xf99   : > { %v2235_v16 = vadd.f32 %v2233_v58, %v2223_v39  ;;  %v3631_v58 = vmul.f32 %v6280_v45, %v6211_v3 }
 0xf9b   : > { %v2279_v25 = vpop.permute.xlu0 %2278 }
 0xf9c   : > { %v3514_v7 = vpop.permute.xlu1 %3513 }
 0xf9d   : > { %v3518_v59 = vsel %vm1995_vm8, 0.0, %v3514_v7  ;;  %v3600_v7 = vmul.f32 %v6280_v45, %v6109_v23 }
 0xf9e   : > { %v6306_v51 = vsel %vm1998_vm9, %v3518_v59, 0.0  ;;  %v3653_v59 = vmul.f32 %v6280_v45, %v6111_v57 }
 0xf9f   : > { %v3579_v22 = vmul.f32 %v6306_v51, %v6066_v4  ;;  %v3568_v46 = vmul.f32 %v6306_v51, %v6068_v21  ;;  %v3557_v8 = vmul.f32 %v6306_v51, %v6071_v26  ;;  %v3621_v4 = vmul.f32 %v6306_v51, %v6099_v33 }
 0xfa0   : > { %v3609_v21 = vmul.f32 %v6280_v45, %v6101_v61  ;;  %v3610_v26 = vmul.f32 %v6306_v51, %v6101_v61  ;;  %v3590_v14 = vmul.f32 %v6306_v51, %v6143_v19  ;;  %v3642_v19 = vmul.f32 %v6280_v45, %v6126_v5 }
 0xfa1   : > { %v3583_v47 = vrot.slane %v3579_v22, 1  ;;  %v3572_v56 = vrot.slane %v3568_v46, 1  ;;  %v3561_v2 = vrot.slane %v3557_v8, 1  ;;  %v3625_v24 = vrot.slane %v3621_v4, 2 }
 0xfa2   : > { %v3614_v20 = vrot.slane %v3610_v26, 2  ;;  %v3613_v41 = vrot.slane %v3609_v21, 2  ;;  %v3594_v55 = vrot.slane %v3590_v14, 1  ;;  %v3663_v22 = vmul.f32 %v6306_v51, %v6117_v62 }
 0xfa3   : > { %v3584_v42 = vsel %vm2037_vm11, %v3582_v1, %v3583_v47  ;;  %v3573_v38 = vsel %vm2037_vm11, %v3571_v43, %v3572_v56  ;;  %v3562_v13 = vsel %vm2037_vm11, %v3560_v12, %v3561_v2  ;;  %v3626_v28 = vsel %vm2082_vm10, %v3624_v9, %v3625_v24  ;;  %v2303_v47 = vpop.permute.xlu2 %2302  ;;  %v2326_v4 = vpop.permute.xlu0 %2325 }
 0xfa4   : > { %3585 = vrot.lane.b32.xlu2 %v3584_v42, %s4770_s21  ;;  %3574 = vrot.lane.b32.xlu1 %v3573_v38, %s6563_s5  ;;  %v2245_v33 = vpop.permute.xlu1 %2244  ;;  %v3615_v39 = vsel %vm2082_vm10, %v3613_v41, %v3614_v20  ;;  %v3643_v46 = vmul.f32 %v6306_v51, %v6126_v5  ;;  %v3595_v8 = vsel %vm2037_vm11, %v3593_v15, %v3594_v55  ;;  %v3604_v12 = vrot.slane %v3600_v7, 2 }
 0xfa5   : > { %3563 = vrot.lane.b32.xlu0 %v3562_v13, %s6564_s29  ;;  %v2247_v61 = vadd.f32 %v2245_v33, %v2235_v16  ;;  %v3632_v43 = vmul.f32 %v6306_v51, %v6211_v3  ;;  %v3548_v49 = vmul.f32 %v6306_v51, %v6103_v31  ;;  %v3601_v62 = vmul.f32 %v6306_v51, %v6109_v23 }
 0xfa6   : > { %v3654_v5 = vmul.f32 %v6306_v51, %v6111_v57  ;;  %v3707_v2 = vmul.f32 %v6306_v51, %v6129_v34  ;;  %v3667_v21 = vrot.slane %v3663_v22, 3  ;;  %v3666_v23 = vrot.slane %v3662_v35, 3 }
 0xfa7   : > { %v2257_v48 = vadd.f32 %v6193_v37, %v2247_v61  ;;  %v3706_v37 = vmul.f32 %v6280_v45, %v6129_v34  ;;  %v3552_v31 = vrot.slane %v3548_v49, 1  ;;  %v3605_v26 = vrot.slane %v3601_v62, 2 }
 0xfa8   : > { %v3658_v42 = vrot.slane %v3654_v5, 3  ;;  %v3711_v38 = vrot.slane %v3707_v2, 4  ;;  %v3647_v14 = vrot.slane %v3643_v46, 2  ;;  %v3636_v57 = vrot.slane %v3632_v43, 2 }
 0xfa9   : > { %v2269_v6 = vadd.f32 %v2267_v54, %v2257_v48  ;;  %v3657_v54 = vrot.slane %v3653_v59, 3  ;;  %v3710_v16 = vrot.slane %v3706_v37, 4  ;;  %v6371_v34 = vsel %vm2082_vm10, %v3604_v12, %v3605_v26 }
 0xfaa   : > { %v3646_v61 = vrot.slane %v3642_v19, 2  ;;  %v3668_v24 = vsel %vm2311_vm14, %v3666_v23, %v3667_v21  ;;  %v3635_v20 = vrot.slane %v3631_v58, 2  ;;  %v3696_v9 = vmul.f32 %v6306_v51, %v6205_v50 }
 0xfab   : > { %v2281_v1 = vadd.f32 %v2279_v25, %v2269_v6  ;;  %v6368_v25 = vsel %vm2037_vm11, %v3551_v60, %v3552_v31  ;;  %v6374_v33 = vsel %vm2311_vm14, %v3657_v54, %v3658_v42  ;;  %v6377_v27 = vsel %vm2370_vm15, %v3710_v16, %v3711_v38  ;;  %v2350_v6 = vpop.permute.xlu2 %2349 }
 0xfac   : > { %3627 = vrot.lane.b32.xlu2 %v3626_v28, %s6563_s5  ;;  %3616 = vrot.lane.b32.xlu1 %v3615_v39, %s6564_s29  ;;  %v2291_v56 = vpop.permute.xlu1 %2290  ;;  %v3648_v35 = vsel %vm2082_vm10, %v3646_v61, %v3647_v14  ;;  %v3685_v41 = vmul.f32 %v6306_v51, %v6208_v11  ;;  %v3637_v55 = vsel %vm2082_vm10, %v3635_v20, %v3636_v57  ;;  %v3700_v37 = vrot.slane %v3696_v9, 3  ;;  %v2362_v39 = vpop.permute.xlu0 %2361 }
 0xfad   : > { %3596 = vrot.lane.b32.xlu0 %v3595_v8, %s6566_s15  ;;  %v2293_v3 = vadd.f32 %v2291_v56, %v2281_v1  ;;  %v3695_v58 = vmul.f32 %v6280_v45, %v6205_v50  ;;  %v3684_v7 = vmul.f32 %v6280_v45, %v6208_v11  ;;  %v3673_v60 = vmul.f32 %v6280_v45, %v6236_v18 }
 0xfae   : > { %v3689_v28 = vrot.slane %v3685_v41, 3  ;;  %v3738_v49 = vmul.f32 %v6306_v51, %v6232_v17  ;;  %v3716_v62 = vmul.f32 %v6306_v51, %v6258_v32  ;;  %v3737_v12 = vmul.f32 %v6280_v45, %v6232_v17 }
 0xfaf   : > { %v2305_v13 = vadd.f32 %v2303_v47, %v2293_v3  ;;  %v3699_v46 = vrot.slane %v3695_v58, 3  ;;  %v3688_v8 = vrot.slane %v3684_v7, 3  ;;  %v3677_v43 = vrot.slane %v3673_v60, 3 }
 0xfb0   : > { %v3715_v5 = vmul.f32 %v6280_v45, %v6258_v32  ;;  %v3742_v2 = vrot.slane %v3738_v49, 4  ;;  %v3720_v31 = vrot.slane %v3716_v62, 4  ;;  %v3741_v54 = vrot.slane %v3737_v12, 4 }
 0xfb1   : > { %v2316_v63 = vadd.f32 %v6196_v10, %v2305_v13  ;;  %v3674_v10 = vmul.f32 %v6306_v51, %v6236_v18  ;;  %v3701_v50 = vsel %vm2311_vm14, %v3699_v46, %v3700_v37  ;;  %v3690_v11 = vsel %vm2311_vm14, %v3688_v8, %v3689_v28 }
 0xfb2   : > { %v3727_v18 = vmul.f32 %v6306_v51, %v6234_v0  ;;  %v3743_v21 = vsel %vm2370_vm15, %v3741_v54, %v3742_v2  ;;  %v3748_v32 = vmul.f32 %v6280_v45, %v6140_v53  ;;  %v2424_v54 = vstv %s882_s18 }
 0xfb3   : > { %v2328_v48 = vadd.f32 %v2326_v4, %v2316_v63  ;;  %v3678_v22 = vrot.slane %v3674_v10, 3  ;;  %v3719_v4 = vrot.slane %v3715_v5, 4  ;;  %v2397_v13 = vpop.permute.xlu2 %2396 }
 0xfb4   : > { %3669 = vrot.lane.b32.xlu2 %v3668_v24, %s6564_s29  ;;  %3649 = vrot.lane.b32.xlu1 %v3648_v35, %s6566_s15  ;;  %v2338_v15 = vpop.permute.xlu1 %2337  ;;  %v3731_v3 = vrot.slane %v3727_v18, 4  ;;  %v3752_v38 = vrot.slane %v3748_v32, 4  ;;  %v2409_v14 = vpop.permute.xlu0 %2408 }
 0xfb5   : > { %3638 = vrot.lane.b32.xlu0 %v3637_v55, %s4770_s21  ;;  %v2340_v19 = vadd.f32 %v2338_v15, %v2328_v48  ;;  %v3679_v56 = vsel %vm2311_vm14, %v3677_v43, %v3678_v22  ;;  %v3721_v17 = vsel %vm2370_vm15, %v3719_v4, %v3720_v31 }
 0xfb7   : > { %v2352_v59 = vadd.f32 %v2350_v6, %v2340_v19 }
 0xfb9   : > { %v2364_v1 = vadd.f32 %v2362_v39, %v2352_v59 }
 0xfbb   : > { %v6403_v47 = vadd.f32 %v6199_v29, %v2364_v1  ;;  %v3726_v29 = vmul.f32 %v6280_v45, %v6234_v0  ;;  %v3749_v0 = vmul.f32 %v6306_v51, %v6140_v53  ;;  %v3521_v51 = vmul.f32 %v6280_v45, %v2159_v40 }
 0xfbc   : > { %3702 = vrot.lane.b32.xlu2 %v3701_v50, %s6566_s15  ;;  %3691 = vrot.lane.b32.xlu1 %v3690_v11, %s4770_s21  ;;  %v2385_v57 = vpop.permute.xlu1 %2384 }
 0xfbd   : > { %3680 = vrot.lane.b32.xlu0 %v3679_v56, %s6563_s5  ;;  %v3730_v16 = vrot.slane %v3726_v29, 4  ;;  %v3753_v42 = vrot.slane %v3749_v0, 4 }
 0xfbf   : > { %v3732_v26 = vsel %vm2370_vm15, %v3730_v16, %v3731_v3  ;;  %v3754_v23 = vsel %vm2370_vm15, %v3752_v38, %v3753_v42 }
 0xfc2   : > { %v3526_v61 = vpop.permute.xlu2 %3525 }
 0xfc3   : > { %v3528_v63 = vadd.f32 %v3526_v61, %v3521_v51 }
 0xfc4   : > { %3744 = vrot.lane.b32.xlu2 %v3743_v21, %s4770_s21  ;;  %3733 = vrot.lane.b32.xlu1 %v3732_v26, %s6563_s5  ;;  %s884_s21 = sld [smem:[#allocation3 + %s883_s3]] }
 0xfc5   : > { %3722 = vrot.lane.b32.xlu0 %v3721_v17, %s6564_s29  ;;  %s886_s5 = sld [smem:[#allocation3 + %s885_s17]] }
 0xfca   : > { %v3544_v48 = vpop.permute.xlu2 %3543 }
 0xfcb   : > { %v2428_v32 = vstv %s886_s5 }
 0xfcc   : > { %2420 = vrot.lane.b32.xlu1 %v6202_v44, %s6566_s15 }
 0xfcd   : > { %3755 = vrot.lane.b32.xlu0 %v3754_v23, %s6566_s15 }
 0xfda   : > { %v3532_v24 = vpop.permute.xlu0 %3531 }
 0xfdb   : > { %v3534_v20 = vadd.f32 %v3532_v24, %v3528_v63  ;;  %v3538_v53 = vpop.permute.xlu1 %3537 }
 0xfdd   : > { %v3540_v35 = vadd.f32 %v3538_v53, %v3534_v20 }
 0xfdf   : > { %v3546_v9 = vadd.f32 %v3544_v48, %v3540_v35 }
 0xfe1   : > { %v3555_v41 = vadd.f32 %v6368_v25, %v3546_v9 }
 0xffe   : > { %v3586_v44 = vpop.permute.xlu2 %3585 }
0x1006   : > { %v3628_v6 = vpop.permute.xlu2 %3627 }
0x100e   : > { %v3670_v25 = vpop.permute.xlu2 %3669 }
0x1016   : > { %v3575_v55 = vpop.permute.xlu1 %3574  ;;  %v3703_v18 = vpop.permute.xlu2 %3702 }
0x1017   : > { %v3564_v15 = vpop.permute.xlu0 %3563 }
0x1018   : > { %v3566_v10 = vadd.f32 %v3564_v15, %v3555_v41 }
0x101a   : > { %v3577_v19 = vadd.f32 %v3575_v55, %v3566_v10 }
0x101c   : > { %v3588_v58 = vadd.f32 %v3586_v44, %v3577_v19 }
0x101e   : > { %v3617_v7 = vpop.permute.xlu1 %3616  ;;  %v3745_v3 = vpop.permute.xlu2 %3744 }
0x101f   : > { %v3597_v60 = vpop.permute.xlu0 %3596 }
0x1020   : > { %v3599_v59 = vadd.f32 %v3597_v60, %v3588_v58 }
0x1022   : > { %v3608_v40 = vadd.f32 %v6371_v34, %v3599_v59  ;;  %v2387_v34 = vadd.f32 %v2385_v57, %v6403_v47  ;;  %v2426_v47 = vstv %s884_s21 }
0x1024   : > { %v3619_v45 = vadd.f32 %v3617_v7, %v3608_v40 }
0x1026   : > { %v3630_v37 = vadd.f32 %v3628_v6, %v3619_v45  ;;  %v3650_v28 = vpop.permute.xlu1 %3649 }
0x1027   : > { %v3639_v39 = vpop.permute.xlu0 %3638 }
0x1028   : > { %v3641_v22 = vadd.f32 %v3639_v39, %v3630_v37 }
0x102a   : > { %v3652_v46 = vadd.f32 %v3650_v28, %v3641_v22 }
0x102c   : > { %v3661_v8 = vadd.f32 %v6374_v33, %v3652_v46  ;;  %v2399_v33 = vadd.f32 %v2397_v13, %v2387_v34 }
0x102e   : > { %v3672_v1 = vadd.f32 %v3670_v25, %v3661_v8  ;;  %v3692_v43 = vpop.permute.xlu1 %3691  ;;  %v2411_v31 = vadd.f32 %v2409_v14, %v2399_v33 }
0x102f   : > { %v3681_v49 = vpop.permute.xlu0 %3680 }
0x1030   : > { %v3683_v50 = vadd.f32 %v3681_v49, %v3672_v1  ;;  %v4323_v49 = vld [vmem:[%s6569_s8] ss:$0 sm:$0xff] }
0x1032   : > { %v3694_v11 = vadd.f32 %v3692_v43, %v3683_v50 }
0x1034   : > { %v3705_v56 = vadd.f32 %v3703_v18, %v3694_v11 }
0x1036   : > { %v3714_v62 = vadd.f32 %v6377_v27, %v3705_v56  ;;  %v3734_v12 = vpop.permute.xlu1 %3733 }
0x1037   : > { %v3723_v29 = vpop.permute.xlu0 %3722 }
0x1038   : > { %v3725_v5 = vadd.f32 %v3723_v29, %v3714_v62 }
0x103a   : > { %v3736_v2 = vadd.f32 %v3734_v12, %v3725_v5 }
0x103c   : > { %v3747_v16 = vadd.f32 %v3745_v3, %v3736_v2 }
0x103e   : > { %v2421_v4 = vpop.permute.xlu1 %2420 }
0x103f   : > { %v3756_v21 = vpop.permute.xlu0 %3755  ;;  %v2423_v26 = vadd.f32 %v2421_v4, %v2411_v31 }
0x1040   : > { %v3758_v17 = vadd.f32 %v3756_v21, %v3747_v16 }
0x1041   : > { %v2425_v0 = vadd.f32 %v2424_v54, %v2423_v26 }
0x1042   : > { %v3759_v27 = vadd.f32 %v3758_v17, %v2424_v54 }
0x1043   : > { %v2427_v42 = vmul.f32 %v2426_v47, %v2425_v0 }
0x1044   : > { %v3760_v38 = vmul.f32 %v3759_v27, %v2426_v47 }
0x1045   : > { %v2429_v23 = vadd.f32 %v2428_v32, %v2427_v42 }
0x1046   : > { %v3761_v57 = vadd.f32 %v3760_v38, %v2428_v32 }
0x1047   : > { %v2430_v61 = vmax.f32 %v2429_v23, 0.0 }
0x1048   : > { %v3762_v13 = vmax.f32 %v3761_v57, 0.0 }
0x1049   : > { %v2431_v51 = vadd.f32 %v2430_v61, %v5772_v52 }
0x104a   : > { %v3763_v14 = vadd.f32 %v3762_v13, %v5854_v30 }
0x104b   : > { %v2432_v63 = vsel %vm893_vm1, %v2431_v51, 0.0 }
0x104c   : > { %2433 = vadd.xlane.f32.xlu2 %v2432_v63  ;;  %v3764_v24 = vsel %vm893_vm1, %v3763_v14, 0.0 }
0x104d   : > { %3765 = vadd.xlane.f32.xlu1 %v3764_v24 }
0x10bf   : > { %v2434_v20 = vpop.xlane.xlu2 %2433 }
0x10c0   : > { %v3766_v53 = vpop.xlane.xlu1 %3765  ;;  %v2435_v35 = vmul.f32 %v2434_v20, %v5736_v36 }
0x10c1   : > { %v3767_v48 = vmul.f32 %v3766_v53, %v5736_v36 }
0x10c2   : > { %v2436_v9 = vsub.f32 %v2431_v51, %v2435_v35 }
0x10c3   : > { %v3768_v41 = vsub.f32 %v3763_v14, %v3767_v48 }
0x10c4   : > { %v2437_v44 = vmul.f32 %v2436_v9, %v2436_v9 }
0x10c5   : > { %v3769_v55 = vmul.f32 %v3768_v41, %v3768_v41 }
0x10c6   : > { %v2438_v52 = vsel %vm893_vm1, %v2437_v44, 0.0 }
0x10c7   : > { %v3770_v30 = vsel %vm893_vm1, %v3769_v55, 0.0  ;;  %2439 = vadd.xlane.f32.xlu0 %v2438_v52 }
0x10c8   : > { %3771 = vadd.xlane.f32.xlu2 %v3770_v30 }
0x113a   : > { %v2440_v15 = vpop.xlane.xlu0 %2439 }
0x113b   : > { %v2441_v10 = vmul.f32 %v2440_v15, %v5736_v36  ;;  %v3772_v19 = vpop.xlane.xlu2 %3771 }
0x113c   : > { %v3773_v58 = vmul.f32 %v3772_v19, %v5736_v36  ;;  %v4322_v36 = vld [vmem:[%s6567_s2] ss:$0 sm:$0xff] }
0x113d   : > { %v2442_v7 = vadd.f32 1e-05, %v2441_v10 }
0x113e   : > { %v3774_v6 = vadd.f32 1e-05, %v3773_v58 }
0x113f   : > { %4426 = vrsqrt.f32 %v2442_v7  ;;  %vm2449_vm0 = vweird.f32 %v2442_v7 }
0x1140   : > { %4428 = vrsqrt.f32 %v3774_v6  ;;  %vm3781_vm4 = vweird.f32 %v3774_v6 }
0x1145   : > { %v4427_v60 = vpop.eup %4426 }
0x1146   : > { %v4429_v59 = vpop.eup %4428  ;;  %v2444_v40 = vmul.f32 %v4427_v60, %v2442_v7  ;;  %vm2450_vm2 = vweird.f32 %v4427_v60 }
0x1147   : > { %v3776_v45 = vmul.f32 %v4429_v59, %v3774_v6  ;;  %vm3782_vm5 = vweird.f32 %v4429_v59  ;;  %vm2451_vm3 = vmor %vm2449_vm0, %vm2450_vm2 }
0x1148   : > { %v2445_v37 = vmul.f32 %v4427_v60, %v2444_v40  ;;  %vm3783_vm8 = vmor %vm3781_vm4, %vm3782_vm5 }
0x1149   : > { %v3777_v28 = vmul.f32 %v4429_v59, %v3776_v45 }
0x114a   : > { %v2446_v39 = vmul.f32 0.5, %v2445_v37 }
0x114b   : > { %v3778_v22 = vmul.f32 0.5, %v3777_v28 }
0x114c   : > { %v2447_v25 = vsub.f32 1.5, %v2446_v39 }
0x114d   : > { %v3779_v46 = vsub.f32 1.5, %v3778_v22 }
0x114e   : > { %v2448_v8 = vmul.f32 %v4427_v60, %v2447_v25 }
0x114f   : > { %v3780_v1 = vmul.f32 %v4429_v59, %v3779_v46 }
0x1150   : > { %v2452_v43 = vsel %vm2451_vm3, %v4427_v60, %v2448_v8 }
0x1151   : > { %v2453_v50 = vmul.f32 %v2452_v43, %v2436_v9  ;;  %v3784_v11 = vsel %vm3783_vm8, %v4429_v59, %v3780_v1 }
0x1152   : > { %v3785_v18 = vmul.f32 %v3784_v11, %v3768_v41 }
0x1153   : > { %v2457_v56 = vmul.f32 %v4322_v36, %v2453_v50 }
0x1154   : > { %v3786_v34 = vmul.f32 %v4322_v36, %v3785_v18  ;;  %3793 = sbr.rel (%p4150_p7) target bundleno = 4443 (0x115b), region = 116 }
0x1155   : > { %v2461_v62 = vadd.f32 %v4323_v49, %v2457_v56 }
0x1156   : > { %v3787_v12 = vadd.f32 %v4323_v49, %v3786_v34 }
0x1157   : > { %3788 = vst.msk [vmem:[#allocation2] sm:$0xff] %vm893_vm1, %v2461_v62 }
0x1158   : > { %3789 = vst.msk [vmem:[#allocation2 + $0x8] sm:$0xff] %vm893_vm1, %v3787_v12 }
0x1159   : > { %3794 = vst.msk [vmem:[#allocation17] sm:$0xff] %vm893_vm1, %v2461_v62 }
0x115a   : > { %3796 = vst.msk [vmem:[#allocation17 + $0x8] sm:$0xff] %vm893_vm1, %v3787_v12 }
0x115b PF: > { %p4212_p2 = scmp.eq.s32.totalorder %s4969_s19, 1  ;;  %s4771_s22 = smov [#allocation17]  }
0x115c   : > { %s3802_s14 = sshll.u32 %s4771_s22, 4  ;;  %s6570_s24 = sld [smem:[#allocation39_spill]]  ;;  %s3803_s14 = int_to_ptr.vmem [resolvable:$true] %s3802_s14 }
0x115d   : > { %s4772_s1 = smov 128   ;;  %s6571_s20 = smov 8  }
0x1162   : > { %s3804_s6 = sshll.u32 %s6570_s24, 4  ;;  %s3805_s6 = int_to_ptr.hbm [resolvable:$true] %s3804_s6 }
0x1163   : > { %4178 = dma.vmem_to_hbm [thread:$0]  (%p4212_p2), %s3803_s14, 256, %s3805_s6, [#allocation5], %s4772_s1, %s4772_s1, %s6571_s20  }
0x1164   : > { %4725 = dma.done.wait (%p4212_p2), [#allocation5], 256  }
0x1165   : > { %4727 = vsyncadd (%p4212_p2), [#allocation5], 4294967040 }
0x1166 PF: > { %s6572_s16 = sld [smem:[#allocation25_spill]]  ;;  %s6575_s29 = smov %s4734_s30 }
0x1167   : > { %s6573_s25 = sld [smem:[#allocation24_spill]] }
0x1168   : > { %s6574_s15 = sld [smem:[#allocation26_spill]] }
0x116c   : > { %p33_p8 = scmp.ge.s32.totalorder %s6572_s16, 4  }
0x116d   : > { %s6576_s30 = smov %s6573_s25 }
0x116e   :  { %35 = sbr.rel (!%p33_p8) target bundleno = 24 (0x18), region = 210 }
0x1173   :  { %3821 = vsyncpa [#allocation4], 1 }
0x1174   :  { %3823 = vsyncpa [#allocation4 + $0x1], 1 }
0x1175   :  { %3824 = vsyncpa [#allocation9], 1 }
0x1176   :  { %3826 = vsyncpa [#allocation9 + $0x1], 1 }
0x1177   :  { %3827 = vsyncpa [#allocation12], 1 }
0x1178   :  { %3829 = vsyncpa [#allocation12 + $0x1], 1 }
0x1179   :  { %3830 = vsyncpa [#allocation15], 1 }
0x117a   :  { %3832 = vsyncpa [#allocation15 + $0x1], 1 }
0x117b   :  { %3833 = vsyncpa [#allocation5], 1 }
0x117c   :  { %3835 = vsyncpa [#allocation5 + $0x1], 1 }
0x117d   :  { %3836 = vsyncpa [#allocation6], 1 }
0x117e   :  { %3838 = vsyncpa [#allocation6 + $0x1], 1 }

</bundles_post_ra>
